<compile_context>
chip_gen: v6e
topology: v6e:2x2x1
jax: 0.10.0
libtpu: 0.0.40
codegen_flags: <defaults>
</compile_context>

<pallas_src>
import functools

import jax
import jax.numpy as jnp
from jax.experimental import pallas as pl
from jax.experimental.pallas import tpu as pltpu

HIDDEN = (500, 300, 100, 50, 30)
LANE = 128
SUBLANE = 8  # f32 sublane granularity


def _round_up(v, m):
    return ((v + m - 1) // m) * m


def _cdiv(a, b):
    return -(-a // b)


def mlp_kernel(x_ref, w1, w2, w3, w4, w5, w6, b_ref, out_ref, *, out_dims):
    """Fused 6-layer MLP on one batch tile. All weights resident in VMEM."""
    # Static slices of the single concatenated f32 bias buffer (1, sum(out_dims)).
    biases = []
    off = 0
    for n in out_dims:
        biases.append(b_ref[:, off:off + n])  # [1, n], broadcasts over rows
        off += n

    h = x_ref[...]  # f32 [TB, in_features]
    for w_ref, b in zip((w1, w2, w3, w4, w5, w6), biases):
        acc = jnp.dot(h, w_ref[...], preferred_element_type=jnp.float32)
        # NOTE: the PyTorch module applies ReLU after *every* layer, incl. fc6.
        h = jnp.maximum(acc + b, 0.0)

    out_ref[...] = h  # f32 [TB, out_pad]


def nnh5_relu_forward(x, params, batch_tile=1024):
    """x: [B, input_size] f32; params: list of (W [in,out] f32, b [out] f32)."""
    B, in_features = x.shape
    num_classes = params[-1][0].shape[1]

    dims = [in_features] + [w.shape[1] for w, _ in params]
    # Input feature dim stays unpadded; hidden/output dims padded to 128 lanes.
    pdims = [in_features] + [_round_up(d, LANE) for d in dims[1:]]

    # Zero-pad weights / biases (exact); keep everything f32 like the PyTorch model.
    ws, bs = [], []
    for i, (w, b) in enumerate(params):
        wp = jnp.zeros((pdims[i], pdims[i + 1]), jnp.float32)
        wp = wp.at[: w.shape[0], : w.shape[1]].set(w)
        ws.append(wp)
        bp = jnp.zeros((1, pdims[i + 1]), jnp.float32)
        bp = bp.at[:, : b.shape[-1]].set(b.reshape(1, -1))
        bs.append(bp)
    b_cat = jnp.concatenate(bs, axis=1)  # [1, sum(out_pads)] f32

    # Padding-aware batch tiling with an even number (>= 2) of grid steps so
    # dimension_semantics=("parallel",) actually shards across v7x's two TCs.
    n_tiles = max(2, _cdiv(B, max(int(batch_tile), SUBLANE)))
    n_tiles = _round_up(n_tiles, 2)
    TB = _round_up(_cdiv(B, n_tiles), SUBLANE)
    B_pad = n_tiles * TB

    if B_pad == B:
        xp = x
    else:
        xp = jnp.zeros((B_pad, in_features), jnp.float32).at[:B].set(x)

    out_pad = pdims[-1]
    grid = (n_tiles,)

    # Explicit scoped-VMEM budget derived from the real per-tile footprint
    # (resident weights possibly double-buffered + double-buffered x/out tiles
    # + headroom for chained f32 intermediates), clamped to v7x-safe 64 MiB.
    weight_bytes = sum(int(w.size) * 4 for w in ws)
    bias_bytes = int(b_cat.size) * 4
    x_tile_bytes = TB * in_features * 4
    out_tile_bytes = TB * out_pad * 4
    interm_bytes = 4 * TB * max(pdims[1:]) * 4
    vmem_needed = (2 * weight_bytes + 2 * bias_bytes
                   + 2 * x_tile_bytes + 2 * out_tile_bytes
                   + interm_bytes + (4 << 20))
    vmem_limit = int(min(max(vmem_needed, 32 << 20), 64 << 20))

    flops = 2 * B_pad * sum(pdims[i] * pdims[i + 1] for i in range(len(ws)))
    bytes_accessed = int(
        (int(xp.size) + sum(int(w.size) for w in ws) + int(b_cat.size)
         + B_pad * out_pad) * 4)

    kernel = functools.partial(mlp_kernel, out_dims=tuple(pdims[1:]))

    def _resident_spec(shape, single_buffer):
        # Constant index_map -> operand stays resident in VMEM across the grid.
        if single_buffer:
            return pl.BlockSpec(shape, lambda i: (0, 0),
                                pipeline_mode=pl.Buffered(1))
        return pl.BlockSpec(shape, lambda i: (0, 0))

    def _run(single_buffer_weights):
        in_specs = [pl.BlockSpec((TB, in_features), lambda i: (i, 0))]  # x tile
        in_specs += [_resident_spec(w.shape, single_buffer_weights) for w in ws]
        in_specs += [_resident_spec(b_cat.shape, single_buffer_weights)]
        out_spec = pl.BlockSpec((TB, out_pad), lambda i: (i, 0))
        return pl.pallas_call(
            kernel,
            out_shape=jax.ShapeDtypeStruct((B_pad, out_pad), jnp.float32),
            grid=grid,
            in_specs=in_specs,
            out_specs=out_spec,
            compiler_params=pltpu.CompilerParams(
                dimension_semantics=("parallel",),
                vmem_limit_bytes=vmem_limit),
            cost_estimate=pl.CostEstimate(
                flops=flops, transcendentals=0, bytes_accessed=bytes_accessed),
        )(xp, *ws, b_cat)

    try:
        # Single-buffer the resident weights/bias (frees VMEM headroom).
        out = _run(True)
    except Exception:
        # Fallback: default double-buffering (weights are tiny, ~2.5 MiB f32).
        out = _run(False)

    return out[:B, :num_classes]


def init_params(key, input_size, num_classes):
    """Deterministic Kaiming-uniform-ish init matching nn.Linear shapes."""
    sizes = (input_size,) + HIDDEN + (num_classes,)
    params = []
    for i in range(len(sizes) - 1):
        fan_in, fan_out = sizes[i], sizes[i + 1]
        key, kw, kb = jax.random.split(key, 3)
        bound = 1.0 / jnp.sqrt(float(fan_in))
        w = jax.random.uniform(kw, (fan_in, fan_out), jnp.float32, -bound, bound)
        b = jax.random.uniform(kb, (fan_out,), jnp.float32, -bound, bound)
        params.append((w, b))
    return params


def reference_forward(x, params):
    """Pure-JAX f32 reference replicating the PyTorch forward (ReLU after fc6 too)."""
    h = x
    for w, b in params:
        h = jnp.maximum(
            jnp.dot(h, w, precision=jax.lax.Precision.HIGHEST) + b[None, :], 0.0)
    return h


if __name__ == "__main__":
    key = jax.random.PRNGKey(0)
    input_size = 64
    num_classes = 10
    batch = 20  # not a multiple of the tile -> exercises padding + 2-step grid

    kx, kp = jax.random.split(key)
    x = jax.random.normal(kx, (batch, input_size), jnp.float32)
    params = init_params(kp, input_size, num_classes)

    out = jax.block_until_ready(nnh5_relu_forward(x, params))
    ref = reference_forward(x, params)

    assert out.shape == (batch, num_classes)
    max_err = float(jnp.max(jnp.abs(out - ref)))
    assert bool(jnp.allclose(out, ref, atol=1e-2, rtol=1e-2)), max_err
    print("KERNEL_OK")
</pallas_src>

<mosaic_0001>
module attributes {stable_mosaic.version = 11 : i64} {
  func.func @mlp_kernel(%arg0: i32, %arg1: memref<16x64xf32, #tpu.memory_space<vmem>>, %arg2: memref<64x512xf32, #tpu.memory_space<vmem>>, %arg3: memref<512x384xf32, #tpu.memory_space<vmem>>, %arg4: memref<384x128xf32, #tpu.memory_space<vmem>>, %arg5: memref<128x128xf32, #tpu.memory_space<vmem>>, %arg6: memref<128x128xf32, #tpu.memory_space<vmem>>, %arg7: memref<128x128xf32, #tpu.memory_space<vmem>>, %arg8: memref<1x1408xf32, #tpu.memory_space<vmem>>, %arg9: memref<16x128xf32, #tpu.memory_space<vmem>>) attributes {dimension_semantics = [#tpu.dimension_semantics<parallel>], iteration_bounds = array<i64: 2>, scalar_prefetch = 0 : i64, scratch_operands = 0 : i64, tpu.core_type = #tpu.core_type<tc>, window_params = [{transform_indices = @transform_0, window_bounds = array<i64: 16, 64>}, {pipeline_mode = #tpu.pipeline_mode<synchronous>, transform_indices = @transform_1, window_bounds = array<i64: 64, 512>}, {pipeline_mode = #tpu.pipeline_mode<synchronous>, transform_indices = @transform_2, window_bounds = array<i64: 512, 384>}, {pipeline_mode = #tpu.pipeline_mode<synchronous>, transform_indices = @transform_3, window_bounds = array<i64: 384, 128>}, {pipeline_mode = #tpu.pipeline_mode<synchronous>, transform_indices = @transform_4, window_bounds = array<i64: 128, 128>}, {pipeline_mode = #tpu.pipeline_mode<synchronous>, transform_indices = @transform_5, window_bounds = array<i64: 128, 128>}, {pipeline_mode = #tpu.pipeline_mode<synchronous>, transform_indices = @transform_6, window_bounds = array<i64: 128, 128>}, {pipeline_mode = #tpu.pipeline_mode<synchronous>, transform_indices = @transform_7, window_bounds = array<i64: 1, 1408>}, {transform_indices = @transform_8, window_bounds = array<i64: 16, 128>}]} {
    %c0 = arith.constant 0 : index
    %c0_0 = arith.constant 0 : index
    %0 = vector.load %arg8[%c0, %c0_0] : memref<1x1408xf32, #tpu.memory_space<vmem>>, vector<1x512xf32>
    %c0_1 = arith.constant 0 : index
    %c512 = arith.constant 512 : index
    %1 = vector.load %arg8[%c0_1, %c512] : memref<1x1408xf32, #tpu.memory_space<vmem>>, vector<1x384xf32>
    %c0_2 = arith.constant 0 : index
    %c896 = arith.constant 896 : index
    %2 = vector.load %arg8[%c0_2, %c896] : memref<1x1408xf32, #tpu.memory_space<vmem>>, vector<1x128xf32>
    %c0_3 = arith.constant 0 : index
    %c1024 = arith.constant 1024 : index
    %3 = vector.load %arg8[%c0_3, %c1024] : memref<1x1408xf32, #tpu.memory_space<vmem>>, vector<1x128xf32>
    %c0_4 = arith.constant 0 : index
    %c1152 = arith.constant 1152 : index
    %4 = vector.load %arg8[%c0_4, %c1152] : memref<1x1408xf32, #tpu.memory_space<vmem>>, vector<1x128xf32>
    %c0_5 = arith.constant 0 : index
    %c1280 = arith.constant 1280 : index
    %5 = vector.load %arg8[%c0_5, %c1280] : memref<1x1408xf32, #tpu.memory_space<vmem>>, vector<1x128xf32>
    %c0_6 = arith.constant 0 : index
    %c0_7 = arith.constant 0 : index
    %6 = vector.load %arg1[%c0_6, %c0_7] : memref<16x64xf32, #tpu.memory_space<vmem>>, vector<16x64xf32>
    %c0_8 = arith.constant 0 : index
    %c0_9 = arith.constant 0 : index
    %7 = vector.load %arg2[%c0_8, %c0_9] : memref<64x512xf32, #tpu.memory_space<vmem>>, vector<64x512xf32>
    %cst = arith.constant dense<0.000000e+00> : vector<16x512xf32>
    %8 = tpu.matmul %6, %7, %cst {dimension_numbers = #tpu.dot_dimension_numbers<[1], [0], [0], [1], [0, 0, 1, 1], [], []>} : vector<16x64xf32>, vector<64x512xf32>, vector<16x512xf32> -> vector<16x512xf32>
    %9 = vector.broadcast %0 : vector<1x512xf32> to vector<16x512xf32>
    %10 = arith.addf %8, %9 : vector<16x512xf32>
    %cst_10 = arith.constant 0.000000e+00 : f32
    %11 = vector.broadcast %cst_10 : f32 to vector<16x512xf32>
    %12 = arith.maximumf %10, %11 : vector<16x512xf32>
    %c0_11 = arith.constant 0 : index
    %c0_12 = arith.constant 0 : index
    %13 = vector.load %arg3[%c0_11, %c0_12] : memref<512x384xf32, #tpu.memory_space<vmem>>, vector<512x384xf32>
    %cst_13 = arith.constant dense<0.000000e+00> : vector<16x384xf32>
    %14 = tpu.matmul %12, %13, %cst_13 {dimension_numbers = #tpu.dot_dimension_numbers<[1], [0], [0], [1], [0, 0, 1, 1], [], []>} : vector<16x512xf32>, vector<512x384xf32>, vector<16x384xf32> -> vector<16x384xf32>
    %15 = vector.broadcast %1 : vector<1x384xf32> to vector<16x384xf32>
    %16 = arith.addf %14, %15 : vector<16x384xf32>
    %cst_14 = arith.constant 0.000000e+00 : f32
    %17 = vector.broadcast %cst_14 : f32 to vector<16x384xf32>
    %18 = arith.maximumf %16, %17 : vector<16x384xf32>
    %c0_15 = arith.constant 0 : index
    %c0_16 = arith.constant 0 : index
    %19 = vector.load %arg4[%c0_15, %c0_16] : memref<384x128xf32, #tpu.memory_space<vmem>>, vector<384x128xf32>
    %cst_17 = arith.constant dense<0.000000e+00> : vector<16x128xf32>
    %20 = tpu.matmul %18, %19, %cst_17 {dimension_numbers = #tpu.dot_dimension_numbers<[1], [0], [0], [1], [0, 0, 1, 1], [], []>} : vector<16x384xf32>, vector<384x128xf32>, vector<16x128xf32> -> vector<16x128xf32>
    %21 = vector.broadcast %2 : vector<1x128xf32> to vector<16x128xf32>
    %22 = arith.addf %20, %21 : vector<16x128xf32>
    %cst_18 = arith.constant 0.000000e+00 : f32
    %23 = vector.broadcast %cst_18 : f32 to vector<16x128xf32>
    %24 = arith.maximumf %22, %23 : vector<16x128xf32>
    %c0_19 = arith.constant 0 : index
    %c0_20 = arith.constant 0 : index
    %25 = vector.load %arg5[%c0_19, %c0_20] : memref<128x128xf32, #tpu.memory_space<vmem>>, vector<128x128xf32>
    %cst_21 = arith.constant dense<0.000000e+00> : vector<16x128xf32>
    %26 = tpu.matmul %24, %25, %cst_21 {dimension_numbers = #tpu.dot_dimension_numbers<[1], [0], [0], [1], [0, 0, 1, 1], [], []>} : vector<16x128xf32>, vector<128x128xf32>, vector<16x128xf32> -> vector<16x128xf32>
    %27 = vector.broadcast %3 : vector<1x128xf32> to vector<16x128xf32>
    %28 = arith.addf %26, %27 : vector<16x128xf32>
    %cst_22 = arith.constant 0.000000e+00 : f32
    %29 = vector.broadcast %cst_22 : f32 to vector<16x128xf32>
    %30 = arith.maximumf %28, %29 : vector<16x128xf32>
    %c0_23 = arith.constant 0 : index
    %c0_24 = arith.constant 0 : index
    %31 = vector.load %arg6[%c0_23, %c0_24] : memref<128x128xf32, #tpu.memory_space<vmem>>, vector<128x128xf32>
    %cst_25 = arith.constant dense<0.000000e+00> : vector<16x128xf32>
    %32 = tpu.matmul %30, %31, %cst_25 {dimension_numbers = #tpu.dot_dimension_numbers<[1], [0], [0], [1], [0, 0, 1, 1], [], []>} : vector<16x128xf32>, vector<128x128xf32>, vector<16x128xf32> -> vector<16x128xf32>
    %33 = vector.broadcast %4 : vector<1x128xf32> to vector<16x128xf32>
    %34 = arith.addf %32, %33 : vector<16x128xf32>
    %cst_26 = arith.constant 0.000000e+00 : f32
    %35 = vector.broadcast %cst_26 : f32 to vector<16x128xf32>
    %36 = arith.maximumf %34, %35 : vector<16x128xf32>
    %c0_27 = arith.constant 0 : index
    %c0_28 = arith.constant 0 : index
    %37 = vector.load %arg7[%c0_27, %c0_28] : memref<128x128xf32, #tpu.memory_space<vmem>>, vector<128x128xf32>
    %cst_29 = arith.constant dense<0.000000e+00> : vector<16x128xf32>
    %38 = tpu.matmul %36, %37, %cst_29 {dimension_numbers = #tpu.dot_dimension_numbers<[1], [0], [0], [1], [0, 0, 1, 1], [], []>} : vector<16x128xf32>, vector<128x128xf32>, vector<16x128xf32> -> vector<16x128xf32>
    %39 = vector.broadcast %5 : vector<1x128xf32> to vector<16x128xf32>
    %40 = arith.addf %38, %39 : vector<16x128xf32>
    %cst_30 = arith.constant 0.000000e+00 : f32
    %41 = vector.broadcast %cst_30 : f32 to vector<16x128xf32>
    %42 = arith.maximumf %40, %41 : vector<16x128xf32>
    %c0_31 = arith.constant 0 : index
    %c0_32 = arith.constant 0 : index
    %43 = vector.load %arg9[%c0_31, %c0_32] : memref<16x128xf32, #tpu.memory_space<vmem>>, vector<16x128xf32>
    tpu.vector_store %arg9[%c0_31, %c0_32], %42 {strides = array<i32>} : memref<16x128xf32, #tpu.memory_space<vmem>>, vector<16x128xf32>,
    return
  }
  func.func @transform_0(%arg0: i32) -> (i32, i32) {
    %c0_i32 = arith.constant 0 : i32
    %c0_i32_0 = arith.constant 0 : i32
    return %arg0, %c0_i32 : i32, i32
  }
  func.func @transform_1(%arg0: i32) -> (i32, i32) {
    %c0_i32 = arith.constant 0 : i32
    %c0_i32_0 = arith.constant 0 : i32
    %c0_i32_1 = arith.constant 0 : i32
    return %c0_i32, %c0_i32_0 : i32, i32
  }
  func.func @transform_2(%arg0: i32) -> (i32, i32) {
    %c0_i32 = arith.constant 0 : i32
    %c0_i32_0 = arith.constant 0 : i32
    %c0_i32_1 = arith.constant 0 : i32
    return %c0_i32, %c0_i32_0 : i32, i32
  }
  func.func @transform_3(%arg0: i32) -> (i32, i32) {
    %c0_i32 = arith.constant 0 : i32
    %c0_i32_0 = arith.constant 0 : i32
    %c0_i32_1 = arith.constant 0 : i32
    return %c0_i32, %c0_i32_0 : i32, i32
  }
  func.func @transform_4(%arg0: i32) -> (i32, i32) {
    %c0_i32 = arith.constant 0 : i32
    %c0_i32_0 = arith.constant 0 : i32
    %c0_i32_1 = arith.constant 0 : i32
    return %c0_i32, %c0_i32_0 : i32, i32
  }
  func.func @transform_5(%arg0: i32) -> (i32, i32) {
    %c0_i32 = arith.constant 0 : i32
    %c0_i32_0 = arith.constant 0 : i32
    %c0_i32_1 = arith.constant 0 : i32
    return %c0_i32, %c0_i32_0 : i32, i32
  }
  func.func @transform_6(%arg0: i32) -> (i32, i32) {
    %c0_i32 = arith.constant 0 : i32
    %c0_i32_0 = arith.constant 0 : i32
    %c0_i32_1 = arith.constant 0 : i32
    return %c0_i32, %c0_i32_0 : i32, i32
  }
  func.func @transform_7(%arg0: i32) -> (i32, i32) {
    %c0_i32 = arith.constant 0 : i32
    %c0_i32_0 = arith.constant 0 : i32
    %c0_i32_1 = arith.constant 0 : i32
    return %c0_i32, %c0_i32_0 : i32, i32
  }
  func.func @transform_8(%arg0: i32) -> (i32, i32) {
    %c0_i32 = arith.constant 0 : i32
    %c0_i32_0 = arith.constant 0 : i32
    return %arg0, %c0_i32 : i32, i32
  }
}

module attributes {stable_mosaic.version = 11 : i64} {
  func.func @mlp_kernel(%arg0: i32, %arg1: memref<16x64xf32, #tpu.memory_space<vmem>>, %arg2: memref<64x512xf32, #tpu.memory_space<vmem>>, %arg3: memref<512x384xf32, #tpu.memory_space<vmem>>, %arg4: memref<384x128xf32, #tpu.memory_space<vmem>>, %arg5: memref<128x128xf32, #tpu.memory_space<vmem>>, %arg6: memref<128x128xf32, #tpu.memory_space<vmem>>, %arg7: memref<128x128xf32, #tpu.memory_space<vmem>>, %arg8: memref<1x1408xf32, #tpu.memory_space<vmem>>, %arg9: memref<16x128xf32, #tpu.memory_space<vmem>>) attributes {dimension_semantics = [#tpu.dimension_semantics<parallel>], iteration_bounds = array<i64: 2>, scalar_prefetch = 0 : i64, scratch_operands = 0 : i64, tpu.core_type = #tpu.core_type<tc>, window_params = [{transform_indices = @transform_0, window_bounds = array<i64: 16, 64>}, {pipeline_mode = #tpu.pipeline_mode<synchronous>, transform_indices = @transform_1, window_bounds = array<i64: 64, 512>}, {pipeline_mode = #tpu.pipeline_mode<synchronous>, transform_indices = @transform_2, window_bounds = array<i64: 512, 384>}, {pipeline_mode = #tpu.pipeline_mode<synchronous>, transform_indices = @transform_3, window_bounds = array<i64: 384, 128>}, {pipeline_mode = #tpu.pipeline_mode<synchronous>, transform_indices = @transform_4, window_bounds = array<i64: 128, 128>}, {pipeline_mode = #tpu.pipeline_mode<synchronous>, transform_indices = @transform_5, window_bounds = array<i64: 128, 128>}, {pipeline_mode = #tpu.pipeline_mode<synchronous>, transform_indices = @transform_6, window_bounds = array<i64: 128, 128>}, {pipeline_mode = #tpu.pipeline_mode<synchronous>, transform_indices = @transform_7, window_bounds = array<i64: 1, 1408>}, {transform_indices = @transform_8, window_bounds = array<i64: 16, 128>}]} {
    %c0 = arith.constant 0 : index
    %c0_0 = arith.constant 0 : index
    %0 = vector.load %arg8[%c0, %c0_0] : memref<1x1408xf32, #tpu.memory_space<vmem>>, vector<1x512xf32>
    %c0_1 = arith.constant 0 : index
    %c512 = arith.constant 512 : index
    %1 = vector.load %arg8[%c0_1, %c512] : memref<1x1408xf32, #tpu.memory_space<vmem>>, vector<1x384xf32>
    %c0_2 = arith.constant 0 : index
    %c896 = arith.constant 896 : index
    %2 = vector.load %arg8[%c0_2, %c896] : memref<1x1408xf32, #tpu.memory_space<vmem>>, vector<1x128xf32>
    %c0_3 = arith.constant 0 : index
    %c1024 = arith.constant 1024 : index
    %3 = vector.load %arg8[%c0_3, %c1024] : memref<1x1408xf32, #tpu.memory_space<vmem>>, vector<1x128xf32>
    %c0_4 = arith.constant 0 : index
    %c1152 = arith.constant 1152 : index
    %4 = vector.load %arg8[%c0_4, %c1152] : memref<1x1408xf32, #tpu.memory_space<vmem>>, vector<1x128xf32>
    %c0_5 = arith.constant 0 : index
    %c1280 = arith.constant 1280 : index
    %5 = vector.load %arg8[%c0_5, %c1280] : memref<1x1408xf32, #tpu.memory_space<vmem>>, vector<1x128xf32>
    %c0_6 = arith.constant 0 : index
    %c0_7 = arith.constant 0 : index
    %6 = vector.load %arg1[%c0_6, %c0_7] : memref<16x64xf32, #tpu.memory_space<vmem>>, vector<16x64xf32>
    %c0_8 = arith.constant 0 : index
    %c0_9 = arith.constant 0 : index
    %7 = vector.load %arg2[%c0_8, %c0_9] : memref<64x512xf32, #tpu.memory_space<vmem>>, vector<64x512xf32>
    %cst = arith.constant dense<0.000000e+00> : vector<16x512xf32>
    %8 = tpu.matmul %6, %7, %cst {dimension_numbers = #tpu.dot_dimension_numbers<[1], [0], [0], [1], [0, 0, 1, 1], [], []>} : vector<16x64xf32>, vector<64x512xf32>, vector<16x512xf32> -> vector<16x512xf32>
    %9 = vector.broadcast %0 : vector<1x512xf32> to vector<16x512xf32>
    %10 = arith.addf %8, %9 : vector<16x512xf32>
    %cst_10 = arith.constant 0.000000e+00 : f32
    %11 = vector.broadcast %cst_10 : f32 to vector<16x512xf32>
    %12 = arith.maximumf %10, %11 : vector<16x512xf32>
    %c0_11 = arith.constant 0 : index
    %c0_12 = arith.constant 0 : index
    %13 = vector.load %arg3[%c0_11, %c0_12] : memref<512x384xf32, #tpu.memory_space<vmem>>, vector<512x384xf32>
    %cst_13 = arith.constant dense<0.000000e+00> : vector<16x384xf32>
    %14 = tpu.matmul %12, %13, %cst_13 {dimension_numbers = #tpu.dot_dimension_numbers<[1], [0], [0], [1], [0, 0, 1, 1], [], []>} : vector<16x512xf32>, vector<512x384xf32>, vector<16x384xf32> -> vector<16x384xf32>
    %15 = vector.broadcast %1 : vector<1x384xf32> to vector<16x384xf32>
    %16 = arith.addf %14, %15 : vector<16x384xf32>
    %cst_14 = arith.constant 0.000000e+00 : f32
    %17 = vector.broadcast %cst_14 : f32 to vector<16x384xf32>
    %18 = arith.maximumf %16, %17 : vector<16x384xf32>
    %c0_15 = arith.constant 0 : index
    %c0_16 = arith.constant 0 : index
    %19 = vector.load %arg4[%c0_15, %c0_16] : memref<384x128xf32, #tpu.memory_space<vmem>>, vector<384x128xf32>
    %cst_17 = arith.constant dense<0.000000e+00> : vector<16x128xf32>
    %20 = tpu.matmul %18, %19, %cst_17 {dimension_numbers = #tpu.dot_dimension_numbers<[1], [0], [0], [1], [0, 0, 1, 1], [], []>} : vector<16x384xf32>, vector<384x128xf32>, vector<16x128xf32> -> vector<16x128xf32>
    %21 = vector.broadcast %2 : vector<1x128xf32> to vector<16x128xf32>
    %22 = arith.addf %20, %21 : vector<16x128xf32>
    %cst_18 = arith.constant 0.000000e+00 : f32
    %23 = vector.broadcast %cst_18 : f32 to vector<16x128xf32>
    %24 = arith.maximumf %22, %23 : vector<16x128xf32>
    %c0_19 = arith.constant 0 : index
    %c0_20 = arith.constant 0 : index
    %25 = vector.load %arg5[%c0_19, %c0_20] : memref<128x128xf32, #tpu.memory_space<vmem>>, vector<128x128xf32>
    %cst_21 = arith.constant dense<0.000000e+00> : vector<16x128xf32>
    %26 = tpu.matmul %24, %25, %cst_21 {dimension_numbers = #tpu.dot_dimension_numbers<[1], [0], [0], [1], [0, 0, 1, 1], [], []>} : vector<16x128xf32>, vector<128x128xf32>, vector<16x128xf32> -> vector<16x128xf32>
    %27 = vector.broadcast %3 : vector<1x128xf32> to vector<16x128xf32>
    %28 = arith.addf %26, %27 : vector<16x128xf32>
    %cst_22 = arith.constant 0.000000e+00 : f32
    %29 = vector.broadcast %cst_22 : f32 to vector<16x128xf32>
    %30 = arith.maximumf %28, %29 : vector<16x128xf32>
    %c0_23 = arith.constant 0 : index
    %c0_24 = arith.constant 0 : index
    %31 = vector.load %arg6[%c0_23, %c0_24] : memref<128x128xf32, #tpu.memory_space<vmem>>, vector<128x128xf32>
    %cst_25 = arith.constant dense<0.000000e+00> : vector<16x128xf32>
    %32 = tpu.matmul %30, %31, %cst_25 {dimension_numbers = #tpu.dot_dimension_numbers<[1], [0], [0], [1], [0, 0, 1, 1], [], []>} : vector<16x128xf32>, vector<128x128xf32>, vector<16x128xf32> -> vector<16x128xf32>
    %33 = vector.broadcast %4 : vector<1x128xf32> to vector<16x128xf32>
    %34 = arith.addf %32, %33 : vector<16x128xf32>
    %cst_26 = arith.constant 0.000000e+00 : f32
    %35 = vector.broadcast %cst_26 : f32 to vector<16x128xf32>
    %36 = arith.maximumf %34, %35 : vector<16x128xf32>
    %c0_27 = arith.constant 0 : index
    %c0_28 = arith.constant 0 : index
    %37 = vector.load %arg7[%c0_27, %c0_28] : memref<128x128xf32, #tpu.memory_space<vmem>>, vector<128x128xf32>
    %cst_29 = arith.constant dense<0.000000e+00> : vector<16x128xf32>
    %38 = tpu.matmul %36, %37, %cst_29 {dimension_numbers = #tpu.dot_dimension_numbers<[1], [0], [0], [1], [0, 0, 1, 1], [], []>} : vector<16x128xf32>, vector<128x128xf32>, vector<16x128xf32> -> vector<16x128xf32>
    %39 = vector.broadcast %5 : vector<1x128xf32> to vector<16x128xf32>
    %40 = arith.addf %38, %39 : vector<16x128xf32>
    %cst_30 = arith.constant 0.000000e+00 : f32
    %41 = vector.broadcast %cst_30 : f32 to vector<16x128xf32>
    %42 = arith.maximumf %40, %41 : vector<16x128xf32>
    %c0_31 = arith.constant 0 : index
    %c0_32 = arith.constant 0 : index
    %43 = vector.load %arg9[%c0_31, %c0_32] : memref<16x128xf32, #tpu.memory_space<vmem>>, vector<16x128xf32>
    tpu.vector_store %arg9[%c0_31, %c0_32], %42 {strides = array<i32>} : memref<16x128xf32, #tpu.memory_space<vmem>>, vector<16x128xf32>,
    return
  }
  func.func @transform_0(%arg0: i32) -> (i32, i32) {
    %c0_i32 = arith.constant 0 : i32
    %c0_i32_0 = arith.constant 0 : i32
    return %arg0, %c0_i32 : i32, i32
  }
  func.func @transform_1(%arg0: i32) -> (i32, i32) {
    %c0_i32 = arith.constant 0 : i32
    %c0_i32_0 = arith.constant 0 : i32
    %c0_i32_1 = arith.constant 0 : i32
    return %c0_i32, %c0_i32_0 : i32, i32
  }
  func.func @transform_2(%arg0: i32) -> (i32, i32) {
    %c0_i32 = arith.constant 0 : i32
    %c0_i32_0 = arith.constant 0 : i32
    %c0_i32_1 = arith.constant 0 : i32
    return %c0_i32, %c0_i32_0 : i32, i32
  }
  func.func @transform_3(%arg0: i32) -> (i32, i32) {
    %c0_i32 = arith.constant 0 : i32
    %c0_i32_0 = arith.constant 0 : i32
    %c0_i32_1 = arith.constant 0 : i32
    return %c0_i32, %c0_i32_0 : i32, i32
  }
  func.func @transform_4(%arg0: i32) -> (i32, i32) {
    %c0_i32 = arith.constant 0 : i32
    %c0_i32_0 = arith.constant 0 : i32
    %c0_i32_1 = arith.constant 0 : i32
    return %c0_i32, %c0_i32_0 : i32, i32
  }
  func.func @transform_5(%arg0: i32) -> (i32, i32) {
    %c0_i32 = arith.constant 0 : i32
    %c0_i32_0 = arith.constant 0 : i32
    %c0_i32_1 = arith.constant 0 : i32
    return %c0_i32, %c0_i32_0 : i32, i32
  }
  func.func @transform_6(%arg0: i32) -> (i32, i32) {
    %c0_i32 = arith.constant 0 : i32
    %c0_i32_0 = arith.constant 0 : i32
    %c0_i32_1 = arith.constant 0 : i32
    return %c0_i32, %c0_i32_0 : i32, i32
  }
  func.func @transform_7(%arg0: i32) -> (i32, i32) {
    %c0_i32 = arith.constant 0 : i32
    %c0_i32_0 = arith.constant 0 : i32
    %c0_i32_1 = arith.constant 0 : i32
    return %c0_i32, %c0_i32_0 : i32, i32
  }
  func.func @transform_8(%arg0: i32) -> (i32, i32) {
    %c0_i32 = arith.constant 0 : i32
    %c0_i32_0 = arith.constant 0 : i32
    return %arg0, %c0_i32 : i32, i32
  }
}

</mosaic_0001>

<bundles_post_ra>
// kernel: tpu_custom_call.1
= control target key start
LH: loop header
LB: loop body
LE: loop exit
PB: predicated region body
PF: predicated region fallthrough
CT: control target
= control target key end

     0   :  { %s2969_s0 = inlined_call_operand.hbm [shape: f32[32,64], index: 0, kind: input, shape index: {}]   ;;  %s2970_s1 = inlined_call_operand.hbm [shape: f32[64,512], index: 1, kind: input, shape index: {}]   ;;  %s2971_s2 = inlined_call_operand.hbm [shape: f32[512,384], index: 2, kind: input, shape index: {}]   ;;  %s2972_s3 = inlined_call_operand.hbm [shape: f32[384,128], index: 3, kind: input, shape index: {}]   ;;  %s2973_s4 = inlined_call_operand.hbm [shape: f32[128,128], index: 4, kind: input, shape index: {}]   ;;  %s2974_s5 = inlined_call_operand.hbm [shape: f32[128,128], index: 5, kind: input, shape index: {}]   ;;  %s2975_s6 = inlined_call_operand.hbm [shape: f32[128,128], index: 6, kind: input, shape index: {}]   ;;  %s2976_s7 = inlined_call_operand.vmem [shape: f32[1,1408], index: 7, kind: input, shape index: {}]   ;;  %s2977_s8 = inlined_call_operand.hbm [shape: f32[32,128], index: 8, kind: output, shape index: {}]  }
   0x1   :  { %2984 = sst [smem:[#allocation20_spill]] %s2970_s1 }
   0x2   :  { %2985 = sst [smem:[#allocation21_spill]] %s2971_s2 }
   0x3   :  { %13 = vsyncpa [#allocation3], 0 }
   0x4   :  { %15 = vsyncpa [#allocation3 + $0x1], 0 }
   0x5   :  { %16 = vsyncpa [#allocation6], 0 }
   0x6   :  { %17 = vsyncpa [#allocation9], 0 }
   0x7   :  { %18 = vsyncpa [#allocation12], 0 }
   0x8   :  { %19 = vsyncpa [#allocation4], 0 }
   0x9   :  { %21 = vsyncpa [#allocation4 + $0x1], 0  ;;  %s2612_s27 = smov 0   ;;  %s2614_s28 = smov 0  }
   0xa   :  { %s2616_s29 = smov 0   ;;  %s2618_s30 = smov 0  }
   0xb LB: > { %s2550_s9 = smov [#allocation5]   ;;  %s2633_s11 = sadd.s32 4294967295, %s2548_s30   ;;  %s2548_s30 = sphi %s2618_s30, %s3012_s30   ;;  %s2544_s29 = sphi %s2616_s29, %s3011_s29   ;;  %s2540_s28 = sphi %s2614_s28, %s3010_s28   ;;  %s2536_s27 = sphi %s2612_s27, %s3009_s27  }
   0xc   : > { %s243_s10 = sshll.u32 %s2550_s9, 4  ;;  %p1811_p0 = scmp.ge.s32.totalorder %s2548_s30, 1  ;;  %s244_s10 = int_to_ptr.vmem [resolvable:$true] %s243_s10 }
   0xd   : > { %p2980_p1 = scmp.eq.s32.totalorder %s2633_s11, 0  ;;  %p231_p2 = scmp.lt.s32.totalorder %s2548_s30, 3 }
   0xe   : > { %s2551_s13 = smov [#allocation8]   ;;  %s2552_s16 = smov [#allocation11]  }
   0xf   : > { %p2638_p3 = pnand %p1811_p0, %p231_p2  ;;  %s269_s14 = sshll.u32 %s2551_s13, 4  ;;  %s2651_s14 = int_to_ptr.vmem [resolvable:$true] %s269_s14 }
  0x10   : > { %s2653_s17 = sshll.u32 %s2552_s16, 4  ;;  %s2299_s19 = scalar_lea.vmem %s244_s10, 4096  ;;  %s296_s17 = int_to_ptr.vmem [resolvable:$true] %s2653_s17 }
  0x11   : > { %s2986_s12 = scalar_select %p2638_p3, 1, 0 }
  0x12   : > { %p2200_p5 = pneg %p2638_p3  ;;  %p2300_p8 = scmp.ne.s32.totalorder %s244_s10, %s2299_s19 }
  0x13   : > { %p2307_p11 = scmp.lt.s32.totalorder %s244_s10, %s244_s10  ;;  %p2308_p12 = scmp.lt.s32.totalorder %s2299_s19, %s2299_s19 }
  0x14   : > { %p2647_p6 = pnand %p2200_p5, %p2980_p1 }
  0x15   : > { %p2309_p13 = por %p2308_p12, %p2307_p11 }
  0x16   : > { %p2657_p7 = pneg %p2647_p6 }
  0x18   : > { %p2302_p9 = pnand %p2300_p8, %p2657_p7 }
  0x1a   : > { %p2303_p10 = pneg %p2302_p9 }
  0x1c   : > { %p2310_p0 = pnand %p2309_p13, %p2303_p10 }
  0x1e   : > { %2313 = shalt.err (!%p2310_p0)
}
  0x1f   : > { %s2553_s20 = smov 512   ;;  %s2554_s21 = smov 32  }
  0x20   : > { %s2989_s1 = sld [smem:[#allocation20_spill]]  ;;  %s2325_s24 = scalar_lea.vmem %s2651_s14, 6144 }
  0x21   : > { %p2326_p2 = scmp.ne.s32.totalorder %s2651_s14, %s2325_s24  ;;  %p2333_p9 = scmp.lt.s32.totalorder %s2651_s14, %s2651_s14 }
  0x22   : > { %p2334_p10 = scmp.lt.s32.totalorder %s2325_s24, %s2325_s24 }
  0x23   : > { %p2328_p5 = pnand %p2326_p2, %p2657_p7 }
  0x24   : > { %p2335_p11 = por %p2334_p10, %p2333_p9 }
  0x25   : > { %p2329_p8 = pneg %p2328_p5 }
  0x26   : > { %2203 = dma.hbm_to_vmem [thread:$0]  (!%p2647_p6), %s2989_s1, 4096, %s244_s10, [#allocation6], %s2553_s20, %s2553_s20, %s2554_s21  }
  0x27   : > { %p2336_p12 = pnand %p2335_p11, %p2329_p8 }
  0x29   : > { %2339 = shalt.err (!%p2336_p12)
}
  0x2a   : > { %s2978_s25 = smov 128   ;;  %s2979_s26 = smov 8  }
  0x2b   : > { %2209 = dma.hbm_to_vmem [thread:$0]  (!%p2647_p6), %s2972_s3, 6144, %s2651_s14, [#allocation9], %s2978_s25, %s2978_s25, %s2979_s26  }
  0x2c   : > { %s2351_s13 = scalar_lea.vmem %s296_s17, 2048  ;;  %p2359_p5 = scmp.lt.s32.totalorder %s296_s17, %s296_s17 }
  0x2d   : > { %p2352_p13 = scmp.ne.s32.totalorder %s296_s17, %s2351_s13  ;;  %p2360_p8 = scmp.lt.s32.totalorder %s2351_s13, %s2351_s13 }
  0x2f   : > { %p2354_p0 = pnand %p2352_p13, %p2657_p7  ;;  %p2361_p9 = por %p2360_p8, %p2359_p5 }
  0x31   : > { %p2355_p2 = pneg %p2354_p0 }
  0x33   : > { %p2362_p10 = pnand %p2361_p9, %p2355_p2 }
  0x35   : > { %2365 = shalt.err (!%p2362_p10)
}
  0x36   : > { %2215 = dma.hbm_to_vmem [thread:$0]  (!%p2647_p6), %s2974_s5, 2048, %s296_s17, [#allocation12], %s2978_s25, %s2978_s25, %s2979_s26  }
  0x37   : > { %s2557_s14 = smov [#allocation7]  }
  0x38   : > { %s256_s20 = sshll.u32 %s2557_s14, 4  ;;  %s257_s20 = int_to_ptr.vmem [resolvable:$true] %s256_s20 }
  0x39   : > { %s2377_s21 = scalar_lea.vmem %s257_s20, 24576  ;;  %p2385_p0 = scmp.lt.s32.totalorder %s257_s20, %s257_s20 }
  0x3a   : > { %p2378_p11 = scmp.ne.s32.totalorder %s257_s20, %s2377_s21  ;;  %p2386_p2 = scmp.lt.s32.totalorder %s2377_s21, %s2377_s21 }
  0x3c   : > { %p2380_p12 = pnand %p2378_p11, %p2657_p7  ;;  %p2387_p5 = por %p2386_p2, %p2385_p0 }
  0x3e   : > { %p2381_p13 = pneg %p2380_p12 }
  0x40   : > { %p2388_p8 = pnand %p2387_p5, %p2381_p13 }
  0x42   : > { %2391 = shalt.err (!%p2388_p8)
}
  0x43   : > { %s2558_s22 = smov 384   ;;  %s2559_s23 = smov 24  }
  0x44   : > { %s2990_s2 = sld [smem:[#allocation21_spill]]  ;;  %s2560_s9 = smov [#allocation10]  }
  0x45   : > { %s282_s10 = sshll.u32 %s2560_s9, 4  ;;  %s2561_s13 = smov [#allocation13]   ;;  %s283_s10 = int_to_ptr.vmem [resolvable:$true] %s282_s10 }
  0x46   : > { %s308_s16 = sshll.u32 %s2561_s13, 4  ;;  %s2403_s19 = scalar_lea.vmem %s283_s10, 2048  ;;  %s309_s16 = int_to_ptr.vmem [resolvable:$true] %s308_s16 }
  0x47   : > { %p2404_p9 = scmp.ne.s32.totalorder %s283_s10, %s2403_s19  ;;  %p2411_p12 = scmp.lt.s32.totalorder %s283_s10, %s283_s10 }
  0x48   : > { %p2412_p13 = scmp.lt.s32.totalorder %s2403_s19, %s2403_s19 }
  0x49   : > { %p2406_p10 = pnand %p2404_p9, %p2657_p7 }
  0x4a   : > { %2206 = dma.hbm_to_vmem [thread:$0]  (!%p2647_p6), %s2990_s2, 24576, %s257_s20, [#allocation6], %s2558_s22, %s2558_s22, %s2559_s23  }
  0x4b   : > { %p2407_p11 = pneg %p2406_p10  ;;  %p2413_p0 = por %p2412_p13, %p2411_p12 }
  0x4d   : > { %p2414_p2 = pnand %p2413_p0, %p2407_p11 }
  0x4f   : > { %2417 = shalt.err (!%p2414_p2)
}
  0x50   : > { %2212 = dma.hbm_to_vmem [thread:$0]  (!%p2647_p6), %s2973_s4, 2048, %s283_s10, [#allocation9], %s2978_s25, %s2978_s25, %s2979_s26  }
  0x51   : > { %s2429_s21 = scalar_lea.vmem %s309_s16, 2048  ;;  %p2437_p10 = scmp.lt.s32.totalorder %s309_s16, %s309_s16 }
  0x52   : > { %p2430_p5 = scmp.ne.s32.totalorder %s309_s16, %s2429_s21  ;;  %p2438_p4 = scmp.lt.s32.totalorder %s2429_s21, %s2429_s21 }
  0x54   : > { %p2432_p8 = pnand %p2430_p5, %p2657_p7  ;;  %p2439_p12 = por %p2438_p4, %p2437_p10 }
  0x56   : > { %p2433_p9 = pneg %p2432_p8 }
  0x58   : > { %p2440_p11 = pnand %p2439_p12, %p2433_p9 }
  0x5a   : > { %2443 = shalt.err (!%p2440_p11)
}
  0x5b   : > { %2218 = dma.hbm_to_vmem [thread:$0]  (!%p2647_p6), %s2975_s6, 2048, %s309_s16, [#allocation12], %s2978_s25, %s2978_s25, %s2979_s26  }
  0x5c   : > { %s1810_s15 = sadd.s32 4294967294, %s2548_s30   ;;  %s2723_s18 = sadd.s32 1, %s2548_s30  }
  0x5d   : > { %s31_s24 = ssub.s32 %s2548_s30, %s2723_s18  ;;  %s34_s17 = sadd.s32 1, %s2544_s29 }
  0x5e   : > { %p32_p4 = scmp.eq.s32.totalorder %s31_s24, 0  ;;  %p41_p7 = scmp.ne.s32.totalorder %s2544_s29, %s2540_s28 }
  0x5f   : > { %p42_p13 = scmp.eq.s32.totalorder %s2548_s30, 0  ;;  %p47_p0 = scmp.ne.s32.totalorder %s2540_s28, %s2536_s27 }
  0x60   : > { %s2734_s9 = scalar_select %p32_p4, %s2544_s29, %s34_s17  }
  0x61   : > { %p2736_p2 = por %p42_p13, %p41_p7  ;;  %p2742_p6 = por %p2980_p1, %p47_p0 }
  0x62   : > { %p218_p5 = scmp.eq.s32.totalorder %s2633_s11, 1  ;;  %p224_p8 = scmp.eq.s32.totalorder %s1810_s15, 1 }
  0x63   : > { %s2992_s13 = scalar_select %p2742_p6, 1, 0 }
  0x64   : > { %p2233_p9 = scmp.lt.s32.totalorder %s2548_s30, 2  ;;  %s325_s16 = sand.u32 1, %s2544_s29  }
  0x65   : > { %p2749_p10 = por %p218_p5, %p41_p7  ;;  %p2753_p12 = por %p224_p8, %p47_p0 }
  0x66   : > { %s1819_s20 = sshll.u32 %s325_s16, 4  ;;  %s1844_s21 = sshll.u32 %s2548_s30, 8 }
  0x67   : > { %s2993_s19 = scalar_select %p2749_p10, 1, 0 }
  0x68   : > { %s2994_s14 = scalar_select %p2753_p12, 1, 0 }
  0x69   : > { %s2761_s24 = scalar_lea.hbm %s2969_s0, %s1844_s21  ;;  %s329_s15 = scalar_lea.vmem [#allocation2], %s1819_s20 }
  0x6a   : > { %s336_s17 = sshll.u32 %s329_s15, 4  ;;  %p2767_p11 = pnand %p2233_p9, %p2736_p2  ;;  %s2763_s17 = int_to_ptr.vmem [resolvable:$true] %s336_s17 }
  0x6b   : > { %s2771_s26 = scalar_lea.sflag [#allocation3], %s325_s16  ;;  %s2444_s1 = scalar_lea.hbm %s2761_s24, 256 }
  0x6c   : > { %p2445_p4 = scmp.ne.s32.totalorder %s2761_s24, %s2444_s1  ;;  %p2446_p7 = pneg %p2767_p11 }
  0x6d   : > { %s2449_s20 = scalar_lea.hbm %s2969_s0, 512  ;;  %p2450_p2 = scmp.lt.s32.totalorder %s2761_s24, %s2969_s0 }
  0x6e   : > { %p2447_p13 = pnand %p2446_p7, %p2445_p4  ;;  %p2451_p5 = scmp.lt.s32.totalorder %s2449_s20, %s2444_s1 }
  0x70   : > { %p2448_p0 = pneg %p2447_p13  ;;  %p2452_p8 = por %p2451_p5, %p2450_p2 }
  0x72   : > { %p2453_p9 = pnand %p2452_p8, %p2448_p0 }
  0x74   : > { %2456 = shalt.err (!%p2453_p9)
}
  0x75   : > { %s2457_s10 = scalar_lea.vmem %s2763_s17, 256  ;;  %s2562_s16 = smov [#allocation2]  }
  0x76   : > { %p2458_p1 = scmp.ne.s32.totalorder %s2763_s17, %s2457_s10  ;;  %s2462_s2 = sshll.u32 %s2562_s16, 4  ;;  %s2463_s2 = int_to_ptr.vmem [resolvable:$false] %s2462_s2 }
  0x77   : > { %s2464_s21 = scalar_lea.vmem %s2463_s2, 512  ;;  %p2465_p13 = scmp.lt.s32.totalorder %s2763_s17, %s2463_s2 }
  0x78   : > { %p2460_p12 = pnand %p2458_p1, %p2446_p7  ;;  %p2466_p10 = scmp.lt.s32.totalorder %s2464_s21, %s2457_s10 }
  0x7a   : > { %p2461_p4 = pneg %p2460_p12  ;;  %p2467_p6 = por %p2466_p10, %p2465_p13 }
  0x7c   : > { %p2468_p3 = pnand %p2467_p6, %p2461_p4 }
  0x7e   : > { %2471 = shalt.err (!%p2468_p3)
}
  0x7f   : > { %s2996_s1 = smov 8   ;;  %s2997_s22 = smov 128  }
  0x80   : > { %2222 = dma.hbm_to_vmem [thread:$0]  (!%p2767_p11), %s2761_s24, 256, %s2763_s17, %s2771_s26, %s2997_s22, %s2997_s22, %s2996_s1  }
  0x81   : > { %p2998_p1 = scmp.ne.s32.totalorder %s2986_s12, 0 }
  0x82   : > { %s2798_s20 = sand.u32 (!%p2998_p1), 1, %s2540_s28   ;;  %p2999_p3 = scmp.ne.s32.totalorder (!%p2998_p1), %s2992_s13, 0 }
  0x83   : > { %348 = sbr.rel (%p2998_p1) target bundleno = 1431 (0x597), region = 52  ;;  %s1823_s2 = sshll.u32 (!%p2998_p1), %s2798_s20, 4 }
  0x84   : > { %s351_s23 = scalar_lea.sflag (!%p2998_p1), [#allocation3], %s2798_s20  ;;  %s2804_s25 = scalar_lea.vmem (!%p2998_p1), [#allocation2], %s1823_s2 }
  0x88   : > { %2515 = dma.done.wait (%p2999_p3), %s351_s23, 256  }
  0x89   : > { %2517 = vsyncadd (%p2999_p3), %s351_s23, 4294967040  ;;  %p3000_p6 = scmp.eq.s32.totalorder %s2633_s11, 0 }
  0x8b   : > { %2519 = dma.done.wait (%p3000_p6), [#allocation6], 28672   ;;  %p3001_p10 = pmov %p3000_p6 }
  0x8c   : > { %p3002_p12 = pmov %p3000_p6 }
  0x8d   : > { %2521 = vsyncadd (%p3001_p10), [#allocation6], 4294938624 }
  0x8e   : > { %2523 = dma.done.wait (%p3002_p12), [#allocation9], 8192   ;;  %p3003_p11 = pmov %p3000_p6 }
  0x8f   : > { %p3004_p7 = pmov %p3000_p6 }
  0x90   : > { %2525 = vsyncadd (%p3003_p11), [#allocation9], 4294959104 }
  0x91   : > { %2527 = dma.done.wait (%p3004_p7), [#allocation12], 4096   ;;  %p3005_p0 = pmov %p3000_p6 }
  0x92   : > { %v2563_v0 = vmov 0.0   ;;  %v450_v1 = vld [vmem:[#allocation5 + $0xe8] sm:$0xff]  ;;  %v449_v2 = vld [vmem:[#allocation5 + $0xe0] sm:$0xff]  ;;  %v689_v15 = vld [vmem:[#allocation7 + $0x170] sm:$0xff]  ;;  %vm474_vm0 = vcmask 523264   ;;  %s1845_s26 = sshll.u32 %s2633_s11, 8 }
  0x93   : > { %2529 = vsyncadd (%p3005_p0), [#allocation12], 4294963200  ;;  %545 = vmatprep.mubr.f32.mxu1 %v2563_v0  ;;  %v446_v3 = vld [vmem:[#allocation5 + $0xc8] sm:$0xff]  ;;  %497 = vmatprep.subr.mxu1 %v450_v1  ;;  %v445_v4 = vld [vmem:[#allocation5 + $0xc0] sm:$0xff]  ;;  %s2926_s17 = scalar_lea.hbm %s2977_s8, %s1845_s26  ;;  %p3006_p5 = scmp.ne.s32.totalorder %s2993_s19, 0 }
  0x94   : > { %498 = vmatpush1.msra.mxu1 %v449_v2  ;;  %v442_v5 = vld [vmem:[#allocation5 + $0xa8] sm:$0xff]  ;;  %v441_v6 = vld [vmem:[#allocation5 + $0xa0] sm:$0xff]  ;;  %851 = vmatprep.subr.mxu0 %v689_v15  ;;  %v686_v18 = vld [vmem:[#allocation7 + $0x158] sm:$0xff]  ;;  %s2564_s11 = smov [#allocation14]  }
  0x95   : > { %499 = vmatprep.subr.mxu1 %v446_v3  ;;  %v438_v7 = vld [vmem:[#allocation5 + $0x88] sm:$0xff]  ;;  %v437_v8 = vld [vmem:[#allocation5 + $0x80] sm:$0xff]  ;;  %v685_v19 = vld [vmem:[#allocation7 + $0x150] sm:$0xff]  ;;  %s2476_s10 = sshll.u32 %s2564_s11, 4  ;;  %s2477_s10 = int_to_ptr.vmem [resolvable:$false] %s2476_s10 }
  0x96   : > { %500 = vmatpush1.msra.mxu1 %v445_v4  ;;  %v434_v9 = vld [vmem:[#allocation5 + $0x68] sm:$0xff]  ;;  %v433_v10 = vld [vmem:[#allocation5 + $0x60] sm:$0xff]  ;;  %v452_v23 = vld [vmem:[#allocation5 + $0xf8] sm:$0xff]  ;;  %s2478_s16 = scalar_lea.vmem %s2477_s10, 512 }
  0x97   : > { %501 = vmatprep.subr.mxu1 %v442_v5  ;;  %v430_v11 = vld [vmem:[#allocation5 + $0x48] sm:$0xff]  ;;  %v429_v12 = vld [vmem:[#allocation5 + $0x40] sm:$0xff]  ;;  %v451_v24 = vld [vmem:[#allocation5 + $0xf0] sm:$0xff] }
  0x98   : > { %502 = vmatpush1.msra.mxu1 %v441_v6  ;;  %v426_v13 = vld [vmem:[#allocation5 + $0x28] sm:$0xff]  ;;  %v425_v14 = vld [vmem:[#allocation5 + $0x20] sm:$0xff]  ;;  %v448_v25 = vld [vmem:[#allocation5 + $0xd8] sm:$0xff] }
  0x99   : > { %503 = vmatprep.subr.mxu1 %v438_v7  ;;  %v688_v16 = vld [vmem:[#allocation7 + $0x168] sm:$0xff]  ;;  %v421_v20 = vld [vmem:[#allocation5] sm:$0xff]  ;;  %v682_v26 = vld [vmem:[#allocation7 + $0x138] sm:$0xff] }
  0x9a   : > { %504 = vmatpush1.msra.mxu1 %v437_v8  ;;  %v422_v17 = vld [vmem:[#allocation5 + $0x8] sm:$0xff]  ;;  %852 = vmatpush1.msra.mxu0 %v688_v16  ;;  %v683_v21 = vld [vmem:[#allocation7 + $0x140] sm:$0xff]  ;;  %v447_v27 = vld [vmem:[#allocation5 + $0xd0] sm:$0xff] }
  0x9b   : > { %505 = vmatprep.subr.mxu1 %v434_v9  ;;  %v2824_v22 = vld [vmem:[%s2804_s25] sm:$0xff]  ;;  %853 = vmatprep.subr.mxu0 %v686_v18  ;;  %v680_v28 = vld [vmem:[#allocation7 + $0x128] sm:$0xff]  ;;  %v444_v30 = vld [vmem:[#allocation5 + $0xb8] sm:$0xff] }
  0x9c   : > { %506 = vmatpush1.msra.mxu1 %v433_v10  ;;  %854 = vmatpush1.msra.mxu0 %v685_v19  ;;  %v2830_v29 = vld [vmem:[%s2804_s25 + $0x8] sm:$0xff]  ;;  %v443_v31 = vld [vmem:[#allocation5 + $0xb0] sm:$0xff]  ;;  %v679_v33 = vld [vmem:[#allocation7 + $0x120] sm:$0xff]  ;;  %s410_s25 = scalar_lea.vmem [#allocation14], %s1823_s2  ;;  %s1667_s2 = scalar_lea.sflag [#allocation4], %s2798_s20 }
  0x9d   : > { %507 = vmatprep.subr.mxu1 %v430_v11  ;;  %855 = vmatprep.subr.mxu0 %v683_v21  ;;  %v440_v32 = vld [vmem:[#allocation5 + $0x98] sm:$0xff]  ;;  %v439_v34 = vld [vmem:[#allocation5 + $0x90] sm:$0xff]  ;;  %v676_v37 = vld [vmem:[#allocation7 + $0x108] sm:$0xff]  ;;  %s1680_s12 = sshll.u32 %s410_s25, 4  ;;  %s2921_s12 = int_to_ptr.vmem [resolvable:$true] %s1680_s12 }
  0x9e   : > { %508 = vmatpush1.msra.mxu1 %v429_v12  ;;  %856 = vmatpush1.msra.mxu0 %v682_v26  ;;  %v677_v35 = vld [vmem:[#allocation7 + $0x110] sm:$0xff]  ;;  %v436_v36 = vld [vmem:[#allocation5 + $0x78] sm:$0xff]  ;;  %v671_v43 = vld [vmem:[#allocation7 + $0xe0] sm:$0xff]  ;;  %s2472_s15 = scalar_lea.vmem %s2921_s12, 256  ;;  %p2479_p4 = scmp.lt.s32.totalorder %s2921_s12, %s2477_s10 }
  0x9f   : > { %509 = vmatprep.subr.mxu1 %v426_v13  ;;  %857 = vmatprep.subr.mxu0 %v680_v28  ;;  %v435_v38 = vld [vmem:[#allocation5 + $0x70] sm:$0xff]  ;;  %v674_v39 = vld [vmem:[#allocation7 + $0xf8] sm:$0xff]  ;;  %v668_v47 = vld [vmem:[#allocation7 + $0xc8] sm:$0xff]  ;;  %p2473_p2 = scmp.ne.s32.totalorder %s2921_s12, %s2472_s15  ;;  %p2480_p13 = scmp.lt.s32.totalorder %s2478_s16, %s2472_s15 }
  0xa0   : > { %510 = vmatpush1.msra.mxu1 %v425_v14  ;;  %858 = vmatpush1.msra.mxu0 %v679_v33  ;;  %v432_v40 = vld [vmem:[#allocation5 + $0x58] sm:$0xff]  ;;  %v673_v41 = vld [vmem:[#allocation7 + $0xf0] sm:$0xff]  ;;  %v667_v49 = vld [vmem:[#allocation7 + $0xc0] sm:$0xff] }
  0xa1   : > { %511 = vmatprep.subr.mxu1 %v422_v17  ;;  %859 = vmatprep.subr.mxu0 %v677_v35  ;;  %v431_v42 = vld [vmem:[#allocation5 + $0x50] sm:$0xff]  ;;  %v428_v44 = vld [vmem:[#allocation5 + $0x38] sm:$0xff]  ;;  %v664_v53 = vld [vmem:[#allocation7 + $0xa8] sm:$0xff]  ;;  %p2474_p8 = pnand %p2473_p2, %p3006_p5  ;;  %p2481_p1 = por %p2480_p13, %p2479_p4 }
  0xa2   : > { %512 = vmatpush1.msra.mxu1 %v421_v20  ;;  %860 = vmatpush1.msra.mxu0 %v676_v37  ;;  %v670_v45 = vld [vmem:[#allocation7 + $0xd8] sm:$0xff]  ;;  %v427_v46 = vld [vmem:[#allocation5 + $0x30] sm:$0xff]  ;;  %v784_v54 = vld [vmem:[#allocation7 + $0x468] sm:$0xff] }
  0xa3   : > { %1831 = vmatmul.mubr.msk.f32.vlgmr.msra.gmra.mxu1 %vm474_vm0, %v2824_v22  ;;  %574 = vmatprep.subr.mxu1 %v452_v23  ;;  %v424_v48 = vld [vmem:[#allocation5 + $0x18] sm:$0xff]  ;;  %v423_v50 = vld [vmem:[#allocation5 + $0x10] sm:$0xff]  ;;  %v659_v58 = vld [vmem:[#allocation7 + $0x80] sm:$0xff]  ;;  %p2475_p9 = pneg %p2474_p8 }
  0xa4   : > { %575 = vmatpush1.msra.mxu1 %v451_v24  ;;  %551 = vmatprep.mubr.f32.mxu1 %v2563_v0  ;;  %v665_v51 = vld [vmem:[#allocation7 + $0xb0] sm:$0xff]  ;;  %v662_v55 = vld [vmem:[#allocation7 + $0x98] sm:$0xff]  ;;  %v779_v61 = vld [vmem:[#allocation7 + $0x440] sm:$0xff] }
  0xa5   : > { %576 = vmatprep.subr.mxu1 %v448_v25  ;;  %861 = vmatprep.subr.mxu0 %v674_v39  ;;  %v785_v52 = vld [vmem:[#allocation7 + $0x470] sm:$0xff]  ;;  %v782_v56 = vld [vmem:[#allocation7 + $0x458] sm:$0xff]  ;;  %v656_v62 = vld [vmem:[#allocation7 + $0x68] sm:$0xff]  ;;  %p2482_p3 = pnand %p2481_p1, %p2475_p9 }
  0xa6   : > { %577 = vmatpush1.msra.mxu1 %v447_v27  ;;  %862 = vmatpush1.msra.mxu0 %v673_v41  ;;  %v661_v57 = vld [vmem:[#allocation7 + $0x90] sm:$0xff]  ;;  %v658_v60 = vld [vmem:[#allocation7 + $0x78] sm:$0xff]  ;;  %v655_v1 = vld [vmem:[#allocation7 + $0x60] sm:$0xff] }
  0xa7   : > { %1832 = vmatmul.mubr.msk.f32.gmra.mxu1 %vm474_vm0, %v2830_v29  ;;  %578 = vmatprep.subr.mxu1 %v444_v30  ;;  %v781_v59 = vld [vmem:[#allocation7 + $0x450] sm:$0xff]  ;;  %v778_v63 = vld [vmem:[#allocation7 + $0x438] sm:$0xff]  ;;  %v776_v2 = vld [vmem:[#allocation7 + $0x428] sm:$0xff] }
  0xa8   : > { %579 = vmatpush1.msra.mxu1 %v443_v31  ;;  %622 = vmatprep.mubr.f32.mxu1 %v2563_v0  ;;  %v775_v3 = vld [vmem:[#allocation7 + $0x420] sm:$0xff]  ;;  %v652_v4 = vld [vmem:[#allocation7 + $0x48] sm:$0xff]  ;;  %v773_v5 = vld [vmem:[#allocation7 + $0x410] sm:$0xff] }
  0xa9   : > { %580 = vmatprep.subr.mxu1 %v440_v32  ;;  %863 = vmatprep.subr.mxu0 %v671_v43  ;;  %v650_v6 = vld [vmem:[#allocation7 + $0x38] sm:$0xff]  ;;  %v772_v7 = vld [vmem:[#allocation7 + $0x408] sm:$0xff]  ;;  %v649_v8 = vld [vmem:[#allocation7 + $0x30] sm:$0xff] }
  0xaa   : > { %581 = vmatpush1.msra.mxu1 %v439_v34  ;;  %864 = vmatpush1.msra.mxu0 %v670_v45  ;;  %v770_v9 = vld [vmem:[#allocation7 + $0x3f8] sm:$0xff]  ;;  %v647_v10 = vld [vmem:[#allocation7 + $0x20] sm:$0xff]  ;;  %v769_v11 = vld [vmem:[#allocation7 + $0x3f0] sm:$0xff] }
  0xab   : > { %582 = vmatprep.subr.mxu1 %v436_v36  ;;  %865 = vmatprep.subr.mxu0 %v668_v47  ;;  %v646_v12 = vld [vmem:[#allocation7 + $0x18] sm:$0xff]  ;;  %v767_v13 = vld [vmem:[#allocation7 + $0x3e0] sm:$0xff]  ;;  %v644_v14 = vld [vmem:[#allocation7 + $0x8] sm:$0xff] }
  0xac   : > { %583 = vmatpush1.msra.mxu1 %v435_v38  ;;  %866 = vmatpush1.msra.mxu0 %v667_v49  ;;  %v766_v15 = vld [vmem:[#allocation7 + $0x3d8] sm:$0xff]  ;;  %v643_v16 = vld [vmem:[#allocation7] sm:$0xff]  ;;  %v764_v17 = vld [vmem:[#allocation7 + $0x3c8] sm:$0xff] }
  0xad   : > { %584 = vmatprep.subr.mxu1 %v432_v40  ;;  %867 = vmatprep.subr.mxu0 %v665_v51  ;;  %v737_v18 = vld [vmem:[#allocation7 + $0x2f0] sm:$0xff]  ;;  %v763_v19 = vld [vmem:[#allocation7 + $0x3c0] sm:$0xff]  ;;  %v736_v20 = vld [vmem:[#allocation7 + $0x2e8] sm:$0xff] }
  0xae   : > { %585 = vmatpush1.msra.mxu1 %v431_v42  ;;  %868 = vmatpush1.msra.mxu0 %v664_v53  ;;  %v761_v21 = vld [vmem:[#allocation7 + $0x3b0] sm:$0xff]  ;;  %v760_v23 = vld [vmem:[#allocation7 + $0x3a8] sm:$0xff]  ;;  %v758_v25 = vld [vmem:[#allocation7 + $0x398] sm:$0xff] }
  0xaf   : > { %586 = vmatprep.subr.mxu1 %v428_v44  ;;  %869 = vmatprep.subr.mxu0 %v662_v55  ;;  %v733_v24 = vld [vmem:[#allocation7 + $0x2d0] sm:$0xff]  ;;  %v731_v26 = vld [vmem:[#allocation7 + $0x2c0] sm:$0xff]  ;;  %v730_v28 = vld [vmem:[#allocation7 + $0x2b8] sm:$0xff] }
  0xb0   : > { %587 = vmatpush1.msra.mxu1 %v427_v46  ;;  %870 = vmatpush1.msra.mxu0 %v661_v57  ;;  %v757_v27 = vld [vmem:[#allocation7 + $0x390] sm:$0xff]  ;;  %v728_v30 = vld [vmem:[#allocation7 + $0x2a8] sm:$0xff]  ;;  %v754_v31 = vld [vmem:[#allocation7 + $0x378] sm:$0xff] }
  0xb1   : > { %588 = vmatprep.subr.mxu1 %v424_v48  ;;  %871 = vmatprep.subr.mxu0 %v659_v58  ;;  %v727_v32 = vld [vmem:[#allocation7 + $0x2a0] sm:$0xff]  ;;  %v752_v33 = vld [vmem:[#allocation7 + $0x368] sm:$0xff]  ;;  %v725_v34 = vld [vmem:[#allocation7 + $0x290] sm:$0xff] }
  0xb2   : > { %589 = vmatpush1.msra.mxu1 %v423_v50  ;;  %872 = vmatpush1.msra.mxu0 %v658_v60  ;;  %v751_v35 = vld [vmem:[#allocation7 + $0x360] sm:$0xff]  ;;  %v724_v36 = vld [vmem:[#allocation7 + $0x288] sm:$0xff]  ;;  %v749_v37 = vld [vmem:[#allocation7 + $0x350] sm:$0xff] }
  0xb3   : > { %1833 = vmatmul.mubr.msk.f32.vlgmr.msra.gmra.mxu1 %vm474_vm0, %v2824_v22  ;;  %928 = vmatprep.subr.mxu1 %v785_v52  ;;  %v734_v22 = vld [vmem:[#allocation7 + $0x2d8] sm:$0xff]  ;;  %v748_v39 = vld [vmem:[#allocation7 + $0x348] sm:$0xff]  ;;  %v721_v40 = vld [vmem:[#allocation7 + $0x270] sm:$0xff] }
  0xb4   : > { %628 = vmatprep.mubr.f32.mxu1 %v2563_v0  ;;  %929 = vmatpush1.msra.mxu1 %v784_v54  ;;  %v653_v0 = vld [vmem:[#allocation7 + $0x50] sm:$0xff]  ;;  %v722_v38 = vld [vmem:[#allocation7 + $0x278] sm:$0xff]  ;;  %v719_v42 = vld [vmem:[#allocation7 + $0x260] sm:$0xff] }
  0xb5   : > { %930 = vmatprep.subr.mxu1 %v782_v56  ;;  %873 = vmatprep.subr.mxu0 %v656_v62  ;;  %v746_v41 = vld [vmem:[#allocation7 + $0x338] sm:$0xff]  ;;  %v745_v43 = vld [vmem:[#allocation7 + $0x330] sm:$0xff]  ;;  %v743_v45 = vld [vmem:[#allocation7 + $0x320] sm:$0xff] }
  0xb6   : > { %931 = vmatpush1.msra.mxu1 %v781_v59  ;;  %874 = vmatpush1.msra.mxu0 %v655_v1  ;;  %v718_v44 = vld [vmem:[#allocation7 + $0x258] sm:$0xff]  ;;  %v716_v46 = vld [vmem:[#allocation7 + $0x248] sm:$0xff]  ;;  %v715_v48 = vld [vmem:[#allocation7 + $0x240] sm:$0xff] }
  0xb7   : > { %1834 = vmatmul.mubr.msk.f32.gmra.mxu1 %vm474_vm0, %v2830_v29  ;;  %932 = vmatprep.subr.mxu1 %v779_v61  ;;  %v755_v29 = vld [vmem:[#allocation7 + $0x380] sm:$0xff]  ;;  %v742_v47 = vld [vmem:[#allocation7 + $0x318] sm:$0xff]  ;;  %v740_v49 = vld [vmem:[#allocation7 + $0x308] sm:$0xff] }
  0xb8   : > { %933 = vmatpush1.msra.mxu1 %v778_v63  ;;  %875 = vmatprep.subr.mxu0 %v653_v0  ;;  %v713_v50 = vld [vmem:[#allocation7 + $0x230] sm:$0xff]  ;;  %v739_v51 = vld [vmem:[#allocation7 + $0x300] sm:$0xff]  ;;  %v712_v52 = vld [vmem:[#allocation7 + $0x228] sm:$0xff] }
  0xb9   : > { %934 = vmatprep.subr.mxu1 %v776_v2  ;;  %876 = vmatpush1.msra.mxu0 %v652_v4  ;;  %v833_v53 = vld [vmem:[#allocation7 + $0x5f0] sm:$0xff]  ;;  %v710_v54 = vld [vmem:[#allocation7 + $0x218] sm:$0xff]  ;;  %v832_v55 = vld [vmem:[#allocation7 + $0x5e8] sm:$0xff] }
  0xba   : > { %935 = vmatpush1.msra.mxu1 %v775_v3  ;;  %877 = vmatprep.subr.mxu0 %v650_v6  ;;  %v709_v56 = vld [vmem:[#allocation7 + $0x210] sm:$0xff]  ;;  %v830_v57 = vld [vmem:[#allocation7 + $0x5d8] sm:$0xff]  ;;  %v707_v58 = vld [vmem:[#allocation7 + $0x200] sm:$0xff] }
  0xbb   : > { %936 = vmatprep.subr.mxu1 %v773_v5  ;;  %878 = vmatpush1.msra.mxu0 %v649_v8  ;;  %v829_v59 = vld [vmem:[#allocation7 + $0x5d0] sm:$0xff]  ;;  %v706_v60 = vld [vmem:[#allocation7 + $0x1f8] sm:$0xff]  ;;  %v827_v61 = vld [vmem:[#allocation7 + $0x5c0] sm:$0xff] }
  0xbc   : > { %937 = vmatpush1.msra.mxu1 %v772_v7  ;;  %879 = vmatprep.subr.mxu0 %v647_v10  ;;  %v704_v62 = vld [vmem:[#allocation7 + $0x1e8] sm:$0xff]  ;;  %v826_v63 = vld [vmem:[#allocation7 + $0x5b8] sm:$0xff]  ;;  %v703_v1 = vld [vmem:[#allocation7 + $0x1e0] sm:$0xff] }
  0xbd   : > { %938 = vmatprep.subr.mxu1 %v770_v9  ;;  %880 = vmatpush1.msra.mxu0 %v646_v12  ;;  %v824_v2 = vld [vmem:[#allocation7 + $0x5a8] sm:$0xff]  ;;  %v701_v0 = vld [vmem:[#allocation7 + $0x1d0] sm:$0xff]  ;;  %v823_v3 = vld [vmem:[#allocation7 + $0x5a0] sm:$0xff] }
  0xbe   : > { %939 = vmatpush1.msra.mxu1 %v769_v11  ;;  %881 = vmatprep.subr.mxu0 %v644_v14  ;;  %v821_v4 = vld [vmem:[#allocation7 + $0x590] sm:$0xff]  ;;  %v700_v5 = vld [vmem:[#allocation7 + $0x1c8] sm:$0xff]  ;;  %v698_v7 = vld [vmem:[#allocation7 + $0x1b8] sm:$0xff] }
  0xbf   : > { %940 = vmatprep.subr.mxu1 %v767_v13  ;;  %882 = vmatpush1.msra.mxu0 %v643_v16  ;;  %v820_v6 = vld [vmem:[#allocation7 + $0x588] sm:$0xff]  ;;  %v818_v8 = vld [vmem:[#allocation7 + $0x578] sm:$0xff]  ;;  %v697_v9 = vld [vmem:[#allocation7 + $0x1b0] sm:$0xff] }
  0xc0   : > { %941 = vmatpush1.msra.mxu1 %v766_v15  ;;  %883 = vmatprep.subr.mxu0 %v737_v18  ;;  %v817_v10 = vld [vmem:[#allocation7 + $0x570] sm:$0xff]  ;;  %v695_v11 = vld [vmem:[#allocation7 + $0x1a0] sm:$0xff]  ;;  %v694_v13 = vld [vmem:[#allocation7 + $0x198] sm:$0xff] }
  0xc1   : > { %942 = vmatprep.subr.mxu1 %v764_v17  ;;  %884 = vmatpush2.msra.mxu0 %v736_v20  ;;  %v815_v12 = vld [vmem:[#allocation7 + $0x560] sm:$0xff]  ;;  %v814_v14 = vld [vmem:[#allocation7 + $0x558] sm:$0xff]  ;;  %v692_v15 = vld [vmem:[#allocation7 + $0x188] sm:$0xff] }
  0xc2   : > { %943 = vmatpush1.msra.mxu1 %v763_v19  ;;  %885 = vmatprep.subr.mxu0 %v734_v22  ;;  %v812_v16 = vld [vmem:[#allocation7 + $0x548] sm:$0xff]  ;;  %v691_v17 = vld [vmem:[#allocation7 + $0x180] sm:$0xff]  ;;  %v809_v19 = vld [vmem:[#allocation7 + $0x530] sm:$0xff] }
  0xc3   : > { %944 = vmatprep.subr.mxu1 %v761_v21  ;;  %886 = vmatpush2.msra.mxu0 %v733_v24  ;;  %v811_v18 = vld [vmem:[#allocation7 + $0x540] sm:$0xff]  ;;  %v738_v20 = vld [vmem:[#allocation7 + $0x2f8] sm:$0xff]  ;;  %v808_v21 = vld [vmem:[#allocation7 + $0x528] sm:$0xff] }
  0xc4   : > { %945 = vmatpush1.msra.mxu1 %v760_v23  ;;  %887 = vmatprep.subr.mxu0 %v731_v26  ;;  %v806_v22 = vld [vmem:[#allocation7 + $0x518] sm:$0xff]  ;;  %v805_v23 = vld [vmem:[#allocation7 + $0x510] sm:$0xff]  ;;  %v803_v24 = vld [vmem:[#allocation7 + $0x500] sm:$0xff] }
  0xc5   : > { %946 = vmatprep.subr.mxu1 %v758_v25  ;;  %888 = vmatpush2.msra.mxu0 %v730_v28  ;;  %v802_v25 = vld [vmem:[#allocation7 + $0x4f8] sm:$0xff]  ;;  %v800_v26 = vld [vmem:[#allocation7 + $0x4e8] sm:$0xff]  ;;  %v797_v28 = vld [vmem:[#allocation7 + $0x4d0] sm:$0xff] }
  0xc6   : > { %947 = vmatpush1.msra.mxu1 %v757_v27  ;;  %889 = vmatprep.subr.mxu0 %v728_v30  ;;  %v799_v27 = vld [vmem:[#allocation7 + $0x4e0] sm:$0xff]  ;;  %v794_v30 = vld [vmem:[#allocation7 + $0x4b8] sm:$0xff] }
  0xc7   : > { %948 = vmatprep.subr.mxu1 %v755_v29  ;;  %890 = vmatpush2.msra.mxu0 %v727_v32  ;;  %v796_v29 = vld [vmem:[#allocation7 + $0x4c8] sm:$0xff]  ;;  %v791_v32 = vld [vmem:[#allocation7 + $0x4a0] sm:$0xff] }
  0xc8   : > { %949 = vmatpush1.msra.mxu1 %v754_v31  ;;  %891 = vmatprep.subr.mxu0 %v725_v34  ;;  %v793_v31 = vld [vmem:[#allocation7 + $0x4b0] sm:$0xff]  ;;  %v788_v34 = vld [vmem:[#allocation7 + $0x488] sm:$0xff] }
  0xc9   : > { %950 = vmatprep.subr.mxu1 %v752_v33  ;;  %892 = vmatpush2.msra.mxu0 %v724_v36  ;;  %v790_v33 = vld [vmem:[#allocation7 + $0x498] sm:$0xff] }
  0xca   : > { %951 = vmatpush1.msra.mxu1 %v751_v35  ;;  %893 = vmatprep.subr.mxu0 %v722_v38  ;;  %v787_v35 = vld [vmem:[#allocation7 + $0x480] sm:$0xff]  ;;  %v834_v36 = vld [vmem:[#allocation7 + $0x5f8] sm:$0xff] }
  0xcb   : > { %952 = vmatprep.subr.mxu1 %v749_v37  ;;  %894 = vmatpush2.msra.mxu0 %v721_v40  ;;  %v454_v37 = vlaneseq  ;;  %v413_v40 = vld [vmem:[%s2976_s7] sm:$0xf] }
  0xcc   : > { %953 = vmatpush1.msra.mxu1 %v748_v39  ;;  %895 = vmatprep.subr.mxu0 %v719_v42 }
  0xcd   : > { %954 = vmatprep.subr.mxu1 %v746_v41  ;;  %896 = vmatpush2.msra.mxu0 %v718_v44  ;;  %v2840_v38 = vshrl.u32 %v454_v37, 7  ;;  %v777_v37 = vld [vmem:[#allocation7 + $0x430] sm:$0xff] }
  0xce   : > { %955 = vmatpush1.msra.mxu1 %v745_v43  ;;  %897 = vmatprep.subr.mxu0 %v716_v46 }
  0xcf   : > { %956 = vmatprep.subr.mxu1 %v743_v45  ;;  %898 = vmatpush2.msra.mxu0 %v715_v48  ;;  %v456_v39 = vsub.s32 0, %v2840_v38  ;;  %v460_v41 = vsub.s32 1, %v2840_v38 }
  0xd0   : > { %957 = vmatpush1.msra.mxu1 %v742_v47  ;;  %899 = vmatprep.subr.mxu0 %v713_v50 }
  0xd1   : > { %958 = vmatprep.subr.mxu1 %v740_v49  ;;  %900 = vmatpush2.msra.mxu0 %v712_v52  ;;  %v457_v42 = vrot.slane %v413_v40, %v456_v39  ;;  %v461_v43 = vrot.slane %v413_v40, %v460_v41 }
  0xd2   : > { %959 = vmatpush1.msra.mxu1 %v739_v51  ;;  %901 = vmatprep.subr.mxu0 %v710_v54 }
  0xd3   : > { %960 = vmatprep.subr.mxu1 %v833_v53  ;;  %902 = vmatpush2.msra.mxu0 %v709_v56  ;;  %v690_v53 = vld [vmem:[#allocation7 + $0x178] sm:$0xff] }
  0xd4   : > { %961 = vmatpush2.msra.mxu1 %v832_v55  ;;  %903 = vmatprep.subr.mxu0 %v707_v58  ;;  %v735_v55 = vld [vmem:[#allocation7 + $0x2e0] sm:$0xff] }
  0xd5   : > { %962 = vmatprep.subr.mxu1 %v830_v57  ;;  %904 = vmatpush2.msra.mxu0 %v706_v60  ;;  %v687_v57 = vld [vmem:[#allocation7 + $0x160] sm:$0xff]  ;;  %v684_v60 = vld [vmem:[#allocation7 + $0x148] sm:$0xff] }
  0xd6   : > { %963 = vmatpush2.msra.mxu1 %v829_v59  ;;  %905 = vmatprep.subr.mxu0 %v704_v62  ;;  %v732_v59 = vld [vmem:[#allocation7 + $0x2c8] sm:$0xff]  ;;  %v729_v62 = vld [vmem:[#allocation7 + $0x2b0] sm:$0xff] }
  0xd7   : > { %964 = vmatprep.subr.mxu1 %v827_v61  ;;  %906 = vmatpush2.msra.mxu0 %v703_v1  ;;  %v464_v61 = vsub.s32 2, %v2840_v38  ;;  %v681_v1 = vld [vmem:[#allocation7 + $0x130] sm:$0xff] }
  0xd8   : > { %965 = vmatpush2.msra.mxu1 %v826_v63  ;;  %907 = vmatprep.subr.mxu0 %v701_v0  ;;  %v468_v63 = vsub.s32 3, %v2840_v38  ;;  %v1381_v38 = vld [vmem:[#allocation10 + $0x70] sm:$0xff] }
  0xd9   : > { %966 = vmatprep.subr.mxu1 %v824_v2  ;;  %908 = vmatpush2.msra.mxu0 %v700_v5  ;;  %v726_v2 = vld [vmem:[#allocation7 + $0x298] sm:$0xff]  ;;  %v465_v0 = vrot.slane %v413_v40, %v464_v61 }
  0xda   : > { %967 = vmatpush2.msra.mxu1 %v823_v3  ;;  %909 = vmatprep.subr.mxu0 %v698_v7  ;;  %v678_v3 = vld [vmem:[#allocation7 + $0x118] sm:$0xff]  ;;  %v469_v5 = vrot.slane %v413_v40, %v468_v63  ;;  %v675_v7 = vld [vmem:[#allocation7 + $0x100] sm:$0xff]  ;;  %v765_v63 = vld [vmem:[#allocation7 + $0x3d0] sm:$0xff] }
  0xdb   : > { %968 = vmatprep.subr.mxu1 %v821_v4  ;;  %910 = vmatpush2.msra.mxu0 %v697_v9  ;;  %v723_v4 = vld [vmem:[#allocation7 + $0x280] sm:$0xff]  ;;  %v702_v40 = vld [vmem:[#allocation7 + $0x1d8] sm:$0xff] }
  0xdc   : > { %969 = vmatpush2.msra.mxu1 %v820_v6  ;;  %911 = vmatprep.subr.mxu0 %v695_v11  ;;  %v672_v11 = vld [vmem:[#allocation7 + $0xe8] sm:$0xff] }
  0xdd   : > { %970 = vmatprep.subr.mxu1 %v818_v8  ;;  %912 = vmatpush2.msra.mxu0 %v694_v13  ;;  %v720_v8 = vld [vmem:[#allocation7 + $0x268] sm:$0xff]  ;;  %v717_v13 = vld [vmem:[#allocation7 + $0x250] sm:$0xff] }
  0xde   : > { %971 = vmatpush2.msra.mxu1 %v817_v10  ;;  %913 = vmatprep.subr.mxu0 %v692_v15  ;;  %v669_v15 = vld [vmem:[#allocation7 + $0xd0] sm:$0xff] }
  0xdf   : > { %972 = vmatprep.subr.mxu1 %v815_v12  ;;  %914 = vmatpush2.msra.mxu0 %v691_v17 }
  0xe0   : > { %973 = vmatpush2.msra.mxu1 %v814_v14  ;;  %1846 = vmatprep.subr.mxu0 %v738_v20 }
  0xe1   : > { %974 = vmatprep.subr.mxu1 %v812_v16 }
  0xe2   : > { %975 = vmatpush2.msra.mxu1 %v811_v18  ;;  %v714_v18 = vld [vmem:[#allocation7 + $0x238] sm:$0xff] }
  0xe3   : > { %976 = vmatprep.subr.mxu1 %v809_v19 }
  0xe4   : > { %977 = vmatpush2.msra.mxu1 %v808_v21  ;;  %v666_v21 = vld [vmem:[#allocation7 + $0xb8] sm:$0xff] }
  0xe5   : > { %978 = vmatprep.subr.mxu1 %v806_v22  ;;  %v786_v22 = vld [vmem:[#allocation7 + $0x478] sm:$0xff] }
  0xe6   : > { %979 = vmatpush2.msra.mxu1 %v805_v23 }
  0xe7   : > { %980 = vmatprep.subr.mxu1 %v803_v24  ;;  %v711_v24 = vld [vmem:[#allocation7 + $0x220] sm:$0xff] }
  0xe8   : > { %981 = vmatpush2.msra.mxu1 %v802_v25  ;;  %v831_v25 = vld [vmem:[#allocation7 + $0x5e0] sm:$0xff] }
  0xe9   : > { %982 = vmatprep.subr.mxu1 %v800_v26  ;;  %v663_v26 = vld [vmem:[#allocation7 + $0xa0] sm:$0xff] }
  0xea   : > { %983 = vmatpush2.msra.mxu1 %v799_v27  ;;  %v783_v27 = vld [vmem:[#allocation7 + $0x460] sm:$0xff] }
  0xeb   : > { %984 = vmatprep.subr.mxu1 %v797_v28 }
  0xec   : > { %985 = vmatpush2.msra.mxu1 %v796_v29 }
  0xed   : > { %986 = vmatprep.subr.mxu1 %v794_v30  ;;  %v708_v30 = vld [vmem:[#allocation7 + $0x208] sm:$0xff] }
  0xee   : > { %987 = vmatpush2.msra.mxu1 %v793_v31  ;;  %v828_v31 = vld [vmem:[#allocation7 + $0x5c8] sm:$0xff] }
  0xef   : > { %988 = vmatprep.subr.mxu1 %v791_v32  ;;  %v660_v32 = vld [vmem:[#allocation7 + $0x88] sm:$0xff] }
  0xf0   : > { %989 = vmatpush2.msra.mxu1 %v790_v33  ;;  %v780_v33 = vld [vmem:[#allocation7 + $0x448] sm:$0xff] }
  0xf1   : > { %990 = vmatprep.subr.mxu1 %v788_v34  ;;  %v705_v34 = vld [vmem:[#allocation7 + $0x1f0] sm:$0xff] }
  0xf2   : > { %991 = vmatpush2.msra.mxu1 %v787_v35  ;;  %v825_v35 = vld [vmem:[#allocation7 + $0x5b0] sm:$0xff] }
  0xf3   : > { %1884 = vmatprep.subr.mxu1 %v834_v36  ;;  %v657_v36 = vld [vmem:[#allocation7 + $0x70] sm:$0xff] }
 0x163   : > { %v547_v44 = vpop.f32.mrf.mxu1 }
 0x164   : > { %v2851_v45 = vadd.f32 %v547_v44, %v457_v42  ;;  %v774_v44 = vld [vmem:[#allocation7 + $0x418] sm:$0xff] }
 0x165   : > { %v549_v46 = vpop.f32.mrf.mxu1 }
 0x166   : > { %v550_v47 = vadd.f32 %v549_v46, %v461_v43  ;;  %v635_v51 = vmax.f32 %v2851_v45, 0.0  ;;  %v699_v46 = vld [vmem:[#allocation7 + $0x1c0] sm:$0xff]  ;;  %v801_v45 = vld [vmem:[#allocation7 + $0x4f0] sm:$0xff] }
 0x167   : > { %v553_v48 = vpop.f32.mrf.mxu1 }
 0x168   : > { %v636_v49 = vmax.f32 %v550_v47, 0.0  ;;  %v2853_v50 = vadd.f32 %v553_v48, %v457_v42  ;;  %v822_v42 = vld [vmem:[#allocation7 + $0x598] sm:$0xff]  ;;  %v819_v47 = vld [vmem:[#allocation7 + $0x580] sm:$0xff] }
 0x169   : > { %v555_v52 = vpop.f32.mrf.mxu1  ;;  %v651_v48 = vld [vmem:[#allocation7 + $0x40] sm:$0xff] }
 0x16a   : > { %v2856_v54 = vadd.f32 %v555_v52, %v461_v43  ;;  %915 = vmatprep.mubr.f32.mxu0 %v636_v49  ;;  %v639_v56 = vmax.f32 %v2853_v50, 0.0  ;;  %v654_v43 = vld [vmem:[#allocation7 + $0x58] sm:$0xff]  ;;  %v696_v52 = vld [vmem:[#allocation7 + $0x1a8] sm:$0xff]  ;;  %v747_v50 = vld [vmem:[#allocation7 + $0x340] sm:$0xff] }
 0x16b   : > { %916 = vmatmul.mubr.f32.vlgmr.msra.gmra.mxu0 %v635_v51 }
 0x16c   : > { %v640_v58 = vmax.f32 %v2856_v54, 0.0  ;;  %1847 = vmatpush3.msra.mxu0 %v690_v53  ;;  %v816_v53 = vld [vmem:[#allocation7 + $0x568] sm:$0xff] }
 0x16d   : > { %1848 = vmatprep.subr.mxu0 %v735_v55  ;;  %v648_v55 = vld [vmem:[#allocation7 + $0x28] sm:$0xff] }
 0x16e   : > { %1849 = vmatpush3.msra.mxu0 %v687_v57  ;;  %921 = vmatprep.mubr.f32.mxu0 %v640_v58  ;;  %v768_v57 = vld [vmem:[#allocation7 + $0x3e8] sm:$0xff] }
 0x16f   : > { %1850 = vmatprep.subr.mxu0 %v732_v59  ;;  %922 = vmatmul.mubr.f32.gmra.mxu0 %v639_v56  ;;  %v693_v59 = vld [vmem:[#allocation7 + $0x190] sm:$0xff]  ;;  %v1174_v54 = vld [vmem:[#allocation8 + $0x68] sm:$0xff] }
 0x170   : > { %1851 = vmatpush3.msra.mxu0 %v684_v60  ;;  %1069 = vmatprep.mubr.f32.mxu0 %v636_v49  ;;  %v771_v49 = vld [vmem:[#allocation7 + $0x400] sm:$0xff]  ;;  %v813_v60 = vld [vmem:[#allocation7 + $0x550] sm:$0xff] }
 0x171   : > { %1852 = vmatprep.subr.mxu0 %v729_v62  ;;  %v645_v62 = vld [vmem:[#allocation7 + $0x10] sm:$0xff] }
 0x172   : > { %1853 = vmatpush3.msra.mxu0 %v681_v1  ;;  %v810_v1 = vld [vmem:[#allocation7 + $0x538] sm:$0xff] }
 0x173   : > { %1854 = vmatprep.subr.mxu0 %v726_v2  ;;  %v624_v6 = vpop.f32.mrf.mxu1  ;;  %v762_v2 = vld [vmem:[#allocation7 + $0x3b8] sm:$0xff] }
 0x174   : > { %1855 = vmatpush3.msra.mxu0 %v678_v3  ;;  %v2870_v9 = vadd.f32 %v624_v6, %v465_v0  ;;  %v807_v3 = vld [vmem:[#allocation7 + $0x520] sm:$0xff]  ;;  %v804_v6 = vld [vmem:[#allocation7 + $0x508] sm:$0xff] }
 0x175   : > { %1856 = vmatprep.subr.mxu0 %v723_v4  ;;  %v626_v10 = vpop.f32.mrf.mxu1  ;;  %v1176_v4 = vld [vmem:[#allocation8 + $0x78] sm:$0xff] }
 0x176   : > { %v627_v12 = vadd.f32 %v626_v10, %v469_v5  ;;  %1857 = vmatpush3.msra.mxu0 %v675_v7  ;;  %v637_v19 = vmax.f32 %v2870_v9, 0.0  ;;  %v1191_v7 = vld [vmem:[#allocation8 + $0xf0] sm:$0xff]  ;;  %v1169_v9 = vld [vmem:[#allocation8 + $0x40] sm:$0xff] }
 0x177   : > { %1858 = vmatprep.subr.mxu0 %v720_v8  ;;  %v630_v14 = vpop.f32.mrf.mxu1  ;;  %v756_v8 = vld [vmem:[#allocation7 + $0x388] sm:$0xff]  ;;  %v1175_v10 = vld [vmem:[#allocation8 + $0x70] sm:$0xff] }
 0x178   : > { %v638_v16 = vmax.f32 %v627_v12, 0.0  ;;  %v2872_v17 = vadd.f32 %v630_v14, %v465_v0  ;;  %1859 = vmatpush3.msra.mxu0 %v672_v11  ;;  %v1192_v0 = vld [vmem:[#allocation8 + $0xf8] sm:$0xff]  ;;  %v753_v11 = vld [vmem:[#allocation7 + $0x370] sm:$0xff]  ;;  %v1189_v12 = vld [vmem:[#allocation8 + $0xe0] sm:$0xff] }
 0x179   : > { %1860 = vmatprep.subr.mxu0 %v717_v13  ;;  %v632_v20 = vpop.f32.mrf.mxu1  ;;  %v750_v13 = vld [vmem:[#allocation7 + $0x358] sm:$0xff]  ;;  %v1173_v14 = vld [vmem:[#allocation8 + $0x60] sm:$0xff] }
 0x17a   : > { %v2875_v23 = vadd.f32 %v632_v20, %v469_v5  ;;  %1861 = vmatpush3.msra.mxu0 %v669_v15  ;;  %992 = vmatprep.mubr.f32.mxu1 %v638_v16  ;;  %v641_v28 = vmax.f32 %v2872_v17, 0.0  ;;  %v759_v5 = vld [vmem:[#allocation7 + $0x3a0] sm:$0xff]  ;;  %v741_v20 = vld [vmem:[#allocation7 + $0x310] sm:$0xff] }
 0x17b   : > { %1862 = vmatprep.subr.mxu0 %v714_v18  ;;  %993 = vmatmul.mubr.f32.vlgmr.msra.gmra.mxu1 %v637_v19  ;;  %v795_v15 = vld [vmem:[#allocation7 + $0x4c0] sm:$0xff]  ;;  %v789_v18 = vld [vmem:[#allocation7 + $0x490] sm:$0xff] }
 0x17c   : > { %v642_v29 = vmax.f32 %v2875_v23, 0.0  ;;  %1863 = vmatpush3.msra.mxu0 %v666_v21  ;;  %1885 = vmatpush3.msra.mxu1 %v786_v22  ;;  %v1188_v21 = vld [vmem:[#allocation8 + $0xd8] sm:$0xff]  ;;  %v1183_v17 = vld [vmem:[#allocation8 + $0xb0] sm:$0xff] }
 0x17d   : > { %1864 = vmatprep.subr.mxu0 %v711_v24  ;;  %1886 = vmatprep.subr.mxu1 %v831_v25  ;;  %v1172_v22 = vld [vmem:[#allocation8 + $0x58] sm:$0xff]  ;;  %v1187_v24 = vld [vmem:[#allocation8 + $0xd0] sm:$0xff] }
 0x17e   : > { %1865 = vmatpush3.msra.mxu0 %v663_v26  ;;  %1887 = vmatpush3.msra.mxu1 %v783_v27  ;;  %v1171_v25 = vld [vmem:[#allocation8 + $0x50] sm:$0xff]  ;;  %v1186_v26 = vld [vmem:[#allocation8 + $0xc8] sm:$0xff]  ;;  %v1168_v23 = vld [vmem:[#allocation8 + $0x38] sm:$0xff] }
 0x17f   : > { %998 = vmatprep.mubr.f32.mxu1 %v642_v29  ;;  %1866 = vmatprep.subr.mxu0 %v708_v30  ;;  %v1170_v27 = vld [vmem:[#allocation8 + $0x48] sm:$0xff]  ;;  %v1185_v30 = vld [vmem:[#allocation8 + $0xc0] sm:$0xff] }
 0x180   : > { %1888 = vmatprep.subr.mxu1 %v828_v31  ;;  %999 = vmatmul.mubr.f32.gmra.mxu1 %v641_v28  ;;  %v1166_v31 = vld [vmem:[#allocation8 + $0x28] sm:$0xff] }
 0x181   : > { %1867 = vmatpush3.msra.mxu0 %v660_v32  ;;  %1889 = vmatpush3.msra.mxu1 %v780_v33  ;;  %v1181_v32 = vld [vmem:[#allocation8 + $0xa0] sm:$0xff] }
 0x182   : > { %1868 = vmatprep.subr.mxu0 %v705_v34  ;;  %1890 = vmatprep.subr.mxu1 %v825_v35  ;;  %v1165_v33 = vld [vmem:[#allocation8 + $0x20] sm:$0xff]  ;;  %v1180_v34 = vld [vmem:[#allocation8 + $0x98] sm:$0xff] }
 0x183   : > { %1144 = vmatprep.mubr.f32.mxu1 %v638_v16  ;;  %1869 = vmatpush3.msra.mxu0 %v657_v36  ;;  %v744_v16 = vld [vmem:[#allocation7 + $0x328] sm:$0xff]  ;;  %v1164_v35 = vld [vmem:[#allocation8 + $0x18] sm:$0xff]  ;;  %v1179_v36 = vld [vmem:[#allocation8 + $0x90] sm:$0xff] }
 0x184   : > { %1891 = vmatpush3.msra.mxu1 %v777_v37  ;;  %1870 = vmatprep.subr.mxu0 %v702_v40  ;;  %v1163_v37 = vld [vmem:[#allocation8 + $0x10] sm:$0xff]  ;;  %v1178_v40 = vld [vmem:[#allocation8 + $0x88] sm:$0xff] }
 0x185   : > { %1892 = vmatprep.subr.mxu1 %v822_v42  ;;  %1871 = vmatpush3.msra.mxu0 %v654_v43  ;;  %v1162_v42 = vld [vmem:[#allocation8 + $0x8] sm:$0xff]  ;;  %v1177_v43 = vld [vmem:[#allocation8 + $0x80] sm:$0xff] }
 0x186   : > { %1893 = vmatpush3.msra.mxu1 %v774_v44  ;;  %1872 = vmatprep.subr.mxu0 %v699_v46  ;;  %v1161_v44 = vld [vmem:[#allocation8] sm:$0xff]  ;;  %v1208_v46 = vld [vmem:[#allocation8 + $0x178] sm:$0xff] }
 0x187   : > { %1894 = vmatprep.subr.mxu1 %v819_v47  ;;  %1873 = vmatpush3.msra.mxu0 %v651_v48  ;;  %v1207_v47 = vld [vmem:[#allocation8 + $0x170] sm:$0xff]  ;;  %v1206_v48 = vld [vmem:[#allocation8 + $0x168] sm:$0xff] }
 0x188   : > { %1895 = vmatpush3.msra.mxu1 %v771_v49  ;;  %1874 = vmatprep.subr.mxu0 %v696_v52  ;;  %v1205_v49 = vld [vmem:[#allocation8 + $0x160] sm:$0xff]  ;;  %v1204_v52 = vld [vmem:[#allocation8 + $0x158] sm:$0xff] }
 0x189   : > { %1896 = vmatprep.subr.mxu1 %v816_v53  ;;  %1875 = vmatpush3.msra.mxu0 %v648_v55  ;;  %v1203_v53 = vld [vmem:[#allocation8 + $0x150] sm:$0xff]  ;;  %v1202_v55 = vld [vmem:[#allocation8 + $0x148] sm:$0xff] }
 0x18a   : > { %1897 = vmatpush3.msra.mxu1 %v768_v57  ;;  %1876 = vmatprep.subr.mxu0 %v693_v59  ;;  %v1201_v57 = vld [vmem:[#allocation8 + $0x140] sm:$0xff]  ;;  %v1200_v59 = vld [vmem:[#allocation8 + $0x138] sm:$0xff] }
 0x18b   : > { %1898 = vmatprep.subr.mxu1 %v813_v60  ;;  %1877 = vmatpush3.msra.mxu0 %v645_v62  ;;  %v1199_v60 = vld [vmem:[#allocation8 + $0x130] sm:$0xff]  ;;  %v1198_v62 = vld [vmem:[#allocation8 + $0x128] sm:$0xff] }
 0x18c   : > { %1899 = vmatpush3.msra.mxu1 %v765_v63  ;;  %1070 = vmatmul.mubr.f32.vlgmr.msra.gmra.mxu0 %v635_v51  ;;  %v1190_v51 = vld [vmem:[#allocation8 + $0xe8] sm:$0xff]  ;;  %v1197_v63 = vld [vmem:[#allocation8 + $0x120] sm:$0xff] }
 0x18d   : > { %1900 = vmatprep.subr.mxu1 %v810_v1  ;;  %1074 = vmatprep.mubr.f32.mxu0 %v640_v58  ;;  %v798_v58 = vld [vmem:[#allocation7 + $0x4d8] sm:$0xff] }
 0x18e   : > { %1901 = vmatpush3.msra.mxu1 %v762_v2  ;;  %1922 = vmatprep.subr.mxu0 %v1192_v0  ;;  %v1196_v1 = vld [vmem:[#allocation8 + $0x118] sm:$0xff]  ;;  %v1195_v2 = vld [vmem:[#allocation8 + $0x110] sm:$0xff]  ;;  %v1194_v0 = vld [vmem:[#allocation8 + $0x108] sm:$0xff] }
 0x18f   : > { %1902 = vmatprep.subr.mxu1 %v807_v3  ;;  %1923 = vmatpush3.msra.mxu0 %v1176_v4  ;;  %v1193_v3 = vld [vmem:[#allocation8 + $0x100] sm:$0xff] }
 0x190   : > { %1903 = vmatpush3.msra.mxu1 %v759_v5  ;;  %1075 = vmatmul.mubr.f32.gmra.mxu0 %v639_v56  ;;  %v792_v56 = vld [vmem:[#allocation7 + $0x4a8] sm:$0xff]  ;;  %v414_v4 = vld [vmem:[%s2976_s7 + $0x4] sm:$0x7] }
 0x191   : > { %1904 = vmatprep.subr.mxu1 %v804_v6  ;;  %1924 = vmatprep.subr.mxu0 %v1191_v7  ;;  %v839_v6 = vrot.slane %v414_v4, %v456_v39  ;;  %v843_v7 = vrot.slane %v414_v4, %v460_v41 }
 0x192   : > { %1905 = vmatpush3.msra.mxu1 %v756_v8  ;;  %1925 = vmatpush3.msra.mxu0 %v1175_v10 }
 0x193   : > { %1906 = vmatprep.subr.mxu1 %v801_v45  ;;  %1926 = vmatprep.subr.mxu0 %v1190_v51 }
 0x194   : > { %1907 = vmatpush3.msra.mxu1 %v753_v11  ;;  %1927 = vmatpush3.msra.mxu0 %v1174_v54 }
 0x195   : > { %1908 = vmatprep.subr.mxu1 %v798_v58  ;;  %1928 = vmatprep.subr.mxu0 %v1189_v12 }
 0x196   : > { %1909 = vmatpush3.msra.mxu1 %v750_v13  ;;  %1929 = vmatpush3.msra.mxu0 %v1173_v14 }
 0x197   : > { %1910 = vmatprep.subr.mxu1 %v795_v15  ;;  %1930 = vmatprep.subr.mxu0 %v1188_v21 }
 0x198   : > { %1911 = vmatpush3.msra.mxu1 %v747_v50  ;;  %1931 = vmatpush3.msra.mxu0 %v1172_v22 }
 0x199   : > { %1912 = vmatprep.subr.mxu1 %v792_v56  ;;  %1932 = vmatprep.subr.mxu0 %v1187_v24 }
 0x19a   : > { %1913 = vmatpush3.msra.mxu1 %v744_v16  ;;  %1933 = vmatpush3.msra.mxu0 %v1171_v25 }
 0x19b   : > { %1914 = vmatprep.subr.mxu1 %v789_v18  ;;  %1934 = vmatprep.subr.mxu0 %v1186_v26  ;;  %v847_v26 = vrot.slane %v414_v4, %v464_v61  ;;  %v1380_v61 = vld [vmem:[#allocation10 + $0x68] sm:$0xff] }
 0x19c   : > { %1915 = vmatpush3.msra.mxu1 %v741_v20  ;;  %1935 = vmatpush3.msra.mxu0 %v1170_v27  ;;  %v1475_v4 = vld [vmem:[#allocation11 + $0x48] sm:$0xff] }
 0x19d   : > { %1145 = vmatmul.mubr.f32.vlgmr.msra.gmra.mxu1 %v637_v19  ;;  %v1184_v19 = vld [vmem:[#allocation8 + $0xb8] sm:$0xff]  ;;  %1936 = vmatprep.subr.mxu0 %v1185_v30 }
 0x19e   : > { %1149 = vmatprep.mubr.f32.mxu1 %v642_v29  ;;  %1937 = vmatpush3.msra.mxu0 %v1169_v9  ;;  %v1182_v29 = vld [vmem:[#allocation8 + $0xa8] sm:$0xff] }
 0x19f   : > { %1938 = vmatprep.subr.mxu0 %v1184_v19  ;;  %2032 = vmatprep.subr.mxu1 %v1208_v46 }
 0x1a0   : > { %1939 = vmatpush3.msra.mxu0 %v1168_v23  ;;  %2033 = vmatpush3.msra.mxu1 %v1208_v46  ;;  %v1376_v46 = vld [vmem:[#allocation10 + $0x48] sm:$0xff] }
 0x1a1   : > { %1150 = vmatmul.mubr.f32.gmra.mxu1 %v641_v28  ;;  %v1167_v28 = vld [vmem:[#allocation8 + $0x30] sm:$0xff]  ;;  %1940 = vmatprep.subr.mxu0 %v1183_v17 }
 0x1a2   : > { %1941 = vmatpush3.msra.mxu0 %v1167_v28  ;;  %2034 = vmatprep.subr.mxu1 %v1207_v47 }
 0x1a3   : > { %1942 = vmatprep.subr.mxu0 %v1182_v29  ;;  %2035 = vmatpush3.msra.mxu1 %v1207_v47  ;;  %v1375_v47 = vld [vmem:[#allocation10 + $0x40] sm:$0xff] }
 0x1a4   : > { %1943 = vmatpush3.msra.mxu0 %v1166_v31  ;;  %2036 = vmatprep.subr.mxu1 %v1206_v48 }
 0x1a5   : > { %1944 = vmatprep.subr.mxu0 %v1181_v32  ;;  %2037 = vmatpush3.msra.mxu1 %v1206_v48  ;;  %v1374_v48 = vld [vmem:[#allocation10 + $0x38] sm:$0xff] }
 0x1a6   : > { %1945 = vmatpush3.msra.mxu0 %v1165_v33  ;;  %2038 = vmatprep.subr.mxu1 %v1205_v49 }
 0x1a7   : > { %1946 = vmatprep.subr.mxu0 %v1180_v34  ;;  %2039 = vmatpush3.msra.mxu1 %v1205_v49  ;;  %v1373_v49 = vld [vmem:[#allocation10 + $0x30] sm:$0xff] }
 0x1a8   : > { %1947 = vmatpush3.msra.mxu0 %v1164_v35  ;;  %2040 = vmatprep.subr.mxu1 %v1204_v52 }
 0x1a9   : > { %1948 = vmatprep.subr.mxu0 %v1179_v36  ;;  %2041 = vmatpush3.msra.mxu1 %v1204_v52  ;;  %v1372_v52 = vld [vmem:[#allocation10 + $0x28] sm:$0xff] }
 0x1aa   : > { %1949 = vmatpush3.msra.mxu0 %v1163_v37  ;;  %2042 = vmatprep.subr.mxu1 %v1203_v53 }
 0x1ab   : > { %1950 = vmatprep.subr.mxu0 %v1178_v40  ;;  %2043 = vmatpush3.msra.mxu1 %v1203_v53  ;;  %v1382_v40 = vld [vmem:[#allocation10 + $0x78] sm:$0xff]  ;;  %v1371_v53 = vld [vmem:[#allocation10 + $0x20] sm:$0xff] }
 0x1ac   : > { %1951 = vmatpush3.msra.mxu0 %v1162_v42  ;;  %2044 = vmatprep.subr.mxu1 %v1202_v55  ;;  %v1379_v42 = vld [vmem:[#allocation10 + $0x60] sm:$0xff] }
 0x1ad   : > { %1952 = vmatprep.subr.mxu0 %v1177_v43  ;;  %2045 = vmatpush3.msra.mxu1 %v1202_v55  ;;  %v1378_v43 = vld [vmem:[#allocation10 + $0x58] sm:$0xff] }
 0x1ae   : > { %1953 = vmatpush3.msra.mxu0 %v1161_v44  ;;  %2046 = vmatprep.subr.mxu1 %v1201_v57  ;;  %v1377_v44 = vld [vmem:[#allocation10 + $0x50] sm:$0xff]  ;;  %v1370_v55 = vld [vmem:[#allocation10 + $0x18] sm:$0xff] }
 0x1af   : > { %2047 = vmatpush3.msra.mxu1 %v1201_v57  ;;  %2067 = vmatprep.subr.mxu0 %v1382_v40  ;;  %v1369_v57 = vld [vmem:[#allocation10 + $0x10] sm:$0xff] }
 0x1b0   : > { %2048 = vmatprep.subr.mxu1 %v1200_v59 }
 0x1b1   : > { %2049 = vmatpush3.msra.mxu1 %v1200_v59  ;;  %v1368_v59 = vld [vmem:[#allocation10 + $0x8] sm:$0xff] }
 0x1b2   : > { %2050 = vmatprep.subr.mxu1 %v1199_v60 }
 0x1b3   : > { %2051 = vmatpush3.msra.mxu1 %v1199_v60  ;;  %v1367_v60 = vld [vmem:[#allocation10] sm:$0xff] }
 0x1b4   : > { %2052 = vmatprep.subr.mxu1 %v1198_v62 }
 0x1b5   : > { %2053 = vmatpush3.msra.mxu1 %v1198_v62  ;;  %v1481_v62 = vld [vmem:[#allocation11 + $0x78] sm:$0xff] }
 0x1b6   : > { %2054 = vmatprep.subr.mxu1 %v1197_v63 }
 0x1b7   : > { %2055 = vmatpush3.msra.mxu1 %v1197_v63  ;;  %v1480_v63 = vld [vmem:[#allocation11 + $0x70] sm:$0xff] }
 0x1b8   : > { %2056 = vmatprep.subr.mxu1 %v1196_v1 }
 0x1b9   : > { %2057 = vmatpush3.msra.mxu1 %v1196_v1  ;;  %v1479_v1 = vld [vmem:[#allocation11 + $0x68] sm:$0xff] }
 0x1ba   : > { %2058 = vmatprep.subr.mxu1 %v1195_v2 }
 0x1bb   : > { %2059 = vmatpush3.msra.mxu1 %v1195_v2  ;;  %v1478_v2 = vld [vmem:[#allocation11 + $0x60] sm:$0xff] }
 0x1bc   : > { %2060 = vmatprep.subr.mxu1 %v1194_v0 }
 0x1bd   : > { %2061 = vmatpush3.msra.mxu1 %v1194_v0  ;;  %v1477_v0 = vld [vmem:[#allocation11 + $0x58] sm:$0xff] }
 0x1be   : > { %2062 = vmatprep.subr.mxu1 %v1193_v3 }
 0x1bf   : > { %2063 = vmatpush3.msra.mxu1 %v1193_v3  ;;  %v1476_v3 = vld [vmem:[#allocation11 + $0x50] sm:$0xff] }
 0x1c0   : > { %2102 = vmatprep.subr.mxu1 %v1481_v62 }
 0x22b   : > { %v917_v5 = vpop.f32.mrf.mxu0 }
 0x22c   : > { %v918_v45 = vadd.f32 %v917_v5, %v839_v6  ;;  %v1474_v5 = vld [vmem:[#allocation11 + $0x40] sm:$0xff] }
 0x22d   : > { %v919_v8 = vpop.f32.mrf.mxu0 }
 0x22e   : > { %v920_v11 = vadd.f32 %v919_v8, %v843_v7  ;;  %v1471_v8 = vld [vmem:[#allocation11 + $0x28] sm:$0xff] }
 0x22f   : > { %v923_v10 = vpop.f32.mrf.mxu0 }
 0x230   : > { %v924_v14 = vadd.f32 %v923_v10, %v839_v6  ;;  %v1473_v6 = vld [vmem:[#allocation11 + $0x38] sm:$0xff]  ;;  %v1470_v10 = vld [vmem:[#allocation11 + $0x20] sm:$0xff] }
 0x231   : > { %v925_v12 = vpop.f32.mrf.mxu0 }
 0x232   : > { %v926_v56 = vadd.f32 %v925_v12, %v843_v7  ;;  %v1472_v7 = vld [vmem:[#allocation11 + $0x30] sm:$0xff] }
 0x23b   : > { %v994_v51 = vpop.f32.mrf.mxu1 }
 0x23c   : > { %v995_v54 = vadd.f32 %v994_v51, %v918_v45 }
 0x23d   : > { %v996_v58 = vpop.f32.mrf.mxu1 }
 0x23e   : > { %v997_v13 = vadd.f32 %v996_v58, %v920_v11  ;;  %v1155_v16 = vmax.f32 %v995_v54, 0.0 }
 0x240   : > { %v1156_v15 = vmax.f32 %v997_v13, 0.0  ;;  %v1000_v50 = vpop.f32.mrf.mxu1  ;;  %v1835_v13 = vld [vmem:[%s2976_s7 + $0x7] ss:$0 sm:$0xff] }
 0x241   : > { %v1001_v18 = vadd.f32 %v1000_v50, %v924_v14 }
 0x242   : > { %v1002_v20 = vpop.f32.mrf.mxu1  ;;  %1279 = vmatprep.mubr.f32.mxu0 %v1156_v15 }
 0x243   : > { %v1003_v39 = vadd.f32 %v1002_v20, %v926_v56  ;;  %1280 = vmatmul.mubr.f32.vlgmr.msra.gmra.mxu0 %v1155_v16  ;;  %v1158_v21 = vmax.f32 %v1001_v18, 0.0 }
 0x244   : > { %2068 = vmatpush3.msra.mxu0 %v1382_v40 }
 0x245   : > { %v1159_v41 = vmax.f32 %v1003_v39, 0.0  ;;  %2069 = vmatprep.subr.mxu0 %v1381_v38 }
 0x246   : > { %2070 = vmatpush3.msra.mxu0 %v1381_v38 }
 0x247   : > { %1284 = vmatprep.mubr.f32.mxu0 %v1159_v41  ;;  %2071 = vmatprep.subr.mxu0 %v1380_v61  ;;  %v1469_v41 = vld [vmem:[#allocation11 + $0x18] sm:$0xff] }
 0x248   : > { %1285 = vmatmul.mubr.f32.gmra.mxu0 %v1158_v21  ;;  %v1468_v21 = vld [vmem:[#allocation11 + $0x10] sm:$0xff] }
 0x249   : > { %2072 = vmatpush3.msra.mxu0 %v1380_v61  ;;  %v1568_v61 = vld [vmem:[#allocation13 + $0x18] sm:$0xff] }
 0x24a   : > { %2073 = vmatprep.subr.mxu0 %v1379_v42 }
 0x24b   : > { %2074 = vmatpush3.msra.mxu0 %v1379_v42  ;;  %v1567_v42 = vld [vmem:[#allocation13 + $0x10] sm:$0xff] }
 0x24c   : > { %v1878_v22 = vpop.f32.mrf.mxu0  ;;  %2075 = vmatprep.subr.mxu0 %v1378_v43 }
 0x24d   : > { %2076 = vmatpush3.msra.mxu0 %v1378_v43  ;;  %v1566_v43 = vld [vmem:[#allocation13 + $0x8] sm:$0xff] }
 0x24e   : > { %v1879_v24 = vpop.f32.mrf.mxu0  ;;  %2077 = vmatprep.subr.mxu0 %v1377_v44 }
 0x24f   : > { %v1880_v27 = vadd.f32 %v1879_v24, %v1878_v22  ;;  %2078 = vmatpush3.msra.mxu0 %v1377_v44  ;;  %v1467_v22 = vld [vmem:[#allocation11 + $0x8] sm:$0xff]  ;;  %v1466_v24 = vld [vmem:[#allocation11] sm:$0xff] }
 0x250   : > { %v1881_v25 = vpop.f32.mrf.mxu0  ;;  %2079 = vmatprep.subr.mxu0 %v1376_v46  ;;  %v1565_v44 = vld [vmem:[#allocation13] sm:$0xff] }
 0x251   : > { %v1072_v23 = vadd.f32 %v1880_v27, %v847_v26  ;;  %2080 = vmatpush3.msra.mxu0 %v1376_v46  ;;  %v1578_v27 = vld [vmem:[#allocation13 + $0x68] sm:$0xff] }
 0x252   : > { %v1882_v30 = vpop.f32.mrf.mxu0  ;;  %2081 = vmatprep.subr.mxu0 %v1375_v47  ;;  %v1837_v46 = vld [vmem:[%s2976_s7 + $0x9] ss:$0 sm:$0xff] }
 0x253   : > { %v1883_v17 = vadd.f32 %v1882_v30, %v1881_v25  ;;  %2082 = vmatpush3.msra.mxu0 %v1375_v47  ;;  %v1580_v25 = vld [vmem:[#allocation13 + $0x78] sm:$0xff]  ;;  %v1577_v30 = vld [vmem:[#allocation13 + $0x60] sm:$0xff] }
 0x254   : > { %2083 = vmatprep.subr.mxu0 %v1374_v48 }
 0x255   : > { %v1077_v33 = vadd.f32 %v1883_v17, %v847_v26  ;;  %2084 = vmatpush3.msra.mxu0 %v1374_v48  ;;  %v1579_v26 = vld [vmem:[#allocation13 + $0x70] sm:$0xff]  ;;  %v1573_v17 = vld [vmem:[#allocation13 + $0x40] sm:$0xff] }
 0x256   : > { %2085 = vmatprep.subr.mxu0 %v1373_v49 }
 0x257   : > { %2086 = vmatpush3.msra.mxu0 %v1373_v49 }
 0x258   : > { %2087 = vmatprep.subr.mxu0 %v1372_v52 }
 0x259   : > { %2088 = vmatpush3.msra.mxu0 %v1372_v52 }
 0x25a   : > { %2089 = vmatprep.subr.mxu0 %v1371_v53 }
 0x25b   : > { %2090 = vmatpush3.msra.mxu0 %v1371_v53 }
 0x25c   : > { %2091 = vmatprep.subr.mxu0 %v1370_v55 }
 0x25d   : > { %v1916_v9 = vpop.f32.mrf.mxu1  ;;  %2092 = vmatpush3.msra.mxu0 %v1370_v55 }
 0x25e   : > { %2093 = vmatprep.subr.mxu0 %v1369_v57 }
 0x25f   : > { %v1917_v19 = vpop.f32.mrf.mxu1  ;;  %2094 = vmatpush3.msra.mxu0 %v1369_v57  ;;  %v1838_v57 = vld [vmem:[%s2976_s7 + $0xa] ss:$0 sm:$0xff] }
 0x260   : > { %v1918_v28 = vadd.f32 %v1917_v19, %v1916_v9  ;;  %2095 = vmatprep.subr.mxu0 %v1368_v59  ;;  %v1576_v9 = vld [vmem:[#allocation13 + $0x58] sm:$0xff]  ;;  %v1575_v19 = vld [vmem:[#allocation13 + $0x50] sm:$0xff] }
 0x261   : > { %v1919_v29 = vpop.f32.mrf.mxu1  ;;  %2096 = vmatpush3.msra.mxu0 %v1368_v59 }
 0x262   : > { %v1147_v31 = vadd.f32 %v1918_v28, %v1072_v23  ;;  %2097 = vmatprep.subr.mxu0 %v1367_v60  ;;  %v1574_v23 = vld [vmem:[#allocation13 + $0x48] sm:$0xff]  ;;  %v1572_v28 = vld [vmem:[#allocation13 + $0x38] sm:$0xff] }
 0x263   : > { %v1920_v32 = vpop.f32.mrf.mxu1  ;;  %2098 = vmatpush3.msra.mxu0 %v1367_v60 }
 0x264   : > { %v1157_v34 = vmax.f32 %v1147_v31, 0.0  ;;  %v1921_v35 = vadd.f32 %v1920_v32, %v1919_v29  ;;  %2137 = vmatprep.subr.mxu0 %v1580_v25  ;;  %v1571_v29 = vld [vmem:[#allocation13 + $0x30] sm:$0xff]  ;;  %v1570_v31 = vld [vmem:[#allocation13 + $0x28] sm:$0xff]  ;;  %v1569_v32 = vld [vmem:[#allocation13 + $0x20] sm:$0xff] }
 0x266   : > { %v1152_v36 = vadd.f32 %v1921_v35, %v1077_v33  ;;  %2064 = vmatprep.mubr.f32.mxu1 %v1157_v34  ;;  %v1836_v33 = vld [vmem:[%s2976_s7 + $0x8] ss:$0 sm:$0xff] }
 0x268   : > { %v1160_v37 = vmax.f32 %v1152_v36, 0.0 }
 0x26a   : > { %2065 = vmatmul.mubr.f32.vlgmr.msra.gmra.mxu1 %v1160_v37 }
 0x26b   : > { %2103 = vmatpush3.msra.mxu1 %v1481_v62 }
 0x26c   : > { %2104 = vmatprep.subr.mxu1 %v1480_v63 }
 0x26d   : > { %2105 = vmatpush3.msra.mxu1 %v1480_v63 }
 0x26e   : > { %2106 = vmatprep.subr.mxu1 %v1479_v1 }
 0x26f   : > { %2107 = vmatpush3.msra.mxu1 %v1479_v1 }
 0x270   : > { %2108 = vmatprep.subr.mxu1 %v1478_v2 }
 0x271   : > { %2109 = vmatpush3.msra.mxu1 %v1478_v2 }
 0x272   : > { %2110 = vmatprep.subr.mxu1 %v1477_v0 }
 0x273   : > { %2111 = vmatpush3.msra.mxu1 %v1477_v0 }
 0x274   : > { %2112 = vmatprep.subr.mxu1 %v1476_v3 }
 0x275   : > { %2113 = vmatpush3.msra.mxu1 %v1476_v3 }
 0x276   : > { %2114 = vmatprep.subr.mxu1 %v1475_v4 }
 0x277   : > { %2115 = vmatpush3.msra.mxu1 %v1475_v4 }
 0x278   : > { %2116 = vmatprep.subr.mxu1 %v1474_v5 }
 0x279   : > { %2117 = vmatpush3.msra.mxu1 %v1474_v5 }
 0x27a   : > { %2118 = vmatprep.subr.mxu1 %v1473_v6 }
 0x27b   : > { %2119 = vmatpush3.msra.mxu1 %v1473_v6 }
 0x27c   : > { %2120 = vmatprep.subr.mxu1 %v1472_v7 }
 0x27d   : > { %2121 = vmatpush3.msra.mxu1 %v1472_v7 }
 0x27e   : > { %2122 = vmatprep.subr.mxu1 %v1471_v8 }
 0x27f   : > { %2123 = vmatpush3.msra.mxu1 %v1471_v8 }
 0x280   : > { %2124 = vmatprep.subr.mxu1 %v1470_v10 }
 0x281   : > { %2125 = vmatpush3.msra.mxu1 %v1470_v10 }
 0x282   : > { %2126 = vmatprep.subr.mxu1 %v1469_v41 }
 0x283   : > { %2127 = vmatpush3.msra.mxu1 %v1469_v41 }
 0x284   : > { %2128 = vmatprep.subr.mxu1 %v1468_v21 }
 0x285   : > { %2129 = vmatpush3.msra.mxu1 %v1468_v21 }
 0x286   : > { %2130 = vmatprep.subr.mxu1 %v1467_v22 }
 0x287   : > { %2131 = vmatpush3.msra.mxu1 %v1467_v22 }
 0x288   : > { %2132 = vmatprep.subr.mxu1 %v1466_v24 }
 0x289   : > { %2133 = vmatpush3.msra.mxu1 %v1466_v24 }
 0x303   : > { %v1954_v45 = vpop.f32.mrf.mxu0 }
 0x305   : > { %v1955_v51 = vpop.f32.mrf.mxu0 }
 0x306   : > { %v1956_v12 = vadd.f32 %v1955_v51, %v1954_v45 }
 0x308   : > { %v1957_v11 = vpop.f32.mrf.mxu0  ;;  %v1282_v50 = vadd.f32 %v1956_v12, %v1835_v13 }
 0x30a   : > { %v1958_v54 = vpop.f32.mrf.mxu0 }
 0x30b   : > { %v1959_v58 = vadd.f32 %v1958_v54, %v1957_v11 }
 0x30d   : > { %v1287_v14 = vadd.f32 %v1959_v58, %v1835_v13 }
 0x32a   : > { %v2066_v15 = vpop.f32.mrf.mxu1 }
 0x32b   : > { %v1362_v56 = vadd.f32 %v2066_v15, %v1287_v14 }
 0x32c   : > { %v1356_v16 = vpop.f32.mrf.mxu1 }
 0x32d   : > { %v1357_v18 = vadd.f32 %v1356_v16, %v1282_v50  ;;  %v1366_v39 = vmax.f32 %v1362_v56, 0.0 }
 0x32f   : > { %v1365_v20 = vmax.f32 %v1357_v18, 0.0 }
 0x331   : > { %2099 = vmatprep.mubr.f32.mxu0 %v1365_v20 }
 0x332   : > { %2100 = vmatmul.mubr.f32.vlgmr.msra.gmra.mxu0 %v1366_v39 }
 0x333   : > { %2138 = vmatpush3.msra.mxu0 %v1580_v25 }
 0x334   : > { %2139 = vmatprep.subr.mxu0 %v1579_v26 }
 0x335   : > { %2140 = vmatpush3.msra.mxu0 %v1579_v26 }
 0x336   : > { %2141 = vmatprep.subr.mxu0 %v1578_v27 }
 0x337   : > { %2142 = vmatpush3.msra.mxu0 %v1578_v27 }
 0x338   : > { %2143 = vmatprep.subr.mxu0 %v1577_v30 }
 0x339   : > { %2144 = vmatpush3.msra.mxu0 %v1577_v30 }
 0x33a   : > { %2145 = vmatprep.subr.mxu0 %v1576_v9 }
 0x33b   : > { %2146 = vmatpush3.msra.mxu0 %v1576_v9 }
 0x33c   : > { %2147 = vmatprep.subr.mxu0 %v1575_v19 }
 0x33d   : > { %2148 = vmatpush3.msra.mxu0 %v1575_v19 }
 0x33e   : > { %2149 = vmatprep.subr.mxu0 %v1574_v23 }
 0x33f   : > { %2150 = vmatpush3.msra.mxu0 %v1574_v23 }
 0x340   : > { %2151 = vmatprep.subr.mxu0 %v1573_v17 }
 0x341   : > { %2152 = vmatpush3.msra.mxu0 %v1573_v17 }
 0x342   : > { %2153 = vmatprep.subr.mxu0 %v1572_v28 }
 0x343   : > { %2154 = vmatpush3.msra.mxu0 %v1572_v28 }
 0x344   : > { %2155 = vmatprep.subr.mxu0 %v1571_v29 }
 0x345   : > { %2156 = vmatpush3.msra.mxu0 %v1571_v29 }
 0x346   : > { %2157 = vmatprep.subr.mxu0 %v1570_v31 }
 0x347   : > { %2158 = vmatpush3.msra.mxu0 %v1570_v31 }
 0x348   : > { %2159 = vmatprep.subr.mxu0 %v1569_v32 }
 0x349   : > { %2160 = vmatpush3.msra.mxu0 %v1569_v32 }
 0x34a   : > { %2161 = vmatprep.subr.mxu0 %v1568_v61 }
 0x34b   : > { %2162 = vmatpush3.msra.mxu0 %v1568_v61 }
 0x34c   : > { %2163 = vmatprep.subr.mxu0 %v1567_v42 }
 0x34d   : > { %2164 = vmatpush3.msra.mxu0 %v1567_v42 }
 0x34e   : > { %2165 = vmatprep.subr.mxu0 %v1566_v43 }
 0x34f   : > { %2166 = vmatpush3.msra.mxu0 %v1566_v43 }
 0x350   : > { %2167 = vmatprep.subr.mxu0 %v1565_v44 }
 0x351   : > { %2168 = vmatpush3.msra.mxu0 %v1565_v44 }
 0x3f2   : > { %v2101_v34 = vpop.f32.mrf.mxu0 }
 0x3f3   : > { %v1461_v35 = vadd.f32 %v2101_v34, %v1836_v33 }
 0x3f4   : > { %v1455_v36 = vpop.f32.mrf.mxu0 }
 0x3f5   : > { %v1456_v37 = vadd.f32 %v1836_v33, %v1455_v36  ;;  %v1465_v38 = vmax.f32 %v1461_v35, 0.0 }
 0x3f7   : > { %v1464_v40 = vmax.f32 %v1456_v37, 0.0 }
 0x3f9   : > { %2134 = vmatprep.mubr.f32.mxu1 %v1464_v40 }
 0x3fa   : > { %2135 = vmatmul.mubr.f32.vlgmr.msra.gmra.mxu1 %v1465_v38 }
 0x4ba   : > { %v2136_v47 = vpop.f32.mrf.mxu1 }
 0x4bb   : > { %v1560_v48 = vadd.f32 %v2136_v47, %v1837_v46 }
 0x4bc   : > { %v1554_v49 = vpop.f32.mrf.mxu1 }
 0x4bd   : > { %v1555_v52 = vadd.f32 %v1837_v46, %v1554_v49  ;;  %v1564_v55 = vmax.f32 %v1560_v48, 0.0 }
 0x4bf   : > { %v1563_v53 = vmax.f32 %v1555_v52, 0.0 }
 0x4c1   : > { %2169 = vmatprep.mubr.f32.mxu0 %v1563_v53 }
 0x4c2   : > { %2170 = vmatmul.mubr.f32.vlgmr.msra.gmra.mxu0 %v1564_v55 }
 0x582   : > { %v2171_v59 = vpop.f32.mrf.mxu0 }
 0x583   : > { %v1659_v60 = vadd.f32 %v2171_v59, %v1838_v57 }
 0x584   : > { %v1653_v62 = vpop.f32.mrf.mxu0 }
 0x585   : > { %v1663_v63 = vmax.f32 %v1659_v60, 0.0  ;;  %v1654_v1 = vadd.f32 %v1838_v57, %v1653_v62 }
 0x587   : > { %1665 = vst [vmem:[%s410_s25 + $0x8] sm:$0xff] %v1663_v63  ;;  %v1662_v2 = vmax.f32 %v1654_v1, 0.0 }
 0x589   : > { %1664 = vst [vmem:[%s410_s25] sm:$0xff] %v1662_v2 }
 0x58a   : > { %2485 = shalt.err (!%p2482_p3)
}
 0x58b   : > { %s2486_s21 = scalar_lea.hbm %s2926_s17, 256  ;;  %s2490_s23 = scalar_lea.hbm %s2977_s8, 512 }
 0x58c   : > { %p2487_p6 = scmp.ne.s32.totalorder %s2926_s17, %s2486_s21  ;;  %p2491_p11 = scmp.lt.s32.totalorder %s2926_s17, %s2977_s8 }
 0x58d   : > { %p2492_p7 = scmp.lt.s32.totalorder %s2490_s23, %s2486_s21 }
 0x58e   : > { %p2488_p10 = pnand %p2487_p6, %p3006_p5 }
 0x58f   : > { %p2493_p0 = por %p2492_p7, %p2491_p11 }
 0x590   : > { %p2489_p12 = pneg %p2488_p10 }
 0x592   : > { %p2494_p2 = pnand %p2493_p0, %p2489_p12 }
 0x594   : > { %2497 = shalt.err (!%p2494_p2)
}
 0x595   : > { %s2565_s13 = smov 128   ;;  %s2566_s24 = smov 8  }
 0x596   : > { %2198 = dma.vmem_to_hbm [thread:$0]  (%p3006_p5), %s2921_s12, 256, %s2926_s17, %s1667_s2, %s2565_s13, %s2565_s13, %s2566_s24  }
 0x597 PF: > { %s1695_s15 = sand.u32 1, %s2536_s27   ;;  %p3007_p8 = scmp.ne.s32.totalorder %s2994_s14, 0 }
 0x598   : > { %p3008_p9 = scmp.ge.s32.totalorder %s2548_s30, 2  ;;  %s1696_s11 = scalar_lea.sflag [#allocation4], %s1695_s15 }
 0x59a   : > { %p2224_p4 = pnand %p3008_p9, %p3007_p8 }
 0x59c   : > { %p2225_p13 = pneg %p2224_p4 }
 0x59e   : > { %2531 = dma.done.wait (%p2225_p13), %s1696_s11, 256  }
 0x59f   : > { %2533 = vsyncadd (%p2225_p13), %s1696_s11, 4294967040  ;;  %p24_p1 = scmp.ge.s32.totalorder %s2723_s18, 4   ;;  %s3009_s27 = smov %s2540_s28 }
 0x5a0   : > { %s3010_s28 = smov %s2544_s29  ;;  %s3011_s29 = smov %s2734_s9 }
 0x5a1   : > { %s3012_s30 = smov %s2723_s18  ;;  %26 = sbr.rel (!%p24_p1) target bundleno = 11 (0xb), region = 121 }
 0x5a6   :  { %1701 = vsyncpa [#allocation3], 1 }
 0x5a7   :  { %1703 = vsyncpa [#allocation3 + $0x1], 1 }
 0x5a8   :  { %1704 = vsyncpa [#allocation6], 1 }
 0x5a9   :  { %1705 = vsyncpa [#allocation9], 1 }
 0x5aa   :  { %1706 = vsyncpa [#allocation12], 1 }
 0x5ab   :  { %1707 = vsyncpa [#allocation4], 1 }
 0x5ac   :  { %1709 = vsyncpa [#allocation4 + $0x1], 1 }

// kernel: tpu_custom_call.1
= control target key start
LH: loop header
LB: loop body
LE: loop exit
PB: predicated region body
PF: predicated region fallthrough
CT: control target
= control target key end

     0   :  { %s2969_s0 = inlined_call_operand.hbm [shape: f32[32,64], index: 0, kind: input, shape index: {}]   ;;  %s2970_s1 = inlined_call_operand.hbm [shape: f32[64,512], index: 1, kind: input, shape index: {}]   ;;  %s2971_s2 = inlined_call_operand.hbm [shape: f32[512,384], index: 2, kind: input, shape index: {}]   ;;  %s2972_s3 = inlined_call_operand.hbm [shape: f32[384,128], index: 3, kind: input, shape index: {}]   ;;  %s2973_s4 = inlined_call_operand.hbm [shape: f32[128,128], index: 4, kind: input, shape index: {}]   ;;  %s2974_s5 = inlined_call_operand.hbm [shape: f32[128,128], index: 5, kind: input, shape index: {}]   ;;  %s2975_s6 = inlined_call_operand.hbm [shape: f32[128,128], index: 6, kind: input, shape index: {}]   ;;  %s2976_s7 = inlined_call_operand.vmem [shape: f32[1,1408], index: 7, kind: input, shape index: {}]   ;;  %s2977_s8 = inlined_call_operand.hbm [shape: f32[32,128], index: 8, kind: output, shape index: {}]  }
   0x1   :  { %2984 = sst [smem:[#allocation20_spill]] %s2970_s1 }
   0x2   :  { %2985 = sst [smem:[#allocation21_spill]] %s2971_s2 }
   0x3   :  { %13 = vsyncpa [#allocation3], 0 }
   0x4   :  { %15 = vsyncpa [#allocation3 + $0x1], 0 }
   0x5   :  { %16 = vsyncpa [#allocation6], 0 }
   0x6   :  { %17 = vsyncpa [#allocation9], 0 }
   0x7   :  { %18 = vsyncpa [#allocation12], 0 }
   0x8   :  { %19 = vsyncpa [#allocation4], 0 }
   0x9   :  { %21 = vsyncpa [#allocation4 + $0x1], 0  ;;  %s2612_s27 = smov 0   ;;  %s2614_s28 = smov 0  }
   0xa   :  { %s2616_s29 = smov 0   ;;  %s2618_s30 = smov 0  }
   0xb LB: > { %s2550_s9 = smov [#allocation5]   ;;  %s2633_s11 = sadd.s32 4294967295, %s2548_s30   ;;  %s2548_s30 = sphi %s2618_s30, %s3012_s30   ;;  %s2544_s29 = sphi %s2616_s29, %s3011_s29   ;;  %s2540_s28 = sphi %s2614_s28, %s3010_s28   ;;  %s2536_s27 = sphi %s2612_s27, %s3009_s27  }
   0xc   : > { %s243_s10 = sshll.u32 %s2550_s9, 4  ;;  %p1811_p0 = scmp.ge.s32.totalorder %s2548_s30, 1  ;;  %s244_s10 = int_to_ptr.vmem [resolvable:$true] %s243_s10 }
   0xd   : > { %p2980_p1 = scmp.eq.s32.totalorder %s2633_s11, 0  ;;  %p231_p2 = scmp.lt.s32.totalorder %s2548_s30, 3 }
   0xe   : > { %s2551_s13 = smov [#allocation8]   ;;  %s2552_s16 = smov [#allocation11]  }
   0xf   : > { %p2638_p3 = pnand %p1811_p0, %p231_p2  ;;  %s269_s14 = sshll.u32 %s2551_s13, 4  ;;  %s2651_s14 = int_to_ptr.vmem [resolvable:$true] %s269_s14 }
  0x10   : > { %s2653_s17 = sshll.u32 %s2552_s16, 4  ;;  %s2299_s19 = scalar_lea.vmem %s244_s10, 4096  ;;  %s296_s17 = int_to_ptr.vmem [resolvable:$true] %s2653_s17 }
  0x11   : > { %s2986_s12 = scalar_select %p2638_p3, 1, 0 }
  0x12   : > { %p2200_p5 = pneg %p2638_p3  ;;  %p2300_p8 = scmp.ne.s32.totalorder %s244_s10, %s2299_s19 }
  0x13   : > { %p2307_p11 = scmp.lt.s32.totalorder %s244_s10, %s244_s10  ;;  %p2308_p12 = scmp.lt.s32.totalorder %s2299_s19, %s2299_s19 }
  0x14   : > { %p2647_p6 = pnand %p2200_p5, %p2980_p1 }
  0x15   : > { %p2309_p13 = por %p2308_p12, %p2307_p11 }
  0x16   : > { %p2657_p7 = pneg %p2647_p6 }
  0x18   : > { %p2302_p9 = pnand %p2300_p8, %p2657_p7 }
  0x1a   : > { %p2303_p10 = pneg %p2302_p9 }
  0x1c   : > { %p2310_p0 = pnand %p2309_p13, %p2303_p10 }
  0x1e   : > { %2313 = shalt.err (!%p2310_p0)
}
  0x1f   : > { %s2553_s20 = smov 512   ;;  %s2554_s21 = smov 32  }
  0x20   : > { %s2989_s1 = sld [smem:[#allocation20_spill]]  ;;  %s2325_s24 = scalar_lea.vmem %s2651_s14, 6144 }
  0x21   : > { %p2326_p2 = scmp.ne.s32.totalorder %s2651_s14, %s2325_s24  ;;  %p2333_p9 = scmp.lt.s32.totalorder %s2651_s14, %s2651_s14 }
  0x22   : > { %p2334_p10 = scmp.lt.s32.totalorder %s2325_s24, %s2325_s24 }
  0x23   : > { %p2328_p5 = pnand %p2326_p2, %p2657_p7 }
  0x24   : > { %p2335_p11 = por %p2334_p10, %p2333_p9 }
  0x25   : > { %p2329_p8 = pneg %p2328_p5 }
  0x26   : > { %2203 = dma.hbm_to_vmem [thread:$0]  (!%p2647_p6), %s2989_s1, 4096, %s244_s10, [#allocation6], %s2553_s20, %s2553_s20, %s2554_s21  }
  0x27   : > { %p2336_p12 = pnand %p2335_p11, %p2329_p8 }
  0x29   : > { %2339 = shalt.err (!%p2336_p12)
}
  0x2a   : > { %s2978_s25 = smov 128   ;;  %s2979_s26 = smov 8  }
  0x2b   : > { %2209 = dma.hbm_to_vmem [thread:$0]  (!%p2647_p6), %s2972_s3, 6144, %s2651_s14, [#allocation9], %s2978_s25, %s2978_s25, %s2979_s26  }
  0x2c   : > { %s2351_s13 = scalar_lea.vmem %s296_s17, 2048  ;;  %p2359_p5 = scmp.lt.s32.totalorder %s296_s17, %s296_s17 }
  0x2d   : > { %p2352_p13 = scmp.ne.s32.totalorder %s296_s17, %s2351_s13  ;;  %p2360_p8 = scmp.lt.s32.totalorder %s2351_s13, %s2351_s13 }
  0x2f   : > { %p2354_p0 = pnand %p2352_p13, %p2657_p7  ;;  %p2361_p9 = por %p2360_p8, %p2359_p5 }
  0x31   : > { %p2355_p2 = pneg %p2354_p0 }
  0x33   : > { %p2362_p10 = pnand %p2361_p9, %p2355_p2 }
  0x35   : > { %2365 = shalt.err (!%p2362_p10)
}
  0x36   : > { %2215 = dma.hbm_to_vmem [thread:$0]  (!%p2647_p6), %s2974_s5, 2048, %s296_s17, [#allocation12], %s2978_s25, %s2978_s25, %s2979_s26  }
  0x37   : > { %s2557_s14 = smov [#allocation7]  }
  0x38   : > { %s256_s20 = sshll.u32 %s2557_s14, 4  ;;  %s257_s20 = int_to_ptr.vmem [resolvable:$true] %s256_s20 }
  0x39   : > { %s2377_s21 = scalar_lea.vmem %s257_s20, 24576  ;;  %p2385_p0 = scmp.lt.s32.totalorder %s257_s20, %s257_s20 }
  0x3a   : > { %p2378_p11 = scmp.ne.s32.totalorder %s257_s20, %s2377_s21  ;;  %p2386_p2 = scmp.lt.s32.totalorder %s2377_s21, %s2377_s21 }
  0x3c   : > { %p2380_p12 = pnand %p2378_p11, %p2657_p7  ;;  %p2387_p5 = por %p2386_p2, %p2385_p0 }
  0x3e   : > { %p2381_p13 = pneg %p2380_p12 }
  0x40   : > { %p2388_p8 = pnand %p2387_p5, %p2381_p13 }
  0x42   : > { %2391 = shalt.err (!%p2388_p8)
}
  0x43   : > { %s2558_s22 = smov 384   ;;  %s2559_s23 = smov 24  }
  0x44   : > { %s2990_s2 = sld [smem:[#allocation21_spill]]  ;;  %s2560_s9 = smov [#allocation10]  }
  0x45   : > { %s282_s10 = sshll.u32 %s2560_s9, 4  ;;  %s2561_s13 = smov [#allocation13]   ;;  %s283_s10 = int_to_ptr.vmem [resolvable:$true] %s282_s10 }
  0x46   : > { %s308_s16 = sshll.u32 %s2561_s13, 4  ;;  %s2403_s19 = scalar_lea.vmem %s283_s10, 2048  ;;  %s309_s16 = int_to_ptr.vmem [resolvable:$true] %s308_s16 }
  0x47   : > { %p2404_p9 = scmp.ne.s32.totalorder %s283_s10, %s2403_s19  ;;  %p2411_p12 = scmp.lt.s32.totalorder %s283_s10, %s283_s10 }
  0x48   : > { %p2412_p13 = scmp.lt.s32.totalorder %s2403_s19, %s2403_s19 }
  0x49   : > { %p2406_p10 = pnand %p2404_p9, %p2657_p7 }
  0x4a   : > { %2206 = dma.hbm_to_vmem [thread:$0]  (!%p2647_p6), %s2990_s2, 24576, %s257_s20, [#allocation6], %s2558_s22, %s2558_s22, %s2559_s23  }
  0x4b   : > { %p2407_p11 = pneg %p2406_p10  ;;  %p2413_p0 = por %p2412_p13, %p2411_p12 }
  0x4d   : > { %p2414_p2 = pnand %p2413_p0, %p2407_p11 }
  0x4f   : > { %2417 = shalt.err (!%p2414_p2)
}
  0x50   : > { %2212 = dma.hbm_to_vmem [thread:$0]  (!%p2647_p6), %s2973_s4, 2048, %s283_s10, [#allocation9], %s2978_s25, %s2978_s25, %s2979_s26  }
  0x51   : > { %s2429_s21 = scalar_lea.vmem %s309_s16, 2048  ;;  %p2437_p10 = scmp.lt.s32.totalorder %s309_s16, %s309_s16 }
  0x52   : > { %p2430_p5 = scmp.ne.s32.totalorder %s309_s16, %s2429_s21  ;;  %p2438_p4 = scmp.lt.s32.totalorder %s2429_s21, %s2429_s21 }
  0x54   : > { %p2432_p8 = pnand %p2430_p5, %p2657_p7  ;;  %p2439_p12 = por %p2438_p4, %p2437_p10 }
  0x56   : > { %p2433_p9 = pneg %p2432_p8 }
  0x58   : > { %p2440_p11 = pnand %p2439_p12, %p2433_p9 }
  0x5a   : > { %2443 = shalt.err (!%p2440_p11)
}
  0x5b   : > { %2218 = dma.hbm_to_vmem [thread:$0]  (!%p2647_p6), %s2975_s6, 2048, %s309_s16, [#allocation12], %s2978_s25, %s2978_s25, %s2979_s26  }
  0x5c   : > { %s1810_s15 = sadd.s32 4294967294, %s2548_s30   ;;  %s2723_s18 = sadd.s32 1, %s2548_s30  }
  0x5d   : > { %s31_s24 = ssub.s32 %s2548_s30, %s2723_s18  ;;  %s34_s17 = sadd.s32 1, %s2544_s29 }
  0x5e   : > { %p32_p4 = scmp.eq.s32.totalorder %s31_s24, 0  ;;  %p41_p7 = scmp.ne.s32.totalorder %s2544_s29, %s2540_s28 }
  0x5f   : > { %p42_p13 = scmp.eq.s32.totalorder %s2548_s30, 0  ;;  %p47_p0 = scmp.ne.s32.totalorder %s2540_s28, %s2536_s27 }
  0x60   : > { %s2734_s9 = scalar_select %p32_p4, %s2544_s29, %s34_s17  }
  0x61   : > { %p2736_p2 = por %p42_p13, %p41_p7  ;;  %p2742_p6 = por %p2980_p1, %p47_p0 }
  0x62   : > { %p218_p5 = scmp.eq.s32.totalorder %s2633_s11, 1  ;;  %p224_p8 = scmp.eq.s32.totalorder %s1810_s15, 1 }
  0x63   : > { %s2992_s13 = scalar_select %p2742_p6, 1, 0 }
  0x64   : > { %p2233_p9 = scmp.lt.s32.totalorder %s2548_s30, 2  ;;  %s325_s16 = sand.u32 1, %s2544_s29  }
  0x65   : > { %p2749_p10 = por %p218_p5, %p41_p7  ;;  %p2753_p12 = por %p224_p8, %p47_p0 }
  0x66   : > { %s1819_s20 = sshll.u32 %s325_s16, 4  ;;  %s1844_s21 = sshll.u32 %s2548_s30, 8 }
  0x67   : > { %s2993_s19 = scalar_select %p2749_p10, 1, 0 }
  0x68   : > { %s2994_s14 = scalar_select %p2753_p12, 1, 0 }
  0x69   : > { %s2761_s24 = scalar_lea.hbm %s2969_s0, %s1844_s21  ;;  %s329_s15 = scalar_lea.vmem [#allocation2], %s1819_s20 }
  0x6a   : > { %s336_s17 = sshll.u32 %s329_s15, 4  ;;  %p2767_p11 = pnand %p2233_p9, %p2736_p2  ;;  %s2763_s17 = int_to_ptr.vmem [resolvable:$true] %s336_s17 }
  0x6b   : > { %s2771_s26 = scalar_lea.sflag [#allocation3], %s325_s16  ;;  %s2444_s1 = scalar_lea.hbm %s2761_s24, 256 }
  0x6c   : > { %p2445_p4 = scmp.ne.s32.totalorder %s2761_s24, %s2444_s1  ;;  %p2446_p7 = pneg %p2767_p11 }
  0x6d   : > { %s2449_s20 = scalar_lea.hbm %s2969_s0, 512  ;;  %p2450_p2 = scmp.lt.s32.totalorder %s2761_s24, %s2969_s0 }
  0x6e   : > { %p2447_p13 = pnand %p2446_p7, %p2445_p4  ;;  %p2451_p5 = scmp.lt.s32.totalorder %s2449_s20, %s2444_s1 }
  0x70   : > { %p2448_p0 = pneg %p2447_p13  ;;  %p2452_p8 = por %p2451_p5, %p2450_p2 }
  0x72   : > { %p2453_p9 = pnand %p2452_p8, %p2448_p0 }
  0x74   : > { %2456 = shalt.err (!%p2453_p9)
}
  0x75   : > { %s2457_s10 = scalar_lea.vmem %s2763_s17, 256  ;;  %s2562_s16 = smov [#allocation2]  }
  0x76   : > { %p2458_p1 = scmp.ne.s32.totalorder %s2763_s17, %s2457_s10  ;;  %s2462_s2 = sshll.u32 %s2562_s16, 4  ;;  %s2463_s2 = int_to_ptr.vmem [resolvable:$false] %s2462_s2 }
  0x77   : > { %s2464_s21 = scalar_lea.vmem %s2463_s2, 512  ;;  %p2465_p13 = scmp.lt.s32.totalorder %s2763_s17, %s2463_s2 }
  0x78   : > { %p2460_p12 = pnand %p2458_p1, %p2446_p7  ;;  %p2466_p10 = scmp.lt.s32.totalorder %s2464_s21, %s2457_s10 }
  0x7a   : > { %p2461_p4 = pneg %p2460_p12  ;;  %p2467_p6 = por %p2466_p10, %p2465_p13 }
  0x7c   : > { %p2468_p3 = pnand %p2467_p6, %p2461_p4 }
  0x7e   : > { %2471 = shalt.err (!%p2468_p3)
}
  0x7f   : > { %s2996_s1 = smov 8   ;;  %s2997_s22 = smov 128  }
  0x80   : > { %2222 = dma.hbm_to_vmem [thread:$0]  (!%p2767_p11), %s2761_s24, 256, %s2763_s17, %s2771_s26, %s2997_s22, %s2997_s22, %s2996_s1  }
  0x81   : > { %p2998_p1 = scmp.ne.s32.totalorder %s2986_s12, 0 }
  0x82   : > { %s2798_s20 = sand.u32 (!%p2998_p1), 1, %s2540_s28   ;;  %p2999_p3 = scmp.ne.s32.totalorder (!%p2998_p1), %s2992_s13, 0 }
  0x83   : > { %348 = sbr.rel (%p2998_p1) target bundleno = 1431 (0x597), region = 52  ;;  %s1823_s2 = sshll.u32 (!%p2998_p1), %s2798_s20, 4 }
  0x84   : > { %s351_s23 = scalar_lea.sflag (!%p2998_p1), [#allocation3], %s2798_s20  ;;  %s2804_s25 = scalar_lea.vmem (!%p2998_p1), [#allocation2], %s1823_s2 }
  0x88   : > { %2515 = dma.done.wait (%p2999_p3), %s351_s23, 256  }
  0x89   : > { %2517 = vsyncadd (%p2999_p3), %s351_s23, 4294967040  ;;  %p3000_p6 = scmp.eq.s32.totalorder %s2633_s11, 0 }
  0x8b   : > { %2519 = dma.done.wait (%p3000_p6), [#allocation6], 28672   ;;  %p3001_p10 = pmov %p3000_p6 }
  0x8c   : > { %p3002_p12 = pmov %p3000_p6 }
  0x8d   : > { %2521 = vsyncadd (%p3001_p10), [#allocation6], 4294938624 }
  0x8e   : > { %2523 = dma.done.wait (%p3002_p12), [#allocation9], 8192   ;;  %p3003_p11 = pmov %p3000_p6 }
  0x8f   : > { %p3004_p7 = pmov %p3000_p6 }
  0x90   : > { %2525 = vsyncadd (%p3003_p11), [#allocation9], 4294959104 }
  0x91   : > { %2527 = dma.done.wait (%p3004_p7), [#allocation12], 4096   ;;  %p3005_p0 = pmov %p3000_p6 }
  0x92   : > { %v2563_v0 = vmov 0.0   ;;  %v450_v1 = vld [vmem:[#allocation5 + $0xe8] sm:$0xff]  ;;  %v449_v2 = vld [vmem:[#allocation5 + $0xe0] sm:$0xff]  ;;  %v689_v15 = vld [vmem:[#allocation7 + $0x170] sm:$0xff]  ;;  %vm474_vm0 = vcmask 523264   ;;  %s1845_s26 = sshll.u32 %s2633_s11, 8 }
  0x93   : > { %2529 = vsyncadd (%p3005_p0), [#allocation12], 4294963200  ;;  %545 = vmatprep.mubr.f32.mxu1 %v2563_v0  ;;  %v446_v3 = vld [vmem:[#allocation5 + $0xc8] sm:$0xff]  ;;  %497 = vmatprep.subr.mxu1 %v450_v1  ;;  %v445_v4 = vld [vmem:[#allocation5 + $0xc0] sm:$0xff]  ;;  %s2926_s17 = scalar_lea.hbm %s2977_s8, %s1845_s26  ;;  %p3006_p5 = scmp.ne.s32.totalorder %s2993_s19, 0 }
  0x94   : > { %498 = vmatpush1.msra.mxu1 %v449_v2  ;;  %v442_v5 = vld [vmem:[#allocation5 + $0xa8] sm:$0xff]  ;;  %v441_v6 = vld [vmem:[#allocation5 + $0xa0] sm:$0xff]  ;;  %851 = vmatprep.subr.mxu0 %v689_v15  ;;  %v686_v18 = vld [vmem:[#allocation7 + $0x158] sm:$0xff]  ;;  %s2564_s11 = smov [#allocation14]  }
  0x95   : > { %499 = vmatprep.subr.mxu1 %v446_v3  ;;  %v438_v7 = vld [vmem:[#allocation5 + $0x88] sm:$0xff]  ;;  %v437_v8 = vld [vmem:[#allocation5 + $0x80] sm:$0xff]  ;;  %v685_v19 = vld [vmem:[#allocation7 + $0x150] sm:$0xff]  ;;  %s2476_s10 = sshll.u32 %s2564_s11, 4  ;;  %s2477_s10 = int_to_ptr.vmem [resolvable:$false] %s2476_s10 }
  0x96   : > { %500 = vmatpush1.msra.mxu1 %v445_v4  ;;  %v434_v9 = vld [vmem:[#allocation5 + $0x68] sm:$0xff]  ;;  %v433_v10 = vld [vmem:[#allocation5 + $0x60] sm:$0xff]  ;;  %v452_v23 = vld [vmem:[#allocation5 + $0xf8] sm:$0xff]  ;;  %s2478_s16 = scalar_lea.vmem %s2477_s10, 512 }
  0x97   : > { %501 = vmatprep.subr.mxu1 %v442_v5  ;;  %v430_v11 = vld [vmem:[#allocation5 + $0x48] sm:$0xff]  ;;  %v429_v12 = vld [vmem:[#allocation5 + $0x40] sm:$0xff]  ;;  %v451_v24 = vld [vmem:[#allocation5 + $0xf0] sm:$0xff] }
  0x98   : > { %502 = vmatpush1.msra.mxu1 %v441_v6  ;;  %v426_v13 = vld [vmem:[#allocation5 + $0x28] sm:$0xff]  ;;  %v425_v14 = vld [vmem:[#allocation5 + $0x20] sm:$0xff]  ;;  %v448_v25 = vld [vmem:[#allocation5 + $0xd8] sm:$0xff] }
  0x99   : > { %503 = vmatprep.subr.mxu1 %v438_v7  ;;  %v688_v16 = vld [vmem:[#allocation7 + $0x168] sm:$0xff]  ;;  %v421_v20 = vld [vmem:[#allocation5] sm:$0xff]  ;;  %v682_v26 = vld [vmem:[#allocation7 + $0x138] sm:$0xff] }
  0x9a   : > { %504 = vmatpush1.msra.mxu1 %v437_v8  ;;  %v422_v17 = vld [vmem:[#allocation5 + $0x8] sm:$0xff]  ;;  %852 = vmatpush1.msra.mxu0 %v688_v16  ;;  %v683_v21 = vld [vmem:[#allocation7 + $0x140] sm:$0xff]  ;;  %v447_v27 = vld [vmem:[#allocation5 + $0xd0] sm:$0xff] }
  0x9b   : > { %505 = vmatprep.subr.mxu1 %v434_v9  ;;  %v2824_v22 = vld [vmem:[%s2804_s25] sm:$0xff]  ;;  %853 = vmatprep.subr.mxu0 %v686_v18  ;;  %v680_v28 = vld [vmem:[#allocation7 + $0x128] sm:$0xff]  ;;  %v444_v30 = vld [vmem:[#allocation5 + $0xb8] sm:$0xff] }
  0x9c   : > { %506 = vmatpush1.msra.mxu1 %v433_v10  ;;  %854 = vmatpush1.msra.mxu0 %v685_v19  ;;  %v2830_v29 = vld [vmem:[%s2804_s25 + $0x8] sm:$0xff]  ;;  %v443_v31 = vld [vmem:[#allocation5 + $0xb0] sm:$0xff]  ;;  %v679_v33 = vld [vmem:[#allocation7 + $0x120] sm:$0xff]  ;;  %s410_s25 = scalar_lea.vmem [#allocation14], %s1823_s2  ;;  %s1667_s2 = scalar_lea.sflag [#allocation4], %s2798_s20 }
  0x9d   : > { %507 = vmatprep.subr.mxu1 %v430_v11  ;;  %855 = vmatprep.subr.mxu0 %v683_v21  ;;  %v440_v32 = vld [vmem:[#allocation5 + $0x98] sm:$0xff]  ;;  %v439_v34 = vld [vmem:[#allocation5 + $0x90] sm:$0xff]  ;;  %v676_v37 = vld [vmem:[#allocation7 + $0x108] sm:$0xff]  ;;  %s1680_s12 = sshll.u32 %s410_s25, 4  ;;  %s2921_s12 = int_to_ptr.vmem [resolvable:$true] %s1680_s12 }
  0x9e   : > { %508 = vmatpush1.msra.mxu1 %v429_v12  ;;  %856 = vmatpush1.msra.mxu0 %v682_v26  ;;  %v677_v35 = vld [vmem:[#allocation7 + $0x110] sm:$0xff]  ;;  %v436_v36 = vld [vmem:[#allocation5 + $0x78] sm:$0xff]  ;;  %v671_v43 = vld [vmem:[#allocation7 + $0xe0] sm:$0xff]  ;;  %s2472_s15 = scalar_lea.vmem %s2921_s12, 256  ;;  %p2479_p4 = scmp.lt.s32.totalorder %s2921_s12, %s2477_s10 }
  0x9f   : > { %509 = vmatprep.subr.mxu1 %v426_v13  ;;  %857 = vmatprep.subr.mxu0 %v680_v28  ;;  %v435_v38 = vld [vmem:[#allocation5 + $0x70] sm:$0xff]  ;;  %v674_v39 = vld [vmem:[#allocation7 + $0xf8] sm:$0xff]  ;;  %v668_v47 = vld [vmem:[#allocation7 + $0xc8] sm:$0xff]  ;;  %p2473_p2 = scmp.ne.s32.totalorder %s2921_s12, %s2472_s15  ;;  %p2480_p13 = scmp.lt.s32.totalorder %s2478_s16, %s2472_s15 }
  0xa0   : > { %510 = vmatpush1.msra.mxu1 %v425_v14  ;;  %858 = vmatpush1.msra.mxu0 %v679_v33  ;;  %v432_v40 = vld [vmem:[#allocation5 + $0x58] sm:$0xff]  ;;  %v673_v41 = vld [vmem:[#allocation7 + $0xf0] sm:$0xff]  ;;  %v667_v49 = vld [vmem:[#allocation7 + $0xc0] sm:$0xff] }
  0xa1   : > { %511 = vmatprep.subr.mxu1 %v422_v17  ;;  %859 = vmatprep.subr.mxu0 %v677_v35  ;;  %v431_v42 = vld [vmem:[#allocation5 + $0x50] sm:$0xff]  ;;  %v428_v44 = vld [vmem:[#allocation5 + $0x38] sm:$0xff]  ;;  %v664_v53 = vld [vmem:[#allocation7 + $0xa8] sm:$0xff]  ;;  %p2474_p8 = pnand %p2473_p2, %p3006_p5  ;;  %p2481_p1 = por %p2480_p13, %p2479_p4 }
  0xa2   : > { %512 = vmatpush1.msra.mxu1 %v421_v20  ;;  %860 = vmatpush1.msra.mxu0 %v676_v37  ;;  %v670_v45 = vld [vmem:[#allocation7 + $0xd8] sm:$0xff]  ;;  %v427_v46 = vld [vmem:[#allocation5 + $0x30] sm:$0xff]  ;;  %v784_v54 = vld [vmem:[#allocation7 + $0x468] sm:$0xff] }
  0xa3   : > { %1831 = vmatmul.mubr.msk.f32.vlgmr.msra.gmra.mxu1 %vm474_vm0, %v2824_v22  ;;  %574 = vmatprep.subr.mxu1 %v452_v23  ;;  %v424_v48 = vld [vmem:[#allocation5 + $0x18] sm:$0xff]  ;;  %v423_v50 = vld [vmem:[#allocation5 + $0x10] sm:$0xff]  ;;  %v659_v58 = vld [vmem:[#allocation7 + $0x80] sm:$0xff]  ;;  %p2475_p9 = pneg %p2474_p8 }
  0xa4   : > { %575 = vmatpush1.msra.mxu1 %v451_v24  ;;  %551 = vmatprep.mubr.f32.mxu1 %v2563_v0  ;;  %v665_v51 = vld [vmem:[#allocation7 + $0xb0] sm:$0xff]  ;;  %v662_v55 = vld [vmem:[#allocation7 + $0x98] sm:$0xff]  ;;  %v779_v61 = vld [vmem:[#allocation7 + $0x440] sm:$0xff] }
  0xa5   : > { %576 = vmatprep.subr.mxu1 %v448_v25  ;;  %861 = vmatprep.subr.mxu0 %v674_v39  ;;  %v785_v52 = vld [vmem:[#allocation7 + $0x470] sm:$0xff]  ;;  %v782_v56 = vld [vmem:[#allocation7 + $0x458] sm:$0xff]  ;;  %v656_v62 = vld [vmem:[#allocation7 + $0x68] sm:$0xff]  ;;  %p2482_p3 = pnand %p2481_p1, %p2475_p9 }
  0xa6   : > { %577 = vmatpush1.msra.mxu1 %v447_v27  ;;  %862 = vmatpush1.msra.mxu0 %v673_v41  ;;  %v661_v57 = vld [vmem:[#allocation7 + $0x90] sm:$0xff]  ;;  %v658_v60 = vld [vmem:[#allocation7 + $0x78] sm:$0xff]  ;;  %v655_v1 = vld [vmem:[#allocation7 + $0x60] sm:$0xff] }
  0xa7   : > { %1832 = vmatmul.mubr.msk.f32.gmra.mxu1 %vm474_vm0, %v2830_v29  ;;  %578 = vmatprep.subr.mxu1 %v444_v30  ;;  %v781_v59 = vld [vmem:[#allocation7 + $0x450] sm:$0xff]  ;;  %v778_v63 = vld [vmem:[#allocation7 + $0x438] sm:$0xff]  ;;  %v776_v2 = vld [vmem:[#allocation7 + $0x428] sm:$0xff] }
  0xa8   : > { %579 = vmatpush1.msra.mxu1 %v443_v31  ;;  %622 = vmatprep.mubr.f32.mxu1 %v2563_v0  ;;  %v775_v3 = vld [vmem:[#allocation7 + $0x420] sm:$0xff]  ;;  %v652_v4 = vld [vmem:[#allocation7 + $0x48] sm:$0xff]  ;;  %v773_v5 = vld [vmem:[#allocation7 + $0x410] sm:$0xff] }
  0xa9   : > { %580 = vmatprep.subr.mxu1 %v440_v32  ;;  %863 = vmatprep.subr.mxu0 %v671_v43  ;;  %v650_v6 = vld [vmem:[#allocation7 + $0x38] sm:$0xff]  ;;  %v772_v7 = vld [vmem:[#allocation7 + $0x408] sm:$0xff]  ;;  %v649_v8 = vld [vmem:[#allocation7 + $0x30] sm:$0xff] }
  0xaa   : > { %581 = vmatpush1.msra.mxu1 %v439_v34  ;;  %864 = vmatpush1.msra.mxu0 %v670_v45  ;;  %v770_v9 = vld [vmem:[#allocation7 + $0x3f8] sm:$0xff]  ;;  %v647_v10 = vld [vmem:[#allocation7 + $0x20] sm:$0xff]  ;;  %v769_v11 = vld [vmem:[#allocation7 + $0x3f0] sm:$0xff] }
  0xab   : > { %582 = vmatprep.subr.mxu1 %v436_v36  ;;  %865 = vmatprep.subr.mxu0 %v668_v47  ;;  %v646_v12 = vld [vmem:[#allocation7 + $0x18] sm:$0xff]  ;;  %v767_v13 = vld [vmem:[#allocation7 + $0x3e0] sm:$0xff]  ;;  %v644_v14 = vld [vmem:[#allocation7 + $0x8] sm:$0xff] }
  0xac   : > { %583 = vmatpush1.msra.mxu1 %v435_v38  ;;  %866 = vmatpush1.msra.mxu0 %v667_v49  ;;  %v766_v15 = vld [vmem:[#allocation7 + $0x3d8] sm:$0xff]  ;;  %v643_v16 = vld [vmem:[#allocation7] sm:$0xff]  ;;  %v764_v17 = vld [vmem:[#allocation7 + $0x3c8] sm:$0xff] }
  0xad   : > { %584 = vmatprep.subr.mxu1 %v432_v40  ;;  %867 = vmatprep.subr.mxu0 %v665_v51  ;;  %v737_v18 = vld [vmem:[#allocation7 + $0x2f0] sm:$0xff]  ;;  %v763_v19 = vld [vmem:[#allocation7 + $0x3c0] sm:$0xff]  ;;  %v736_v20 = vld [vmem:[#allocation7 + $0x2e8] sm:$0xff] }
  0xae   : > { %585 = vmatpush1.msra.mxu1 %v431_v42  ;;  %868 = vmatpush1.msra.mxu0 %v664_v53  ;;  %v761_v21 = vld [vmem:[#allocation7 + $0x3b0] sm:$0xff]  ;;  %v760_v23 = vld [vmem:[#allocation7 + $0x3a8] sm:$0xff]  ;;  %v758_v25 = vld [vmem:[#allocation7 + $0x398] sm:$0xff] }
  0xaf   : > { %586 = vmatprep.subr.mxu1 %v428_v44  ;;  %869 = vmatprep.subr.mxu0 %v662_v55  ;;  %v733_v24 = vld [vmem:[#allocation7 + $0x2d0] sm:$0xff]  ;;  %v731_v26 = vld [vmem:[#allocation7 + $0x2c0] sm:$0xff]  ;;  %v730_v28 = vld [vmem:[#allocation7 + $0x2b8] sm:$0xff] }
  0xb0   : > { %587 = vmatpush1.msra.mxu1 %v427_v46  ;;  %870 = vmatpush1.msra.mxu0 %v661_v57  ;;  %v757_v27 = vld [vmem:[#allocation7 + $0x390] sm:$0xff]  ;;  %v728_v30 = vld [vmem:[#allocation7 + $0x2a8] sm:$0xff]  ;;  %v754_v31 = vld [vmem:[#allocation7 + $0x378] sm:$0xff] }
  0xb1   : > { %588 = vmatprep.subr.mxu1 %v424_v48  ;;  %871 = vmatprep.subr.mxu0 %v659_v58  ;;  %v727_v32 = vld [vmem:[#allocation7 + $0x2a0] sm:$0xff]  ;;  %v752_v33 = vld [vmem:[#allocation7 + $0x368] sm:$0xff]  ;;  %v725_v34 = vld [vmem:[#allocation7 + $0x290] sm:$0xff] }
  0xb2   : > { %589 = vmatpush1.msra.mxu1 %v423_v50  ;;  %872 = vmatpush1.msra.mxu0 %v658_v60  ;;  %v751_v35 = vld [vmem:[#allocation7 + $0x360] sm:$0xff]  ;;  %v724_v36 = vld [vmem:[#allocation7 + $0x288] sm:$0xff]  ;;  %v749_v37 = vld [vmem:[#allocation7 + $0x350] sm:$0xff] }
  0xb3   : > { %1833 = vmatmul.mubr.msk.f32.vlgmr.msra.gmra.mxu1 %vm474_vm0, %v2824_v22  ;;  %928 = vmatprep.subr.mxu1 %v785_v52  ;;  %v734_v22 = vld [vmem:[#allocation7 + $0x2d8] sm:$0xff]  ;;  %v748_v39 = vld [vmem:[#allocation7 + $0x348] sm:$0xff]  ;;  %v721_v40 = vld [vmem:[#allocation7 + $0x270] sm:$0xff] }
  0xb4   : > { %628 = vmatprep.mubr.f32.mxu1 %v2563_v0  ;;  %929 = vmatpush1.msra.mxu1 %v784_v54  ;;  %v653_v0 = vld [vmem:[#allocation7 + $0x50] sm:$0xff]  ;;  %v722_v38 = vld [vmem:[#allocation7 + $0x278] sm:$0xff]  ;;  %v719_v42 = vld [vmem:[#allocation7 + $0x260] sm:$0xff] }
  0xb5   : > { %930 = vmatprep.subr.mxu1 %v782_v56  ;;  %873 = vmatprep.subr.mxu0 %v656_v62  ;;  %v746_v41 = vld [vmem:[#allocation7 + $0x338] sm:$0xff]  ;;  %v745_v43 = vld [vmem:[#allocation7 + $0x330] sm:$0xff]  ;;  %v743_v45 = vld [vmem:[#allocation7 + $0x320] sm:$0xff] }
  0xb6   : > { %931 = vmatpush1.msra.mxu1 %v781_v59  ;;  %874 = vmatpush1.msra.mxu0 %v655_v1  ;;  %v718_v44 = vld [vmem:[#allocation7 + $0x258] sm:$0xff]  ;;  %v716_v46 = vld [vmem:[#allocation7 + $0x248] sm:$0xff]  ;;  %v715_v48 = vld [vmem:[#allocation7 + $0x240] sm:$0xff] }
  0xb7   : > { %1834 = vmatmul.mubr.msk.f32.gmra.mxu1 %vm474_vm0, %v2830_v29  ;;  %932 = vmatprep.subr.mxu1 %v779_v61  ;;  %v755_v29 = vld [vmem:[#allocation7 + $0x380] sm:$0xff]  ;;  %v742_v47 = vld [vmem:[#allocation7 + $0x318] sm:$0xff]  ;;  %v740_v49 = vld [vmem:[#allocation7 + $0x308] sm:$0xff] }
  0xb8   : > { %933 = vmatpush1.msra.mxu1 %v778_v63  ;;  %875 = vmatprep.subr.mxu0 %v653_v0  ;;  %v713_v50 = vld [vmem:[#allocation7 + $0x230] sm:$0xff]  ;;  %v739_v51 = vld [vmem:[#allocation7 + $0x300] sm:$0xff]  ;;  %v712_v52 = vld [vmem:[#allocation7 + $0x228] sm:$0xff] }
  0xb9   : > { %934 = vmatprep.subr.mxu1 %v776_v2  ;;  %876 = vmatpush1.msra.mxu0 %v652_v4  ;;  %v833_v53 = vld [vmem:[#allocation7 + $0x5f0] sm:$0xff]  ;;  %v710_v54 = vld [vmem:[#allocation7 + $0x218] sm:$0xff]  ;;  %v832_v55 = vld [vmem:[#allocation7 + $0x5e8] sm:$0xff] }
  0xba   : > { %935 = vmatpush1.msra.mxu1 %v775_v3  ;;  %877 = vmatprep.subr.mxu0 %v650_v6  ;;  %v709_v56 = vld [vmem:[#allocation7 + $0x210] sm:$0xff]  ;;  %v830_v57 = vld [vmem:[#allocation7 + $0x5d8] sm:$0xff]  ;;  %v707_v58 = vld [vmem:[#allocation7 + $0x200] sm:$0xff] }
  0xbb   : > { %936 = vmatprep.subr.mxu1 %v773_v5  ;;  %878 = vmatpush1.msra.mxu0 %v649_v8  ;;  %v829_v59 = vld [vmem:[#allocation7 + $0x5d0] sm:$0xff]  ;;  %v706_v60 = vld [vmem:[#allocation7 + $0x1f8] sm:$0xff]  ;;  %v827_v61 = vld [vmem:[#allocation7 + $0x5c0] sm:$0xff] }
  0xbc   : > { %937 = vmatpush1.msra.mxu1 %v772_v7  ;;  %879 = vmatprep.subr.mxu0 %v647_v10  ;;  %v704_v62 = vld [vmem:[#allocation7 + $0x1e8] sm:$0xff]  ;;  %v826_v63 = vld [vmem:[#allocation7 + $0x5b8] sm:$0xff]  ;;  %v703_v1 = vld [vmem:[#allocation7 + $0x1e0] sm:$0xff] }
  0xbd   : > { %938 = vmatprep.subr.mxu1 %v770_v9  ;;  %880 = vmatpush1.msra.mxu0 %v646_v12  ;;  %v824_v2 = vld [vmem:[#allocation7 + $0x5a8] sm:$0xff]  ;;  %v701_v0 = vld [vmem:[#allocation7 + $0x1d0] sm:$0xff]  ;;  %v823_v3 = vld [vmem:[#allocation7 + $0x5a0] sm:$0xff] }
  0xbe   : > { %939 = vmatpush1.msra.mxu1 %v769_v11  ;;  %881 = vmatprep.subr.mxu0 %v644_v14  ;;  %v821_v4 = vld [vmem:[#allocation7 + $0x590] sm:$0xff]  ;;  %v700_v5 = vld [vmem:[#allocation7 + $0x1c8] sm:$0xff]  ;;  %v698_v7 = vld [vmem:[#allocation7 + $0x1b8] sm:$0xff] }
  0xbf   : > { %940 = vmatprep.subr.mxu1 %v767_v13  ;;  %882 = vmatpush1.msra.mxu0 %v643_v16  ;;  %v820_v6 = vld [vmem:[#allocation7 + $0x588] sm:$0xff]  ;;  %v818_v8 = vld [vmem:[#allocation7 + $0x578] sm:$0xff]  ;;  %v697_v9 = vld [vmem:[#allocation7 + $0x1b0] sm:$0xff] }
  0xc0   : > { %941 = vmatpush1.msra.mxu1 %v766_v15  ;;  %883 = vmatprep.subr.mxu0 %v737_v18  ;;  %v817_v10 = vld [vmem:[#allocation7 + $0x570] sm:$0xff]  ;;  %v695_v11 = vld [vmem:[#allocation7 + $0x1a0] sm:$0xff]  ;;  %v694_v13 = vld [vmem:[#allocation7 + $0x198] sm:$0xff] }
  0xc1   : > { %942 = vmatprep.subr.mxu1 %v764_v17  ;;  %884 = vmatpush2.msra.mxu0 %v736_v20  ;;  %v815_v12 = vld [vmem:[#allocation7 + $0x560] sm:$0xff]  ;;  %v814_v14 = vld [vmem:[#allocation7 + $0x558] sm:$0xff]  ;;  %v692_v15 = vld [vmem:[#allocation7 + $0x188] sm:$0xff] }
  0xc2   : > { %943 = vmatpush1.msra.mxu1 %v763_v19  ;;  %885 = vmatprep.subr.mxu0 %v734_v22  ;;  %v812_v16 = vld [vmem:[#allocation7 + $0x548] sm:$0xff]  ;;  %v691_v17 = vld [vmem:[#allocation7 + $0x180] sm:$0xff]  ;;  %v809_v19 = vld [vmem:[#allocation7 + $0x530] sm:$0xff] }
  0xc3   : > { %944 = vmatprep.subr.mxu1 %v761_v21  ;;  %886 = vmatpush2.msra.mxu0 %v733_v24  ;;  %v811_v18 = vld [vmem:[#allocation7 + $0x540] sm:$0xff]  ;;  %v738_v20 = vld [vmem:[#allocation7 + $0x2f8] sm:$0xff]  ;;  %v808_v21 = vld [vmem:[#allocation7 + $0x528] sm:$0xff] }
  0xc4   : > { %945 = vmatpush1.msra.mxu1 %v760_v23  ;;  %887 = vmatprep.subr.mxu0 %v731_v26  ;;  %v806_v22 = vld [vmem:[#allocation7 + $0x518] sm:$0xff]  ;;  %v805_v23 = vld [vmem:[#allocation7 + $0x510] sm:$0xff]  ;;  %v803_v24 = vld [vmem:[#allocation7 + $0x500] sm:$0xff] }
  0xc5   : > { %946 = vmatprep.subr.mxu1 %v758_v25  ;;  %888 = vmatpush2.msra.mxu0 %v730_v28  ;;  %v802_v25 = vld [vmem:[#allocation7 + $0x4f8] sm:$0xff]  ;;  %v800_v26 = vld [vmem:[#allocation7 + $0x4e8] sm:$0xff]  ;;  %v797_v28 = vld [vmem:[#allocation7 + $0x4d0] sm:$0xff] }
  0xc6   : > { %947 = vmatpush1.msra.mxu1 %v757_v27  ;;  %889 = vmatprep.subr.mxu0 %v728_v30  ;;  %v799_v27 = vld [vmem:[#allocation7 + $0x4e0] sm:$0xff]  ;;  %v794_v30 = vld [vmem:[#allocation7 + $0x4b8] sm:$0xff] }
  0xc7   : > { %948 = vmatprep.subr.mxu1 %v755_v29  ;;  %890 = vmatpush2.msra.mxu0 %v727_v32  ;;  %v796_v29 = vld [vmem:[#allocation7 + $0x4c8] sm:$0xff]  ;;  %v791_v32 = vld [vmem:[#allocation7 + $0x4a0] sm:$0xff] }
  0xc8   : > { %949 = vmatpush1.msra.mxu1 %v754_v31  ;;  %891 = vmatprep.subr.mxu0 %v725_v34  ;;  %v793_v31 = vld [vmem:[#allocation7 + $0x4b0] sm:$0xff]  ;;  %v788_v34 = vld [vmem:[#allocation7 + $0x488] sm:$0xff] }
  0xc9   : > { %950 = vmatprep.subr.mxu1 %v752_v33  ;;  %892 = vmatpush2.msra.mxu0 %v724_v36  ;;  %v790_v33 = vld [vmem:[#allocation7 + $0x498] sm:$0xff] }
  0xca   : > { %951 = vmatpush1.msra.mxu1 %v751_v35  ;;  %893 = vmatprep.subr.mxu0 %v722_v38  ;;  %v787_v35 = vld [vmem:[#allocation7 + $0x480] sm:$0xff]  ;;  %v834_v36 = vld [vmem:[#allocation7 + $0x5f8] sm:$0xff] }
  0xcb   : > { %952 = vmatprep.subr.mxu1 %v749_v37  ;;  %894 = vmatpush2.msra.mxu0 %v721_v40  ;;  %v454_v37 = vlaneseq  ;;  %v413_v40 = vld [vmem:[%s2976_s7] sm:$0xf] }
  0xcc   : > { %953 = vmatpush1.msra.mxu1 %v748_v39  ;;  %895 = vmatprep.subr.mxu0 %v719_v42 }
  0xcd   : > { %954 = vmatprep.subr.mxu1 %v746_v41  ;;  %896 = vmatpush2.msra.mxu0 %v718_v44  ;;  %v2840_v38 = vshrl.u32 %v454_v37, 7  ;;  %v777_v37 = vld [vmem:[#allocation7 + $0x430] sm:$0xff] }
  0xce   : > { %955 = vmatpush1.msra.mxu1 %v745_v43  ;;  %897 = vmatprep.subr.mxu0 %v716_v46 }
  0xcf   : > { %956 = vmatprep.subr.mxu1 %v743_v45  ;;  %898 = vmatpush2.msra.mxu0 %v715_v48  ;;  %v456_v39 = vsub.s32 0, %v2840_v38  ;;  %v460_v41 = vsub.s32 1, %v2840_v38 }
  0xd0   : > { %957 = vmatpush1.msra.mxu1 %v742_v47  ;;  %899 = vmatprep.subr.mxu0 %v713_v50 }
  0xd1   : > { %958 = vmatprep.subr.mxu1 %v740_v49  ;;  %900 = vmatpush2.msra.mxu0 %v712_v52  ;;  %v457_v42 = vrot.slane %v413_v40, %v456_v39  ;;  %v461_v43 = vrot.slane %v413_v40, %v460_v41 }
  0xd2   : > { %959 = vmatpush1.msra.mxu1 %v739_v51  ;;  %901 = vmatprep.subr.mxu0 %v710_v54 }
  0xd3   : > { %960 = vmatprep.subr.mxu1 %v833_v53  ;;  %902 = vmatpush2.msra.mxu0 %v709_v56  ;;  %v690_v53 = vld [vmem:[#allocation7 + $0x178] sm:$0xff] }
  0xd4   : > { %961 = vmatpush2.msra.mxu1 %v832_v55  ;;  %903 = vmatprep.subr.mxu0 %v707_v58  ;;  %v735_v55 = vld [vmem:[#allocation7 + $0x2e0] sm:$0xff] }
  0xd5   : > { %962 = vmatprep.subr.mxu1 %v830_v57  ;;  %904 = vmatpush2.msra.mxu0 %v706_v60  ;;  %v687_v57 = vld [vmem:[#allocation7 + $0x160] sm:$0xff]  ;;  %v684_v60 = vld [vmem:[#allocation7 + $0x148] sm:$0xff] }
  0xd6   : > { %963 = vmatpush2.msra.mxu1 %v829_v59  ;;  %905 = vmatprep.subr.mxu0 %v704_v62  ;;  %v732_v59 = vld [vmem:[#allocation7 + $0x2c8] sm:$0xff]  ;;  %v729_v62 = vld [vmem:[#allocation7 + $0x2b0] sm:$0xff] }
  0xd7   : > { %964 = vmatprep.subr.mxu1 %v827_v61  ;;  %906 = vmatpush2.msra.mxu0 %v703_v1  ;;  %v464_v61 = vsub.s32 2, %v2840_v38  ;;  %v681_v1 = vld [vmem:[#allocation7 + $0x130] sm:$0xff] }
  0xd8   : > { %965 = vmatpush2.msra.mxu1 %v826_v63  ;;  %907 = vmatprep.subr.mxu0 %v701_v0  ;;  %v468_v63 = vsub.s32 3, %v2840_v38  ;;  %v1381_v38 = vld [vmem:[#allocation10 + $0x70] sm:$0xff] }
  0xd9   : > { %966 = vmatprep.subr.mxu1 %v824_v2  ;;  %908 = vmatpush2.msra.mxu0 %v700_v5  ;;  %v726_v2 = vld [vmem:[#allocation7 + $0x298] sm:$0xff]  ;;  %v465_v0 = vrot.slane %v413_v40, %v464_v61 }
  0xda   : > { %967 = vmatpush2.msra.mxu1 %v823_v3  ;;  %909 = vmatprep.subr.mxu0 %v698_v7  ;;  %v678_v3 = vld [vmem:[#allocation7 + $0x118] sm:$0xff]  ;;  %v469_v5 = vrot.slane %v413_v40, %v468_v63  ;;  %v675_v7 = vld [vmem:[#allocation7 + $0x100] sm:$0xff]  ;;  %v765_v63 = vld [vmem:[#allocation7 + $0x3d0] sm:$0xff] }
  0xdb   : > { %968 = vmatprep.subr.mxu1 %v821_v4  ;;  %910 = vmatpush2.msra.mxu0 %v697_v9  ;;  %v723_v4 = vld [vmem:[#allocation7 + $0x280] sm:$0xff]  ;;  %v702_v40 = vld [vmem:[#allocation7 + $0x1d8] sm:$0xff] }
  0xdc   : > { %969 = vmatpush2.msra.mxu1 %v820_v6  ;;  %911 = vmatprep.subr.mxu0 %v695_v11  ;;  %v672_v11 = vld [vmem:[#allocation7 + $0xe8] sm:$0xff] }
  0xdd   : > { %970 = vmatprep.subr.mxu1 %v818_v8  ;;  %912 = vmatpush2.msra.mxu0 %v694_v13  ;;  %v720_v8 = vld [vmem:[#allocation7 + $0x268] sm:$0xff]  ;;  %v717_v13 = vld [vmem:[#allocation7 + $0x250] sm:$0xff] }
  0xde   : > { %971 = vmatpush2.msra.mxu1 %v817_v10  ;;  %913 = vmatprep.subr.mxu0 %v692_v15  ;;  %v669_v15 = vld [vmem:[#allocation7 + $0xd0] sm:$0xff] }
  0xdf   : > { %972 = vmatprep.subr.mxu1 %v815_v12  ;;  %914 = vmatpush2.msra.mxu0 %v691_v17 }
  0xe0   : > { %973 = vmatpush2.msra.mxu1 %v814_v14  ;;  %1846 = vmatprep.subr.mxu0 %v738_v20 }
  0xe1   : > { %974 = vmatprep.subr.mxu1 %v812_v16 }
  0xe2   : > { %975 = vmatpush2.msra.mxu1 %v811_v18  ;;  %v714_v18 = vld [vmem:[#allocation7 + $0x238] sm:$0xff] }
  0xe3   : > { %976 = vmatprep.subr.mxu1 %v809_v19 }
  0xe4   : > { %977 = vmatpush2.msra.mxu1 %v808_v21  ;;  %v666_v21 = vld [vmem:[#allocation7 + $0xb8] sm:$0xff] }
  0xe5   : > { %978 = vmatprep.subr.mxu1 %v806_v22  ;;  %v786_v22 = vld [vmem:[#allocation7 + $0x478] sm:$0xff] }
  0xe6   : > { %979 = vmatpush2.msra.mxu1 %v805_v23 }
  0xe7   : > { %980 = vmatprep.subr.mxu1 %v803_v24  ;;  %v711_v24 = vld [vmem:[#allocation7 + $0x220] sm:$0xff] }
  0xe8   : > { %981 = vmatpush2.msra.mxu1 %v802_v25  ;;  %v831_v25 = vld [vmem:[#allocation7 + $0x5e0] sm:$0xff] }
  0xe9   : > { %982 = vmatprep.subr.mxu1 %v800_v26  ;;  %v663_v26 = vld [vmem:[#allocation7 + $0xa0] sm:$0xff] }
  0xea   : > { %983 = vmatpush2.msra.mxu1 %v799_v27  ;;  %v783_v27 = vld [vmem:[#allocation7 + $0x460] sm:$0xff] }
  0xeb   : > { %984 = vmatprep.subr.mxu1 %v797_v28 }
  0xec   : > { %985 = vmatpush2.msra.mxu1 %v796_v29 }
  0xed   : > { %986 = vmatprep.subr.mxu1 %v794_v30  ;;  %v708_v30 = vld [vmem:[#allocation7 + $0x208] sm:$0xff] }
  0xee   : > { %987 = vmatpush2.msra.mxu1 %v793_v31  ;;  %v828_v31 = vld [vmem:[#allocation7 + $0x5c8] sm:$0xff] }
  0xef   : > { %988 = vmatprep.subr.mxu1 %v791_v32  ;;  %v660_v32 = vld [vmem:[#allocation7 + $0x88] sm:$0xff] }
  0xf0   : > { %989 = vmatpush2.msra.mxu1 %v790_v33  ;;  %v780_v33 = vld [vmem:[#allocation7 + $0x448] sm:$0xff] }
  0xf1   : > { %990 = vmatprep.subr.mxu1 %v788_v34  ;;  %v705_v34 = vld [vmem:[#allocation7 + $0x1f0] sm:$0xff] }
  0xf2   : > { %991 = vmatpush2.msra.mxu1 %v787_v35  ;;  %v825_v35 = vld [vmem:[#allocation7 + $0x5b0] sm:$0xff] }
  0xf3   : > { %1884 = vmatprep.subr.mxu1 %v834_v36  ;;  %v657_v36 = vld [vmem:[#allocation7 + $0x70] sm:$0xff] }
 0x163   : > { %v547_v44 = vpop.f32.mrf.mxu1 }
 0x164   : > { %v2851_v45 = vadd.f32 %v547_v44, %v457_v42  ;;  %v774_v44 = vld [vmem:[#allocation7 + $0x418] sm:$0xff] }
 0x165   : > { %v549_v46 = vpop.f32.mrf.mxu1 }
 0x166   : > { %v550_v47 = vadd.f32 %v549_v46, %v461_v43  ;;  %v635_v51 = vmax.f32 %v2851_v45, 0.0  ;;  %v699_v46 = vld [vmem:[#allocation7 + $0x1c0] sm:$0xff]  ;;  %v801_v45 = vld [vmem:[#allocation7 + $0x4f0] sm:$0xff] }
 0x167   : > { %v553_v48 = vpop.f32.mrf.mxu1 }
 0x168   : > { %v636_v49 = vmax.f32 %v550_v47, 0.0  ;;  %v2853_v50 = vadd.f32 %v553_v48, %v457_v42  ;;  %v822_v42 = vld [vmem:[#allocation7 + $0x598] sm:$0xff]  ;;  %v819_v47 = vld [vmem:[#allocation7 + $0x580] sm:$0xff] }
 0x169   : > { %v555_v52 = vpop.f32.mrf.mxu1  ;;  %v651_v48 = vld [vmem:[#allocation7 + $0x40] sm:$0xff] }
 0x16a   : > { %v2856_v54 = vadd.f32 %v555_v52, %v461_v43  ;;  %915 = vmatprep.mubr.f32.mxu0 %v636_v49  ;;  %v639_v56 = vmax.f32 %v2853_v50, 0.0  ;;  %v654_v43 = vld [vmem:[#allocation7 + $0x58] sm:$0xff]  ;;  %v696_v52 = vld [vmem:[#allocation7 + $0x1a8] sm:$0xff]  ;;  %v747_v50 = vld [vmem:[#allocation7 + $0x340] sm:$0xff] }
 0x16b   : > { %916 = vmatmul.mubr.f32.vlgmr.msra.gmra.mxu0 %v635_v51 }
 0x16c   : > { %v640_v58 = vmax.f32 %v2856_v54, 0.0  ;;  %1847 = vmatpush3.msra.mxu0 %v690_v53  ;;  %v816_v53 = vld [vmem:[#allocation7 + $0x568] sm:$0xff] }
 0x16d   : > { %1848 = vmatprep.subr.mxu0 %v735_v55  ;;  %v648_v55 = vld [vmem:[#allocation7 + $0x28] sm:$0xff] }
 0x16e   : > { %1849 = vmatpush3.msra.mxu0 %v687_v57  ;;  %921 = vmatprep.mubr.f32.mxu0 %v640_v58  ;;  %v768_v57 = vld [vmem:[#allocation7 + $0x3e8] sm:$0xff] }
 0x16f   : > { %1850 = vmatprep.subr.mxu0 %v732_v59  ;;  %922 = vmatmul.mubr.f32.gmra.mxu0 %v639_v56  ;;  %v693_v59 = vld [vmem:[#allocation7 + $0x190] sm:$0xff]  ;;  %v1174_v54 = vld [vmem:[#allocation8 + $0x68] sm:$0xff] }
 0x170   : > { %1851 = vmatpush3.msra.mxu0 %v684_v60  ;;  %1069 = vmatprep.mubr.f32.mxu0 %v636_v49  ;;  %v771_v49 = vld [vmem:[#allocation7 + $0x400] sm:$0xff]  ;;  %v813_v60 = vld [vmem:[#allocation7 + $0x550] sm:$0xff] }
 0x171   : > { %1852 = vmatprep.subr.mxu0 %v729_v62  ;;  %v645_v62 = vld [vmem:[#allocation7 + $0x10] sm:$0xff] }
 0x172   : > { %1853 = vmatpush3.msra.mxu0 %v681_v1  ;;  %v810_v1 = vld [vmem:[#allocation7 + $0x538] sm:$0xff] }
 0x173   : > { %1854 = vmatprep.subr.mxu0 %v726_v2  ;;  %v624_v6 = vpop.f32.mrf.mxu1  ;;  %v762_v2 = vld [vmem:[#allocation7 + $0x3b8] sm:$0xff] }
 0x174   : > { %1855 = vmatpush3.msra.mxu0 %v678_v3  ;;  %v2870_v9 = vadd.f32 %v624_v6, %v465_v0  ;;  %v807_v3 = vld [vmem:[#allocation7 + $0x520] sm:$0xff]  ;;  %v804_v6 = vld [vmem:[#allocation7 + $0x508] sm:$0xff] }
 0x175   : > { %1856 = vmatprep.subr.mxu0 %v723_v4  ;;  %v626_v10 = vpop.f32.mrf.mxu1  ;;  %v1176_v4 = vld [vmem:[#allocation8 + $0x78] sm:$0xff] }
 0x176   : > { %v627_v12 = vadd.f32 %v626_v10, %v469_v5  ;;  %1857 = vmatpush3.msra.mxu0 %v675_v7  ;;  %v637_v19 = vmax.f32 %v2870_v9, 0.0  ;;  %v1191_v7 = vld [vmem:[#allocation8 + $0xf0] sm:$0xff]  ;;  %v1169_v9 = vld [vmem:[#allocation8 + $0x40] sm:$0xff] }
 0x177   : > { %1858 = vmatprep.subr.mxu0 %v720_v8  ;;  %v630_v14 = vpop.f32.mrf.mxu1  ;;  %v756_v8 = vld [vmem:[#allocation7 + $0x388] sm:$0xff]  ;;  %v1175_v10 = vld [vmem:[#allocation8 + $0x70] sm:$0xff] }
 0x178   : > { %v638_v16 = vmax.f32 %v627_v12, 0.0  ;;  %v2872_v17 = vadd.f32 %v630_v14, %v465_v0  ;;  %1859 = vmatpush3.msra.mxu0 %v672_v11  ;;  %v1192_v0 = vld [vmem:[#allocation8 + $0xf8] sm:$0xff]  ;;  %v753_v11 = vld [vmem:[#allocation7 + $0x370] sm:$0xff]  ;;  %v1189_v12 = vld [vmem:[#allocation8 + $0xe0] sm:$0xff] }
 0x179   : > { %1860 = vmatprep.subr.mxu0 %v717_v13  ;;  %v632_v20 = vpop.f32.mrf.mxu1  ;;  %v750_v13 = vld [vmem:[#allocation7 + $0x358] sm:$0xff]  ;;  %v1173_v14 = vld [vmem:[#allocation8 + $0x60] sm:$0xff] }
 0x17a   : > { %v2875_v23 = vadd.f32 %v632_v20, %v469_v5  ;;  %1861 = vmatpush3.msra.mxu0 %v669_v15  ;;  %992 = vmatprep.mubr.f32.mxu1 %v638_v16  ;;  %v641_v28 = vmax.f32 %v2872_v17, 0.0  ;;  %v759_v5 = vld [vmem:[#allocation7 + $0x3a0] sm:$0xff]  ;;  %v741_v20 = vld [vmem:[#allocation7 + $0x310] sm:$0xff] }
 0x17b   : > { %1862 = vmatprep.subr.mxu0 %v714_v18  ;;  %993 = vmatmul.mubr.f32.vlgmr.msra.gmra.mxu1 %v637_v19  ;;  %v795_v15 = vld [vmem:[#allocation7 + $0x4c0] sm:$0xff]  ;;  %v789_v18 = vld [vmem:[#allocation7 + $0x490] sm:$0xff] }
 0x17c   : > { %v642_v29 = vmax.f32 %v2875_v23, 0.0  ;;  %1863 = vmatpush3.msra.mxu0 %v666_v21  ;;  %1885 = vmatpush3.msra.mxu1 %v786_v22  ;;  %v1188_v21 = vld [vmem:[#allocation8 + $0xd8] sm:$0xff]  ;;  %v1183_v17 = vld [vmem:[#allocation8 + $0xb0] sm:$0xff] }
 0x17d   : > { %1864 = vmatprep.subr.mxu0 %v711_v24  ;;  %1886 = vmatprep.subr.mxu1 %v831_v25  ;;  %v1172_v22 = vld [vmem:[#allocation8 + $0x58] sm:$0xff]  ;;  %v1187_v24 = vld [vmem:[#allocation8 + $0xd0] sm:$0xff] }
 0x17e   : > { %1865 = vmatpush3.msra.mxu0 %v663_v26  ;;  %1887 = vmatpush3.msra.mxu1 %v783_v27  ;;  %v1171_v25 = vld [vmem:[#allocation8 + $0x50] sm:$0xff]  ;;  %v1186_v26 = vld [vmem:[#allocation8 + $0xc8] sm:$0xff]  ;;  %v1168_v23 = vld [vmem:[#allocation8 + $0x38] sm:$0xff] }
 0x17f   : > { %998 = vmatprep.mubr.f32.mxu1 %v642_v29  ;;  %1866 = vmatprep.subr.mxu0 %v708_v30  ;;  %v1170_v27 = vld [vmem:[#allocation8 + $0x48] sm:$0xff]  ;;  %v1185_v30 = vld [vmem:[#allocation8 + $0xc0] sm:$0xff] }
 0x180   : > { %1888 = vmatprep.subr.mxu1 %v828_v31  ;;  %999 = vmatmul.mubr.f32.gmra.mxu1 %v641_v28  ;;  %v1166_v31 = vld [vmem:[#allocation8 + $0x28] sm:$0xff] }
 0x181   : > { %1867 = vmatpush3.msra.mxu0 %v660_v32  ;;  %1889 = vmatpush3.msra.mxu1 %v780_v33  ;;  %v1181_v32 = vld [vmem:[#allocation8 + $0xa0] sm:$0xff] }
 0x182   : > { %1868 = vmatprep.subr.mxu0 %v705_v34  ;;  %1890 = vmatprep.subr.mxu1 %v825_v35  ;;  %v1165_v33 = vld [vmem:[#allocation8 + $0x20] sm:$0xff]  ;;  %v1180_v34 = vld [vmem:[#allocation8 + $0x98] sm:$0xff] }
 0x183   : > { %1144 = vmatprep.mubr.f32.mxu1 %v638_v16  ;;  %1869 = vmatpush3.msra.mxu0 %v657_v36  ;;  %v744_v16 = vld [vmem:[#allocation7 + $0x328] sm:$0xff]  ;;  %v1164_v35 = vld [vmem:[#allocation8 + $0x18] sm:$0xff]  ;;  %v1179_v36 = vld [vmem:[#allocation8 + $0x90] sm:$0xff] }
 0x184   : > { %1891 = vmatpush3.msra.mxu1 %v777_v37  ;;  %1870 = vmatprep.subr.mxu0 %v702_v40  ;;  %v1163_v37 = vld [vmem:[#allocation8 + $0x10] sm:$0xff]  ;;  %v1178_v40 = vld [vmem:[#allocation8 + $0x88] sm:$0xff] }
 0x185   : > { %1892 = vmatprep.subr.mxu1 %v822_v42  ;;  %1871 = vmatpush3.msra.mxu0 %v654_v43  ;;  %v1162_v42 = vld [vmem:[#allocation8 + $0x8] sm:$0xff]  ;;  %v1177_v43 = vld [vmem:[#allocation8 + $0x80] sm:$0xff] }
 0x186   : > { %1893 = vmatpush3.msra.mxu1 %v774_v44  ;;  %1872 = vmatprep.subr.mxu0 %v699_v46  ;;  %v1161_v44 = vld [vmem:[#allocation8] sm:$0xff]  ;;  %v1208_v46 = vld [vmem:[#allocation8 + $0x178] sm:$0xff] }
 0x187   : > { %1894 = vmatprep.subr.mxu1 %v819_v47  ;;  %1873 = vmatpush3.msra.mxu0 %v651_v48  ;;  %v1207_v47 = vld [vmem:[#allocation8 + $0x170] sm:$0xff]  ;;  %v1206_v48 = vld [vmem:[#allocation8 + $0x168] sm:$0xff] }
 0x188   : > { %1895 = vmatpush3.msra.mxu1 %v771_v49  ;;  %1874 = vmatprep.subr.mxu0 %v696_v52  ;;  %v1205_v49 = vld [vmem:[#allocation8 + $0x160] sm:$0xff]  ;;  %v1204_v52 = vld [vmem:[#allocation8 + $0x158] sm:$0xff] }
 0x189   : > { %1896 = vmatprep.subr.mxu1 %v816_v53  ;;  %1875 = vmatpush3.msra.mxu0 %v648_v55  ;;  %v1203_v53 = vld [vmem:[#allocation8 + $0x150] sm:$0xff]  ;;  %v1202_v55 = vld [vmem:[#allocation8 + $0x148] sm:$0xff] }
 0x18a   : > { %1897 = vmatpush3.msra.mxu1 %v768_v57  ;;  %1876 = vmatprep.subr.mxu0 %v693_v59  ;;  %v1201_v57 = vld [vmem:[#allocation8 + $0x140] sm:$0xff]  ;;  %v1200_v59 = vld [vmem:[#allocation8 + $0x138] sm:$0xff] }
 0x18b   : > { %1898 = vmatprep.subr.mxu1 %v813_v60  ;;  %1877 = vmatpush3.msra.mxu0 %v645_v62  ;;  %v1199_v60 = vld [vmem:[#allocation8 + $0x130] sm:$0xff]  ;;  %v1198_v62 = vld [vmem:[#allocation8 + $0x128] sm:$0xff] }
 0x18c   : > { %1899 = vmatpush3.msra.mxu1 %v765_v63  ;;  %1070 = vmatmul.mubr.f32.vlgmr.msra.gmra.mxu0 %v635_v51  ;;  %v1190_v51 = vld [vmem:[#allocation8 + $0xe8] sm:$0xff]  ;;  %v1197_v63 = vld [vmem:[#allocation8 + $0x120] sm:$0xff] }
 0x18d   : > { %1900 = vmatprep.subr.mxu1 %v810_v1  ;;  %1074 = vmatprep.mubr.f32.mxu0 %v640_v58  ;;  %v798_v58 = vld [vmem:[#allocation7 + $0x4d8] sm:$0xff] }
 0x18e   : > { %1901 = vmatpush3.msra.mxu1 %v762_v2  ;;  %1922 = vmatprep.subr.mxu0 %v1192_v0  ;;  %v1196_v1 = vld [vmem:[#allocation8 + $0x118] sm:$0xff]  ;;  %v1195_v2 = vld [vmem:[#allocation8 + $0x110] sm:$0xff]  ;;  %v1194_v0 = vld [vmem:[#allocation8 + $0x108] sm:$0xff] }
 0x18f   : > { %1902 = vmatprep.subr.mxu1 %v807_v3  ;;  %1923 = vmatpush3.msra.mxu0 %v1176_v4  ;;  %v1193_v3 = vld [vmem:[#allocation8 + $0x100] sm:$0xff] }
 0x190   : > { %1903 = vmatpush3.msra.mxu1 %v759_v5  ;;  %1075 = vmatmul.mubr.f32.gmra.mxu0 %v639_v56  ;;  %v792_v56 = vld [vmem:[#allocation7 + $0x4a8] sm:$0xff]  ;;  %v414_v4 = vld [vmem:[%s2976_s7 + $0x4] sm:$0x7] }
 0x191   : > { %1904 = vmatprep.subr.mxu1 %v804_v6  ;;  %1924 = vmatprep.subr.mxu0 %v1191_v7  ;;  %v839_v6 = vrot.slane %v414_v4, %v456_v39  ;;  %v843_v7 = vrot.slane %v414_v4, %v460_v41 }
 0x192   : > { %1905 = vmatpush3.msra.mxu1 %v756_v8  ;;  %1925 = vmatpush3.msra.mxu0 %v1175_v10 }
 0x193   : > { %1906 = vmatprep.subr.mxu1 %v801_v45  ;;  %1926 = vmatprep.subr.mxu0 %v1190_v51 }
 0x194   : > { %1907 = vmatpush3.msra.mxu1 %v753_v11  ;;  %1927 = vmatpush3.msra.mxu0 %v1174_v54 }
 0x195   : > { %1908 = vmatprep.subr.mxu1 %v798_v58  ;;  %1928 = vmatprep.subr.mxu0 %v1189_v12 }
 0x196   : > { %1909 = vmatpush3.msra.mxu1 %v750_v13  ;;  %1929 = vmatpush3.msra.mxu0 %v1173_v14 }
 0x197   : > { %1910 = vmatprep.subr.mxu1 %v795_v15  ;;  %1930 = vmatprep.subr.mxu0 %v1188_v21 }
 0x198   : > { %1911 = vmatpush3.msra.mxu1 %v747_v50  ;;  %1931 = vmatpush3.msra.mxu0 %v1172_v22 }
 0x199   : > { %1912 = vmatprep.subr.mxu1 %v792_v56  ;;  %1932 = vmatprep.subr.mxu0 %v1187_v24 }
 0x19a   : > { %1913 = vmatpush3.msra.mxu1 %v744_v16  ;;  %1933 = vmatpush3.msra.mxu0 %v1171_v25 }
 0x19b   : > { %1914 = vmatprep.subr.mxu1 %v789_v18  ;;  %1934 = vmatprep.subr.mxu0 %v1186_v26  ;;  %v847_v26 = vrot.slane %v414_v4, %v464_v61  ;;  %v1380_v61 = vld [vmem:[#allocation10 + $0x68] sm:$0xff] }
 0x19c   : > { %1915 = vmatpush3.msra.mxu1 %v741_v20  ;;  %1935 = vmatpush3.msra.mxu0 %v1170_v27  ;;  %v1475_v4 = vld [vmem:[#allocation11 + $0x48] sm:$0xff] }
 0x19d   : > { %1145 = vmatmul.mubr.f32.vlgmr.msra.gmra.mxu1 %v637_v19  ;;  %v1184_v19 = vld [vmem:[#allocation8 + $0xb8] sm:$0xff]  ;;  %1936 = vmatprep.subr.mxu0 %v1185_v30 }
 0x19e   : > { %1149 = vmatprep.mubr.f32.mxu1 %v642_v29  ;;  %1937 = vmatpush3.msra.mxu0 %v1169_v9  ;;  %v1182_v29 = vld [vmem:[#allocation8 + $0xa8] sm:$0xff] }
 0x19f   : > { %1938 = vmatprep.subr.mxu0 %v1184_v19  ;;  %2032 = vmatprep.subr.mxu1 %v1208_v46 }
 0x1a0   : > { %1939 = vmatpush3.msra.mxu0 %v1168_v23  ;;  %2033 = vmatpush3.msra.mxu1 %v1208_v46  ;;  %v1376_v46 = vld [vmem:[#allocation10 + $0x48] sm:$0xff] }
 0x1a1   : > { %1150 = vmatmul.mubr.f32.gmra.mxu1 %v641_v28  ;;  %v1167_v28 = vld [vmem:[#allocation8 + $0x30] sm:$0xff]  ;;  %1940 = vmatprep.subr.mxu0 %v1183_v17 }
 0x1a2   : > { %1941 = vmatpush3.msra.mxu0 %v1167_v28  ;;  %2034 = vmatprep.subr.mxu1 %v1207_v47 }
 0x1a3   : > { %1942 = vmatprep.subr.mxu0 %v1182_v29  ;;  %2035 = vmatpush3.msra.mxu1 %v1207_v47  ;;  %v1375_v47 = vld [vmem:[#allocation10 + $0x40] sm:$0xff] }
 0x1a4   : > { %1943 = vmatpush3.msra.mxu0 %v1166_v31  ;;  %2036 = vmatprep.subr.mxu1 %v1206_v48 }
 0x1a5   : > { %1944 = vmatprep.subr.mxu0 %v1181_v32  ;;  %2037 = vmatpush3.msra.mxu1 %v1206_v48  ;;  %v1374_v48 = vld [vmem:[#allocation10 + $0x38] sm:$0xff] }
 0x1a6   : > { %1945 = vmatpush3.msra.mxu0 %v1165_v33  ;;  %2038 = vmatprep.subr.mxu1 %v1205_v49 }
 0x1a7   : > { %1946 = vmatprep.subr.mxu0 %v1180_v34  ;;  %2039 = vmatpush3.msra.mxu1 %v1205_v49  ;;  %v1373_v49 = vld [vmem:[#allocation10 + $0x30] sm:$0xff] }
 0x1a8   : > { %1947 = vmatpush3.msra.mxu0 %v1164_v35  ;;  %2040 = vmatprep.subr.mxu1 %v1204_v52 }
 0x1a9   : > { %1948 = vmatprep.subr.mxu0 %v1179_v36  ;;  %2041 = vmatpush3.msra.mxu1 %v1204_v52  ;;  %v1372_v52 = vld [vmem:[#allocation10 + $0x28] sm:$0xff] }
 0x1aa   : > { %1949 = vmatpush3.msra.mxu0 %v1163_v37  ;;  %2042 = vmatprep.subr.mxu1 %v1203_v53 }
 0x1ab   : > { %1950 = vmatprep.subr.mxu0 %v1178_v40  ;;  %2043 = vmatpush3.msra.mxu1 %v1203_v53  ;;  %v1382_v40 = vld [vmem:[#allocation10 + $0x78] sm:$0xff]  ;;  %v1371_v53 = vld [vmem:[#allocation10 + $0x20] sm:$0xff] }
 0x1ac   : > { %1951 = vmatpush3.msra.mxu0 %v1162_v42  ;;  %2044 = vmatprep.subr.mxu1 %v1202_v55  ;;  %v1379_v42 = vld [vmem:[#allocation10 + $0x60] sm:$0xff] }
 0x1ad   : > { %1952 = vmatprep.subr.mxu0 %v1177_v43  ;;  %2045 = vmatpush3.msra.mxu1 %v1202_v55  ;;  %v1378_v43 = vld [vmem:[#allocation10 + $0x58] sm:$0xff] }
 0x1ae   : > { %1953 = vmatpush3.msra.mxu0 %v1161_v44  ;;  %2046 = vmatprep.subr.mxu1 %v1201_v57  ;;  %v1377_v44 = vld [vmem:[#allocation10 + $0x50] sm:$0xff]  ;;  %v1370_v55 = vld [vmem:[#allocation10 + $0x18] sm:$0xff] }
 0x1af   : > { %2047 = vmatpush3.msra.mxu1 %v1201_v57  ;;  %2067 = vmatprep.subr.mxu0 %v1382_v40  ;;  %v1369_v57 = vld [vmem:[#allocation10 + $0x10] sm:$0xff] }
 0x1b0   : > { %2048 = vmatprep.subr.mxu1 %v1200_v59 }
 0x1b1   : > { %2049 = vmatpush3.msra.mxu1 %v1200_v59  ;;  %v1368_v59 = vld [vmem:[#allocation10 + $0x8] sm:$0xff] }
 0x1b2   : > { %2050 = vmatprep.subr.mxu1 %v1199_v60 }
 0x1b3   : > { %2051 = vmatpush3.msra.mxu1 %v1199_v60  ;;  %v1367_v60 = vld [vmem:[#allocation10] sm:$0xff] }
 0x1b4   : > { %2052 = vmatprep.subr.mxu1 %v1198_v62 }
 0x1b5   : > { %2053 = vmatpush3.msra.mxu1 %v1198_v62  ;;  %v1481_v62 = vld [vmem:[#allocation11 + $0x78] sm:$0xff] }
 0x1b6   : > { %2054 = vmatprep.subr.mxu1 %v1197_v63 }
 0x1b7   : > { %2055 = vmatpush3.msra.mxu1 %v1197_v63  ;;  %v1480_v63 = vld [vmem:[#allocation11 + $0x70] sm:$0xff] }
 0x1b8   : > { %2056 = vmatprep.subr.mxu1 %v1196_v1 }
 0x1b9   : > { %2057 = vmatpush3.msra.mxu1 %v1196_v1  ;;  %v1479_v1 = vld [vmem:[#allocation11 + $0x68] sm:$0xff] }
 0x1ba   : > { %2058 = vmatprep.subr.mxu1 %v1195_v2 }
 0x1bb   : > { %2059 = vmatpush3.msra.mxu1 %v1195_v2  ;;  %v1478_v2 = vld [vmem:[#allocation11 + $0x60] sm:$0xff] }
 0x1bc   : > { %2060 = vmatprep.subr.mxu1 %v1194_v0 }
 0x1bd   : > { %2061 = vmatpush3.msra.mxu1 %v1194_v0  ;;  %v1477_v0 = vld [vmem:[#allocation11 + $0x58] sm:$0xff] }
 0x1be   : > { %2062 = vmatprep.subr.mxu1 %v1193_v3 }
 0x1bf   : > { %2063 = vmatpush3.msra.mxu1 %v1193_v3  ;;  %v1476_v3 = vld [vmem:[#allocation11 + $0x50] sm:$0xff] }
 0x1c0   : > { %2102 = vmatprep.subr.mxu1 %v1481_v62 }
 0x22b   : > { %v917_v5 = vpop.f32.mrf.mxu0 }
 0x22c   : > { %v918_v45 = vadd.f32 %v917_v5, %v839_v6  ;;  %v1474_v5 = vld [vmem:[#allocation11 + $0x40] sm:$0xff] }
 0x22d   : > { %v919_v8 = vpop.f32.mrf.mxu0 }
 0x22e   : > { %v920_v11 = vadd.f32 %v919_v8, %v843_v7  ;;  %v1471_v8 = vld [vmem:[#allocation11 + $0x28] sm:$0xff] }
 0x22f   : > { %v923_v10 = vpop.f32.mrf.mxu0 }
 0x230   : > { %v924_v14 = vadd.f32 %v923_v10, %v839_v6  ;;  %v1473_v6 = vld [vmem:[#allocation11 + $0x38] sm:$0xff]  ;;  %v1470_v10 = vld [vmem:[#allocation11 + $0x20] sm:$0xff] }
 0x231   : > { %v925_v12 = vpop.f32.mrf.mxu0 }
 0x232   : > { %v926_v56 = vadd.f32 %v925_v12, %v843_v7  ;;  %v1472_v7 = vld [vmem:[#allocation11 + $0x30] sm:$0xff] }
 0x23b   : > { %v994_v51 = vpop.f32.mrf.mxu1 }
 0x23c   : > { %v995_v54 = vadd.f32 %v994_v51, %v918_v45 }
 0x23d   : > { %v996_v58 = vpop.f32.mrf.mxu1 }
 0x23e   : > { %v997_v13 = vadd.f32 %v996_v58, %v920_v11  ;;  %v1155_v16 = vmax.f32 %v995_v54, 0.0 }
 0x240   : > { %v1156_v15 = vmax.f32 %v997_v13, 0.0  ;;  %v1000_v50 = vpop.f32.mrf.mxu1  ;;  %v1835_v13 = vld [vmem:[%s2976_s7 + $0x7] ss:$0 sm:$0xff] }
 0x241   : > { %v1001_v18 = vadd.f32 %v1000_v50, %v924_v14 }
 0x242   : > { %v1002_v20 = vpop.f32.mrf.mxu1  ;;  %1279 = vmatprep.mubr.f32.mxu0 %v1156_v15 }
 0x243   : > { %v1003_v39 = vadd.f32 %v1002_v20, %v926_v56  ;;  %1280 = vmatmul.mubr.f32.vlgmr.msra.gmra.mxu0 %v1155_v16  ;;  %v1158_v21 = vmax.f32 %v1001_v18, 0.0 }
 0x244   : > { %2068 = vmatpush3.msra.mxu0 %v1382_v40 }
 0x245   : > { %v1159_v41 = vmax.f32 %v1003_v39, 0.0  ;;  %2069 = vmatprep.subr.mxu0 %v1381_v38 }
 0x246   : > { %2070 = vmatpush3.msra.mxu0 %v1381_v38 }
 0x247   : > { %1284 = vmatprep.mubr.f32.mxu0 %v1159_v41  ;;  %2071 = vmatprep.subr.mxu0 %v1380_v61  ;;  %v1469_v41 = vld [vmem:[#allocation11 + $0x18] sm:$0xff] }
 0x248   : > { %1285 = vmatmul.mubr.f32.gmra.mxu0 %v1158_v21  ;;  %v1468_v21 = vld [vmem:[#allocation11 + $0x10] sm:$0xff] }
 0x249   : > { %2072 = vmatpush3.msra.mxu0 %v1380_v61  ;;  %v1568_v61 = vld [vmem:[#allocation13 + $0x18] sm:$0xff] }
 0x24a   : > { %2073 = vmatprep.subr.mxu0 %v1379_v42 }
 0x24b   : > { %2074 = vmatpush3.msra.mxu0 %v1379_v42  ;;  %v1567_v42 = vld [vmem:[#allocation13 + $0x10] sm:$0xff] }
 0x24c   : > { %v1878_v22 = vpop.f32.mrf.mxu0  ;;  %2075 = vmatprep.subr.mxu0 %v1378_v43 }
 0x24d   : > { %2076 = vmatpush3.msra.mxu0 %v1378_v43  ;;  %v1566_v43 = vld [vmem:[#allocation13 + $0x8] sm:$0xff] }
 0x24e   : > { %v1879_v24 = vpop.f32.mrf.mxu0  ;;  %2077 = vmatprep.subr.mxu0 %v1377_v44 }
 0x24f   : > { %v1880_v27 = vadd.f32 %v1879_v24, %v1878_v22  ;;  %2078 = vmatpush3.msra.mxu0 %v1377_v44  ;;  %v1467_v22 = vld [vmem:[#allocation11 + $0x8] sm:$0xff]  ;;  %v1466_v24 = vld [vmem:[#allocation11] sm:$0xff] }
 0x250   : > { %v1881_v25 = vpop.f32.mrf.mxu0  ;;  %2079 = vmatprep.subr.mxu0 %v1376_v46  ;;  %v1565_v44 = vld [vmem:[#allocation13] sm:$0xff] }
 0x251   : > { %v1072_v23 = vadd.f32 %v1880_v27, %v847_v26  ;;  %2080 = vmatpush3.msra.mxu0 %v1376_v46  ;;  %v1578_v27 = vld [vmem:[#allocation13 + $0x68] sm:$0xff] }
 0x252   : > { %v1882_v30 = vpop.f32.mrf.mxu0  ;;  %2081 = vmatprep.subr.mxu0 %v1375_v47  ;;  %v1837_v46 = vld [vmem:[%s2976_s7 + $0x9] ss:$0 sm:$0xff] }
 0x253   : > { %v1883_v17 = vadd.f32 %v1882_v30, %v1881_v25  ;;  %2082 = vmatpush3.msra.mxu0 %v1375_v47  ;;  %v1580_v25 = vld [vmem:[#allocation13 + $0x78] sm:$0xff]  ;;  %v1577_v30 = vld [vmem:[#allocation13 + $0x60] sm:$0xff] }
 0x254   : > { %2083 = vmatprep.subr.mxu0 %v1374_v48 }
 0x255   : > { %v1077_v33 = vadd.f32 %v1883_v17, %v847_v26  ;;  %2084 = vmatpush3.msra.mxu0 %v1374_v48  ;;  %v1579_v26 = vld [vmem:[#allocation13 + $0x70] sm:$0xff]  ;;  %v1573_v17 = vld [vmem:[#allocation13 + $0x40] sm:$0xff] }
 0x256   : > { %2085 = vmatprep.subr.mxu0 %v1373_v49 }
 0x257   : > { %2086 = vmatpush3.msra.mxu0 %v1373_v49 }
 0x258   : > { %2087 = vmatprep.subr.mxu0 %v1372_v52 }
 0x259   : > { %2088 = vmatpush3.msra.mxu0 %v1372_v52 }
 0x25a   : > { %2089 = vmatprep.subr.mxu0 %v1371_v53 }
 0x25b   : > { %2090 = vmatpush3.msra.mxu0 %v1371_v53 }
 0x25c   : > { %2091 = vmatprep.subr.mxu0 %v1370_v55 }
 0x25d   : > { %v1916_v9 = vpop.f32.mrf.mxu1  ;;  %2092 = vmatpush3.msra.mxu0 %v1370_v55 }
 0x25e   : > { %2093 = vmatprep.subr.mxu0 %v1369_v57 }
 0x25f   : > { %v1917_v19 = vpop.f32.mrf.mxu1  ;;  %2094 = vmatpush3.msra.mxu0 %v1369_v57  ;;  %v1838_v57 = vld [vmem:[%s2976_s7 + $0xa] ss:$0 sm:$0xff] }
 0x260   : > { %v1918_v28 = vadd.f32 %v1917_v19, %v1916_v9  ;;  %2095 = vmatprep.subr.mxu0 %v1368_v59  ;;  %v1576_v9 = vld [vmem:[#allocation13 + $0x58] sm:$0xff]  ;;  %v1575_v19 = vld [vmem:[#allocation13 + $0x50] sm:$0xff] }
 0x261   : > { %v1919_v29 = vpop.f32.mrf.mxu1  ;;  %2096 = vmatpush3.msra.mxu0 %v1368_v59 }
 0x262   : > { %v1147_v31 = vadd.f32 %v1918_v28, %v1072_v23  ;;  %2097 = vmatprep.subr.mxu0 %v1367_v60  ;;  %v1574_v23 = vld [vmem:[#allocation13 + $0x48] sm:$0xff]  ;;  %v1572_v28 = vld [vmem:[#allocation13 + $0x38] sm:$0xff] }
 0x263   : > { %v1920_v32 = vpop.f32.mrf.mxu1  ;;  %2098 = vmatpush3.msra.mxu0 %v1367_v60 }
 0x264   : > { %v1157_v34 = vmax.f32 %v1147_v31, 0.0  ;;  %v1921_v35 = vadd.f32 %v1920_v32, %v1919_v29  ;;  %2137 = vmatprep.subr.mxu0 %v1580_v25  ;;  %v1571_v29 = vld [vmem:[#allocation13 + $0x30] sm:$0xff]  ;;  %v1570_v31 = vld [vmem:[#allocation13 + $0x28] sm:$0xff]  ;;  %v1569_v32 = vld [vmem:[#allocation13 + $0x20] sm:$0xff] }
 0x266   : > { %v1152_v36 = vadd.f32 %v1921_v35, %v1077_v33  ;;  %2064 = vmatprep.mubr.f32.mxu1 %v1157_v34  ;;  %v1836_v33 = vld [vmem:[%s2976_s7 + $0x8] ss:$0 sm:$0xff] }
 0x268   : > { %v1160_v37 = vmax.f32 %v1152_v36, 0.0 }
 0x26a   : > { %2065 = vmatmul.mubr.f32.vlgmr.msra.gmra.mxu1 %v1160_v37 }
 0x26b   : > { %2103 = vmatpush3.msra.mxu1 %v1481_v62 }
 0x26c   : > { %2104 = vmatprep.subr.mxu1 %v1480_v63 }
 0x26d   : > { %2105 = vmatpush3.msra.mxu1 %v1480_v63 }
 0x26e   : > { %2106 = vmatprep.subr.mxu1 %v1479_v1 }
 0x26f   : > { %2107 = vmatpush3.msra.mxu1 %v1479_v1 }
 0x270   : > { %2108 = vmatprep.subr.mxu1 %v1478_v2 }
 0x271   : > { %2109 = vmatpush3.msra.mxu1 %v1478_v2 }
 0x272   : > { %2110 = vmatprep.subr.mxu1 %v1477_v0 }
 0x273   : > { %2111 = vmatpush3.msra.mxu1 %v1477_v0 }
 0x274   : > { %2112 = vmatprep.subr.mxu1 %v1476_v3 }
 0x275   : > { %2113 = vmatpush3.msra.mxu1 %v1476_v3 }
 0x276   : > { %2114 = vmatprep.subr.mxu1 %v1475_v4 }
 0x277   : > { %2115 = vmatpush3.msra.mxu1 %v1475_v4 }
 0x278   : > { %2116 = vmatprep.subr.mxu1 %v1474_v5 }
 0x279   : > { %2117 = vmatpush3.msra.mxu1 %v1474_v5 }
 0x27a   : > { %2118 = vmatprep.subr.mxu1 %v1473_v6 }
 0x27b   : > { %2119 = vmatpush3.msra.mxu1 %v1473_v6 }
 0x27c   : > { %2120 = vmatprep.subr.mxu1 %v1472_v7 }
 0x27d   : > { %2121 = vmatpush3.msra.mxu1 %v1472_v7 }
 0x27e   : > { %2122 = vmatprep.subr.mxu1 %v1471_v8 }
 0x27f   : > { %2123 = vmatpush3.msra.mxu1 %v1471_v8 }
 0x280   : > { %2124 = vmatprep.subr.mxu1 %v1470_v10 }
 0x281   : > { %2125 = vmatpush3.msra.mxu1 %v1470_v10 }
 0x282   : > { %2126 = vmatprep.subr.mxu1 %v1469_v41 }
 0x283   : > { %2127 = vmatpush3.msra.mxu1 %v1469_v41 }
 0x284   : > { %2128 = vmatprep.subr.mxu1 %v1468_v21 }
 0x285   : > { %2129 = vmatpush3.msra.mxu1 %v1468_v21 }
 0x286   : > { %2130 = vmatprep.subr.mxu1 %v1467_v22 }
 0x287   : > { %2131 = vmatpush3.msra.mxu1 %v1467_v22 }
 0x288   : > { %2132 = vmatprep.subr.mxu1 %v1466_v24 }
 0x289   : > { %2133 = vmatpush3.msra.mxu1 %v1466_v24 }
 0x303   : > { %v1954_v45 = vpop.f32.mrf.mxu0 }
 0x305   : > { %v1955_v51 = vpop.f32.mrf.mxu0 }
 0x306   : > { %v1956_v12 = vadd.f32 %v1955_v51, %v1954_v45 }
 0x308   : > { %v1957_v11 = vpop.f32.mrf.mxu0  ;;  %v1282_v50 = vadd.f32 %v1956_v12, %v1835_v13 }
 0x30a   : > { %v1958_v54 = vpop.f32.mrf.mxu0 }
 0x30b   : > { %v1959_v58 = vadd.f32 %v1958_v54, %v1957_v11 }
 0x30d   : > { %v1287_v14 = vadd.f32 %v1959_v58, %v1835_v13 }
 0x32a   : > { %v2066_v15 = vpop.f32.mrf.mxu1 }
 0x32b   : > { %v1362_v56 = vadd.f32 %v2066_v15, %v1287_v14 }
 0x32c   : > { %v1356_v16 = vpop.f32.mrf.mxu1 }
 0x32d   : > { %v1357_v18 = vadd.f32 %v1356_v16, %v1282_v50  ;;  %v1366_v39 = vmax.f32 %v1362_v56, 0.0 }
 0x32f   : > { %v1365_v20 = vmax.f32 %v1357_v18, 0.0 }
 0x331   : > { %2099 = vmatprep.mubr.f32.mxu0 %v1365_v20 }
 0x332   : > { %2100 = vmatmul.mubr.f32.vlgmr.msra.gmra.mxu0 %v1366_v39 }
 0x333   : > { %2138 = vmatpush3.msra.mxu0 %v1580_v25 }
 0x334   : > { %2139 = vmatprep.subr.mxu0 %v1579_v26 }
 0x335   : > { %2140 = vmatpush3.msra.mxu0 %v1579_v26 }
 0x336   : > { %2141 = vmatprep.subr.mxu0 %v1578_v27 }
 0x337   : > { %2142 = vmatpush3.msra.mxu0 %v1578_v27 }
 0x338   : > { %2143 = vmatprep.subr.mxu0 %v1577_v30 }
 0x339   : > { %2144 = vmatpush3.msra.mxu0 %v1577_v30 }
 0x33a   : > { %2145 = vmatprep.subr.mxu0 %v1576_v9 }
 0x33b   : > { %2146 = vmatpush3.msra.mxu0 %v1576_v9 }
 0x33c   : > { %2147 = vmatprep.subr.mxu0 %v1575_v19 }
 0x33d   : > { %2148 = vmatpush3.msra.mxu0 %v1575_v19 }
 0x33e   : > { %2149 = vmatprep.subr.mxu0 %v1574_v23 }
 0x33f   : > { %2150 = vmatpush3.msra.mxu0 %v1574_v23 }
 0x340   : > { %2151 = vmatprep.subr.mxu0 %v1573_v17 }
 0x341   : > { %2152 = vmatpush3.msra.mxu0 %v1573_v17 }
 0x342   : > { %2153 = vmatprep.subr.mxu0 %v1572_v28 }
 0x343   : > { %2154 = vmatpush3.msra.mxu0 %v1572_v28 }
 0x344   : > { %2155 = vmatprep.subr.mxu0 %v1571_v29 }
 0x345   : > { %2156 = vmatpush3.msra.mxu0 %v1571_v29 }
 0x346   : > { %2157 = vmatprep.subr.mxu0 %v1570_v31 }
 0x347   : > { %2158 = vmatpush3.msra.mxu0 %v1570_v31 }
 0x348   : > { %2159 = vmatprep.subr.mxu0 %v1569_v32 }
 0x349   : > { %2160 = vmatpush3.msra.mxu0 %v1569_v32 }
 0x34a   : > { %2161 = vmatprep.subr.mxu0 %v1568_v61 }
 0x34b   : > { %2162 = vmatpush3.msra.mxu0 %v1568_v61 }
 0x34c   : > { %2163 = vmatprep.subr.mxu0 %v1567_v42 }
 0x34d   : > { %2164 = vmatpush3.msra.mxu0 %v1567_v42 }
 0x34e   : > { %2165 = vmatprep.subr.mxu0 %v1566_v43 }
 0x34f   : > { %2166 = vmatpush3.msra.mxu0 %v1566_v43 }
 0x350   : > { %2167 = vmatprep.subr.mxu0 %v1565_v44 }
 0x351   : > { %2168 = vmatpush3.msra.mxu0 %v1565_v44 }
 0x3f2   : > { %v2101_v34 = vpop.f32.mrf.mxu0 }
 0x3f3   : > { %v1461_v35 = vadd.f32 %v2101_v34, %v1836_v33 }
 0x3f4   : > { %v1455_v36 = vpop.f32.mrf.mxu0 }
 0x3f5   : > { %v1456_v37 = vadd.f32 %v1836_v33, %v1455_v36  ;;  %v1465_v38 = vmax.f32 %v1461_v35, 0.0 }
 0x3f7   : > { %v1464_v40 = vmax.f32 %v1456_v37, 0.0 }
 0x3f9   : > { %2134 = vmatprep.mubr.f32.mxu1 %v1464_v40 }
 0x3fa   : > { %2135 = vmatmul.mubr.f32.vlgmr.msra.gmra.mxu1 %v1465_v38 }
 0x4ba   : > { %v2136_v47 = vpop.f32.mrf.mxu1 }
 0x4bb   : > { %v1560_v48 = vadd.f32 %v2136_v47, %v1837_v46 }
 0x4bc   : > { %v1554_v49 = vpop.f32.mrf.mxu1 }
 0x4bd   : > { %v1555_v52 = vadd.f32 %v1837_v46, %v1554_v49  ;;  %v1564_v55 = vmax.f32 %v1560_v48, 0.0 }
 0x4bf   : > { %v1563_v53 = vmax.f32 %v1555_v52, 0.0 }
 0x4c1   : > { %2169 = vmatprep.mubr.f32.mxu0 %v1563_v53 }
 0x4c2   : > { %2170 = vmatmul.mubr.f32.vlgmr.msra.gmra.mxu0 %v1564_v55 }
 0x582   : > { %v2171_v59 = vpop.f32.mrf.mxu0 }
 0x583   : > { %v1659_v60 = vadd.f32 %v2171_v59, %v1838_v57 }
 0x584   : > { %v1653_v62 = vpop.f32.mrf.mxu0 }
 0x585   : > { %v1663_v63 = vmax.f32 %v1659_v60, 0.0  ;;  %v1654_v1 = vadd.f32 %v1838_v57, %v1653_v62 }
 0x587   : > { %1665 = vst [vmem:[%s410_s25 + $0x8] sm:$0xff] %v1663_v63  ;;  %v1662_v2 = vmax.f32 %v1654_v1, 0.0 }
 0x589   : > { %1664 = vst [vmem:[%s410_s25] sm:$0xff] %v1662_v2 }
 0x58a   : > { %2485 = shalt.err (!%p2482_p3)
}
 0x58b   : > { %s2486_s21 = scalar_lea.hbm %s2926_s17, 256  ;;  %s2490_s23 = scalar_lea.hbm %s2977_s8, 512 }
 0x58c   : > { %p2487_p6 = scmp.ne.s32.totalorder %s2926_s17, %s2486_s21  ;;  %p2491_p11 = scmp.lt.s32.totalorder %s2926_s17, %s2977_s8 }
 0x58d   : > { %p2492_p7 = scmp.lt.s32.totalorder %s2490_s23, %s2486_s21 }
 0x58e   : > { %p2488_p10 = pnand %p2487_p6, %p3006_p5 }
 0x58f   : > { %p2493_p0 = por %p2492_p7, %p2491_p11 }
 0x590   : > { %p2489_p12 = pneg %p2488_p10 }
 0x592   : > { %p2494_p2 = pnand %p2493_p0, %p2489_p12 }
 0x594   : > { %2497 = shalt.err (!%p2494_p2)
}
 0x595   : > { %s2565_s13 = smov 128   ;;  %s2566_s24 = smov 8  }
 0x596   : > { %2198 = dma.vmem_to_hbm [thread:$0]  (%p3006_p5), %s2921_s12, 256, %s2926_s17, %s1667_s2, %s2565_s13, %s2565_s13, %s2566_s24  }
 0x597 PF: > { %s1695_s15 = sand.u32 1, %s2536_s27   ;;  %p3007_p8 = scmp.ne.s32.totalorder %s2994_s14, 0 }
 0x598   : > { %p3008_p9 = scmp.ge.s32.totalorder %s2548_s30, 2  ;;  %s1696_s11 = scalar_lea.sflag [#allocation4], %s1695_s15 }
 0x59a   : > { %p2224_p4 = pnand %p3008_p9, %p3007_p8 }
 0x59c   : > { %p2225_p13 = pneg %p2224_p4 }
 0x59e   : > { %2531 = dma.done.wait (%p2225_p13), %s1696_s11, 256  }
 0x59f   : > { %2533 = vsyncadd (%p2225_p13), %s1696_s11, 4294967040  ;;  %p24_p1 = scmp.ge.s32.totalorder %s2723_s18, 4   ;;  %s3009_s27 = smov %s2540_s28 }
 0x5a0   : > { %s3010_s28 = smov %s2544_s29  ;;  %s3011_s29 = smov %s2734_s9 }
 0x5a1   : > { %s3012_s30 = smov %s2723_s18  ;;  %26 = sbr.rel (!%p24_p1) target bundleno = 11 (0xb), region = 121 }
 0x5a6   :  { %1701 = vsyncpa [#allocation3], 1 }
 0x5a7   :  { %1703 = vsyncpa [#allocation3 + $0x1], 1 }
 0x5a8   :  { %1704 = vsyncpa [#allocation6], 1 }
 0x5a9   :  { %1705 = vsyncpa [#allocation9], 1 }
 0x5aa   :  { %1706 = vsyncpa [#allocation12], 1 }
 0x5ab   :  { %1707 = vsyncpa [#allocation4], 1 }
 0x5ac   :  { %1709 = vsyncpa [#allocation4 + $0x1], 1 }

</bundles_post_ra>
